<compile_context>
chip_gen: v7x
topology: tpu7x:2x2x1
jax: 0.10.0
libtpu: 0.0.40
codegen_flags: <defaults>
</compile_context>

<pallas_src>
import jax
import jax.numpy as jnp
from jax.experimental import pallas as pl
from jax.experimental.pallas import tpu as pltpu

FEAT_DIM = 2048          # fixed by the module: BatchNorm1d(2048), Linear(2048, num)
BN_EPS = 1e-5            # nn.BatchNorm1d default eps
LANE = 128               # TPU lane width


def _head_kernel(x_ref, w_ref, bias_ref, o_ref):
    """Pooling-first fused head: (GAP + BN(eval) + Linear).

    x_ref:    (B_TILE, C_TILE, HW)   feature map tile, native dtype (f32/bf16)
    w_ref:    (C_TILE, N_PAD)        f32 Linear weight with BN scale and 1/HW folded in
    bias_ref: (1, N_PAD)             f32 folded BN bias projected through W
    o_ref:    (B_TILE, N_PAD)        f32 logits, resident across the C grid axis
    """
    c_step = pl.program_id(1)

    @pl.when(c_step == 0)
    def _init():
        o_ref[...] = jnp.broadcast_to(bias_ref[...], o_ref.shape)

    # Spatial (GAP) reduction first -- f32 accumulation over HW lanes.
    pooled = jnp.sum(x_ref[...].astype(jnp.float32), axis=-1)       # (B_TILE, C_TILE)
    # Single MXU matmul per step, accumulated in f32 directly in the output block.
    o_ref[...] += jnp.dot(pooled, w_ref[...],
                          preferred_element_type=jnp.float32)


def init_params(key, num_classes_list):
    """Deterministic parameter init matching ft_net_intra.__init__."""
    params = []
    for i, num in enumerate(num_classes_list):
        k_i = jax.random.fold_in(key, i)
        # init.normal_(classifier_one[1].weight, std=0.001)
        lin_w = jax.random.normal(k_i, (num, FEAT_DIM), jnp.float32) * 0.001
        gamma = jnp.ones((FEAT_DIM,), jnp.float32)    # init.constant_(bn.weight, 1.0)
        beta = jnp.zeros((FEAT_DIM,), jnp.float32)    # init.constant_(bn.bias, 0.0), frozen
        r_mean = jnp.zeros((FEAT_DIM,), jnp.float32)  # BN running_mean default
        r_var = jnp.ones((FEAT_DIM,), jnp.float32)    # BN running_var default
        params.append((gamma, beta, r_mean, r_var, lin_w))
    return params


def fold_head_params(params, hw):
    """Fold eval-mode BatchNorm1d (+ the 1/HW GAP factor) into each Linear.

    Hoisted out of the per-call forward path; call once per feature-map size.
    Returns a list of (w_pad (C, N_PAD) f32, bias_pad (1, N_PAD) f32, num).
    """
    folded = []
    for (gamma, beta, r_mean, r_var, lin_w) in params:
        rstd = jax.lax.rsqrt(r_var.astype(jnp.float32) + BN_EPS)
        scale = gamma * rstd                                         # (C,)
        num = lin_w.shape[0]
        n_pad = LANE * pl.cdiv(num, LANE)                            # lane-dense output
        # Pre-transposed, BN-scale and 1/HW folded in; kept f32 (mantissa-safe).
        w_fold = (lin_w * scale[None, :] * (1.0 / hw)).T             # (C, num)
        bias_fold = jnp.einsum("nc,c->n", lin_w, beta - r_mean * scale,
                               precision=jax.lax.Precision.HIGHEST)  # (num,)
        w_pad = jnp.zeros((FEAT_DIM, n_pad), jnp.float32).at[:, :num].set(w_fold)
        b_pad = jnp.zeros((1, n_pad), jnp.float32).at[0, :num].set(bias_fold)
        folded.append((w_pad, b_pad, num))
    return folded


def ft_net_intra_forward(x_feat_nchw, folded_params, k=0):
    """x_feat_nchw: (B, 2048, Hf, Wf) backbone layer4 output (NCHW, like PyTorch)."""
    B, C, H, W = x_feat_nchw.shape
    assert C == FEAT_DIM
    hw = H * W

    # Free reshape (merges contiguous trailing dims) -- no HBM relayout, no cast pass.
    x = x_feat_nchw.reshape(B, C, hw)

    w_pad, bias_pad, num = folded_params[k]
    n_pad = w_pad.shape[1]

    # B tile: multiple of 8 (sublane rule) or the full batch for small/odd B.
    # (On v7x, B >= 16 gives >= 2 "parallel" steps so both TensorCores are used.)
    b_tile = 8 if B % 8 == 0 else B

    # C tile: start at the full 2048 (weight then fully resident, DMA'd once) and
    # shrink by powers of two only if a single x tile would exceed ~8 MiB, so the
    # double-buffered x stream + 1 MiB weight stays under the 32 MiB VMEM limit.
    itemsize = x.dtype.itemsize
    c_tile = C
    per_buffer_budget = 8 * 1024 * 1024
    while c_tile > 256 and b_tile * c_tile * hw * itemsize > per_buffer_budget:
        c_tile //= 2
    assert C % c_tile == 0

    grid = (B // b_tile, C // c_tile)          # B parallel, C reduction last

    out_pad = pl.pallas_call(
        _head_kernel,
        out_shape=jax.ShapeDtypeStruct((B, n_pad), jnp.float32),
        grid_spec=pltpu.PrefetchScalarGridSpec(
            num_scalar_prefetch=0,
            grid=grid,
            in_specs=[
                pl.BlockSpec((b_tile, c_tile, hw), lambda i, c: (i, c, 0)),  # x stream
                pl.BlockSpec((c_tile, n_pad), lambda i, c: (c, 0)),          # folded W (f32)
                pl.BlockSpec((1, n_pad), lambda i, c: (0, 0)),               # folded bias
            ],
            out_specs=pl.BlockSpec((b_tile, n_pad), lambda i, c: (i, 0)),    # resident over C
        ),
        compiler_params=pltpu.CompilerParams(
            dimension_semantics=("parallel", "arbitrary"),
            vmem_limit_bytes=32 * 1024 * 1024),
    )(x, w_pad, bias_pad)

    return out_pad[:, :num]


def _reference_forward(x_feat_nchw, params, k=0):
    """Pure-JAX f32 reference (matches the PyTorch eval forward)."""
    gamma, beta, r_mean, r_var, lin_w = params[k]
    feat = jnp.mean(x_feat_nchw.astype(jnp.float32), axis=(2, 3))           # (B, C)
    xhat = (feat - r_mean) * jax.lax.rsqrt(r_var + BN_EPS) * gamma + beta
    return jnp.einsum("bc,nc->bn", xhat, lin_w,
                      precision=jax.lax.Precision.HIGHEST)


if __name__ == "__main__":
    key = jax.random.PRNGKey(0)
    k_x, k_p, k_bn = jax.random.split(key, 3)

    num_classes_list = [8, 16]                 # num_classes per camera
    params = init_params(k_p, num_classes_list)

    # Emulate "trained" BN running stats / gamma (beta stays 0: it is frozen in
    # the module) so the BN-folding path is actually exercised by the check.
    trained = []
    for i, (gamma, beta, r_mean, r_var, lin_w) in enumerate(params):
        kk = jax.random.fold_in(k_bn, i)
        k1, k2, k3 = jax.random.split(kk, 3)
        gamma = 1.0 + 0.1 * jax.random.normal(k1, gamma.shape)
        r_mean = 0.2 * jax.random.normal(k2, r_mean.shape)
        r_var = 1.0 + 0.3 * jax.random.uniform(k3, r_var.shape)
        trained.append((gamma, beta, r_mean, r_var, lin_w))
    params = trained

    # Small, shape-consistent stand-in for the AIBNResNet layer4 output:
    # (B=2, C=2048, Hf=4, Wf=8) in NCHW.
    x_feat = jax.random.normal(k_x, (2, FEAT_DIM, 4, 8), jnp.float32)
    hw = x_feat.shape[2] * x_feat.shape[3]

    # Folding is hoisted out of the hot path: done once per feature-map size.
    folded = fold_head_params(params, hw)

    k = 0
    out = ft_net_intra_forward(x_feat, folded, k=k)
    jax.block_until_ready(out)

    ref = _reference_forward(x_feat, params, k=k)
    assert out.shape == (2, num_classes_list[k]), out.shape
    max_err = float(jnp.max(jnp.abs(out - ref)))
    assert jnp.allclose(out, ref, atol=2e-3, rtol=2e-2), \
        f"mismatch vs reference (max abs err {max_err})"

    print("KERNEL_OK")
</pallas_src>

<mosaic_0001>
module attributes {stable_mosaic.version = 11 : i64} {
  func.func @_head_kernel(%arg0: i32, %arg1: i32, %arg2: memref<2x2048x32xf32, #tpu.memory_space<vmem>>, %arg3: memref<2048x128xf32, #tpu.memory_space<vmem>>, %arg4: memref<1x128xf32, #tpu.memory_space<vmem>>, %arg5: memref<2x128xf32, #tpu.memory_space<vmem>>) attributes {dimension_semantics = [#tpu.dimension_semantics<parallel>, #tpu.dimension_semantics<arbitrary>], iteration_bounds = array<i64: 1, 1>, scalar_prefetch = 0 : i64, scratch_operands = 0 : i64, tpu.core_type = #tpu.core_type<tc>, window_params = [{transform_indices = @transform_0, window_bounds = array<i64: 2, 2048, 32>}, {transform_indices = @transform_1, window_bounds = array<i64: 2048, 128>}, {pipeline_mode = #tpu.pipeline_mode<synchronous>, transform_indices = @transform_2, window_bounds = array<i64: 1, 128>}, {transform_indices = @transform_3, window_bounds = array<i64: 2, 128>}]} {
    %c0_i32 = arith.constant 0 : i32
    %0 = arith.cmpi eq, %arg1, %c0_i32 : i32
    %1 = arith.extui %0 : i1 to i32
    %c0_i32_0 = arith.constant 0 : i32
    %2 = arith.cmpi ne, %1, %c0_i32_0 : i32
    scf.if %2 {
      %c0_10 = arith.constant 0 : index
      %c0_11 = arith.constant 0 : index
      %10 = vector.load %arg4[%c0_10, %c0_11] : memref<1x128xf32, #tpu.memory_space<vmem>>, vector<1x128xf32>
      %11 = vector.shape_cast %10 : vector<1x128xf32> to vector<1x128xf32>
      %12 = vector.broadcast %11 : vector<1x128xf32> to vector<2x128xf32>
      %c0_12 = arith.constant 0 : index
      %c0_13 = arith.constant 0 : index
      %13 = vector.load %arg5[%c0_12, %c0_13] : memref<2x128xf32, #tpu.memory_space<vmem>>, vector<2x128xf32>
      tpu.vector_store %arg5[%c0_12, %c0_13], %12 {strides = array<i32>} : memref<2x128xf32, #tpu.memory_space<vmem>>, vector<2x128xf32>,
    } else {
    }
    %c0 = arith.constant 0 : index
    %c0_1 = arith.constant 0 : index
    %c0_2 = arith.constant 0 : index
    %3 = vector.load %arg2[%c0, %c0_1, %c0_2] : memref<2x2048x32xf32, #tpu.memory_space<vmem>>, vector<2x2048x32xf32>
    %cst = arith.constant dense<0.000000e+00> : vector<2x2048xf32>
    %4 = vector.multi_reduction <add>, %3, %cst [2] : vector<2x2048x32xf32> to vector<2x2048xf32>
    %c0_3 = arith.constant 0 : index
    %c0_4 = arith.constant 0 : index
    %5 = vector.load %arg5[%c0_3, %c0_4] : memref<2x128xf32, #tpu.memory_space<vmem>>, vector<2x128xf32>
    %c0_5 = arith.constant 0 : index
    %c0_6 = arith.constant 0 : index
    %6 = vector.load %arg3[%c0_5, %c0_6] : memref<2048x128xf32, #tpu.memory_space<vmem>>, vector<2048x128xf32>
    %cst_7 = arith.constant dense<0.000000e+00> : vector<2x128xf32>
    %7 = tpu.matmul %4, %6, %cst_7 {dimension_numbers = #tpu.dot_dimension_numbers<[1], [0], [0], [1], [0, 0, 1, 1], [], []>} : vector<2x2048xf32>, vector<2048x128xf32>, vector<2x128xf32> -> vector<2x128xf32>
    %8 = arith.addf %5, %7 : vector<2x128xf32>
    %c0_8 = arith.constant 0 : index
    %c0_9 = arith.constant 0 : index
    %9 = vector.load %arg5[%c0_8, %c0_9] : memref<2x128xf32, #tpu.memory_space<vmem>>, vector<2x128xf32>
    tpu.vector_store %arg5[%c0_8, %c0_9], %8 {strides = array<i32>} : memref<2x128xf32, #tpu.memory_space<vmem>>, vector<2x128xf32>,
    return
  }
  func.func @transform_0(%arg0: i32, %arg1: i32) -> (i32, i32, i32) {
    %c0_i32 = arith.constant 0 : i32
    %c0_i32_0 = arith.constant 0 : i32
    return %arg0, %arg1, %c0_i32 : i32, i32, i32
  }
  func.func @transform_1(%arg0: i32, %arg1: i32) -> (i32, i32) {
    %c0_i32 = arith.constant 0 : i32
    %c0_i32_0 = arith.constant 0 : i32
    return %arg1, %c0_i32 : i32, i32
  }
  func.func @transform_2(%arg0: i32, %arg1: i32) -> (i32, i32) {
    %c0_i32 = arith.constant 0 : i32
    %c0_i32_0 = arith.constant 0 : i32
    %c0_i32_1 = arith.constant 0 : i32
    return %c0_i32, %c0_i32_0 : i32, i32
  }
  func.func @transform_3(%arg0: i32, %arg1: i32) -> (i32, i32) {
    %c0_i32 = arith.constant 0 : i32
    %c0_i32_0 = arith.constant 0 : i32
    return %arg0, %c0_i32 : i32, i32
  }
}

</mosaic_0001>

<bundles_post_ra>
// kernel: tpu_custom_call.1
= control target key start
LH: loop header
LB: loop body
LE: loop exit
PB: predicated region body
PF: predicated region fallthrough
CT: control target
= control target key end

     0   :  { %vm539_vm0 = vcmask 261120   ;;  %s10945_s0 = inlined_call_operand.vmem [shape: f32[2,2048,32], index: 0, kind: input, shape index: {}]   ;;  %s10946_s1 = inlined_call_operand.vmem [shape: f32[2048,128], index: 1, kind: input, shape index: {}]   ;;  %s10947_s2 = inlined_call_operand.vmem [shape: f32[1,128], index: 2, kind: input, shape index: {}]   ;;  %s10948_s3 = inlined_call_operand.hbm [shape: f32[2,128], index: 3, kind: output, shape index: {}]  }
   0x1   :  { %v29_v0 = vld [vmem:[%s10945_s0 + $0x10] sm:$0xff]  ;;  %v27_v1 = vld [vmem:[%s10945_s0] sm:$0xff]  ;;  %v30_v2 = vld [vmem:[%s10945_s0 + $0x18] sm:$0xff] }
   0x2   :  { %v546_v3 = vsel %vm539_vm0, %v29_v0, 0.0  ;;  %v540_v4 = vsel %vm539_vm0, %v27_v1, 0.0  ;;  %v28_v5 = vld [vmem:[%s10945_s0 + $0x8] sm:$0xff]  ;;  %v549_v6 = vsel %vm539_vm0, %v30_v2, 0.0  ;;  %v31_v9 = vld [vmem:[%s10945_s0 + $0x20] sm:$0xff]  ;;  %v34_v12 = vld [vmem:[%s10945_s0 + $0x38] sm:$0xff] }
   0x3   :  { %547 = vadd.xlane.f32.xlu1 %v546_v3  ;;  %541 = vadd.xlane.f32.xlu0 %v540_v4  ;;  %v543_v7 = vsel %vm539_vm0, %v28_v5, 0.0  ;;  %v32_v8 = vld [vmem:[%s10945_s0 + $0x28] sm:$0xff]  ;;  %v552_v11 = vsel %vm539_vm0, %v31_v9, 0.0  ;;  %v33_v13 = vld [vmem:[%s10945_s0 + $0x30] sm:$0xff]  ;;  %v561_v14 = vsel %vm539_vm0, %v34_v12, 0.0  ;;  %v35_v17 = vld [vmem:[%s10945_s0 + $0x40] sm:$0xff] }
   0x4   :  { %v555_v10 = vsel %vm539_vm0, %v32_v8, 0.0  ;;  %v558_v15 = vsel %vm539_vm0, %v33_v13, 0.0  ;;  %v36_v16 = vld [vmem:[%s10945_s0 + $0x48] sm:$0xff]  ;;  %v564_v19 = vsel %vm539_vm0, %v35_v17, 0.0  ;;  %v38_v20 = vld [vmem:[%s10945_s0 + $0x58] sm:$0xff]  ;;  %v37_v21 = vld [vmem:[%s10945_s0 + $0x50] sm:$0xff] }
   0x5   :  { %v567_v18 = vsel %vm539_vm0, %v36_v16, 0.0  ;;  %v573_v22 = vsel %vm539_vm0, %v38_v20, 0.0  ;;  %v570_v23 = vsel %vm539_vm0, %v37_v21, 0.0  ;;  %v40_v24 = vld [vmem:[%s10945_s0 + $0x68] sm:$0xff]  ;;  %v39_v25 = vld [vmem:[%s10945_s0 + $0x60] sm:$0xff]  ;;  %v42_v28 = vld [vmem:[%s10945_s0 + $0x78] sm:$0xff] }
   0x6   :  { %v579_v26 = vsel %vm539_vm0, %v40_v24, 0.0  ;;  %v576_v27 = vsel %vm539_vm0, %v39_v25, 0.0  ;;  %v41_v29 = vld [vmem:[%s10945_s0 + $0x70] sm:$0xff]  ;;  %v585_v30 = vsel %vm539_vm0, %v42_v28, 0.0 }
   0x7   :  { %550 = vadd.xlane.f32.xlu1 %v549_v6  ;;  %544 = vadd.xlane.f32.xlu0 %v543_v7  ;;  %v582_v31 = vsel %vm539_vm0, %v41_v29, 0.0 }
   0xb   :  { %556 = vadd.xlane.f32.xlu1 %v555_v10  ;;  %553 = vadd.xlane.f32.xlu0 %v552_v11 }
   0xf   :  { %562 = vadd.xlane.f32.xlu1 %v561_v14  ;;  %559 = vadd.xlane.f32.xlu0 %v558_v15 }
  0x13   :  { %568 = vadd.xlane.f32.xlu1 %v567_v18  ;;  %565 = vadd.xlane.f32.xlu0 %v564_v19 }
  0x17   :  { %574 = vadd.xlane.f32.xlu1 %v573_v22  ;;  %571 = vadd.xlane.f32.xlu0 %v570_v23 }
  0x1b   :  { %580 = vadd.xlane.f32.xlu1 %v579_v26  ;;  %577 = vadd.xlane.f32.xlu0 %v576_v27 }
  0x1c   :  { %8 = vsyncpa [#allocation3], 0  ;;  %v44_v32 = vld [vmem:[%s10945_s0 + $0x88] sm:$0xff]  ;;  %v43_v33 = vld [vmem:[%s10945_s0 + $0x80] sm:$0xff]  ;;  %vm2856_vm1 = vcmask 130112   ;;  %vm2863_vm2 = vcmask 195712  }
  0x1d   :  { %v591_v34 = vsel %vm539_vm0, %v44_v32, 0.0  ;;  %v588_v35 = vsel %vm539_vm0, %v43_v33, 0.0  ;;  %v46_v36 = vld [vmem:[%s10945_s0 + $0x98] sm:$0xff]  ;;  %v45_v37 = vld [vmem:[%s10945_s0 + $0x90] sm:$0xff]  ;;  %v48_v40 = vld [vmem:[%s10945_s0 + $0xa8] sm:$0xff]  ;;  %vm2870_vm3 = vcmask 261312  }
  0x1e   :  { %v597_v38 = vsel %vm539_vm0, %v46_v36, 0.0  ;;  %v594_v39 = vsel %vm539_vm0, %v45_v37, 0.0  ;;  %v47_v41 = vld [vmem:[%s10945_s0 + $0xa0] sm:$0xff]  ;;  %v603_v42 = vsel %vm539_vm0, %v48_v40, 0.0  ;;  %v50_v44 = vld [vmem:[%s10945_s0 + $0xb8] sm:$0xff]  ;;  %v49_v45 = vld [vmem:[%s10945_s0 + $0xb0] sm:$0xff] }
  0x1f   :  { %586 = vadd.xlane.f32.xlu1 %v585_v30  ;;  %583 = vadd.xlane.f32.xlu0 %v582_v31  ;;  %v600_v43 = vsel %vm539_vm0, %v47_v41, 0.0  ;;  %v609_v46 = vsel %vm539_vm0, %v50_v44, 0.0  ;;  %v606_v47 = vsel %vm539_vm0, %v49_v45, 0.0  ;;  %v52_v48 = vld [vmem:[%s10945_s0 + $0xc8] sm:$0xff]  ;;  %v51_v49 = vld [vmem:[%s10945_s0 + $0xc0] sm:$0xff]  ;;  %v54_v52 = vld [vmem:[%s10945_s0 + $0xd8] sm:$0xff] }
  0x20   :  { %v615_v50 = vsel %vm539_vm0, %v52_v48, 0.0  ;;  %v612_v51 = vsel %vm539_vm0, %v51_v49, 0.0  ;;  %v53_v53 = vld [vmem:[%s10945_s0 + $0xd0] sm:$0xff]  ;;  %v621_v54 = vsel %vm539_vm0, %v54_v52, 0.0  ;;  %v56_v56 = vld [vmem:[%s10945_s0 + $0xe8] sm:$0xff]  ;;  %v55_v57 = vld [vmem:[%s10945_s0 + $0xe0] sm:$0xff] }
  0x21   :  { %v618_v55 = vsel %vm539_vm0, %v53_v53, 0.0  ;;  %v627_v58 = vsel %vm539_vm0, %v56_v56, 0.0  ;;  %v624_v59 = vsel %vm539_vm0, %v55_v57, 0.0  ;;  %v58_v60 = vld [vmem:[%s10945_s0 + $0xf8] sm:$0xff]  ;;  %v57_v61 = vld [vmem:[%s10945_s0 + $0xf0] sm:$0xff]  ;;  %v60_v0 = vld [vmem:[%s10945_s0 + $0x108] sm:$0xff] }
  0x22   :  { %v633_v62 = vsel %vm539_vm0, %v58_v60, 0.0  ;;  %v630_v63 = vsel %vm539_vm0, %v57_v61, 0.0  ;;  %v59_v1 = vld [vmem:[%s10945_s0 + $0x100] sm:$0xff]  ;;  %v639_v2 = vsel %vm539_vm0, %v60_v0, 0.0  ;;  %v62_v4 = vld [vmem:[%s10945_s0 + $0x118] sm:$0xff]  ;;  %v61_v5 = vld [vmem:[%s10945_s0 + $0x110] sm:$0xff] }
  0x23   :  { %592 = vadd.xlane.f32.xlu1 %v591_v34  ;;  %589 = vadd.xlane.f32.xlu0 %v588_v35  ;;  %v636_v3 = vsel %vm539_vm0, %v59_v1, 0.0  ;;  %v645_v6 = vsel %vm539_vm0, %v62_v4, 0.0  ;;  %v642_v7 = vsel %vm539_vm0, %v61_v5, 0.0  ;;  %v64_v8 = vld [vmem:[%s10945_s0 + $0x128] sm:$0xff]  ;;  %v63_v9 = vld [vmem:[%s10945_s0 + $0x120] sm:$0xff]  ;;  %v66_v12 = vld [vmem:[%s10945_s0 + $0x138] sm:$0xff] }
  0x24   :  { %v651_v10 = vsel %vm539_vm0, %v64_v8, 0.0  ;;  %v648_v11 = vsel %vm539_vm0, %v63_v9, 0.0  ;;  %v65_v13 = vld [vmem:[%s10945_s0 + $0x130] sm:$0xff]  ;;  %v657_v14 = vsel %vm539_vm0, %v66_v12, 0.0  ;;  %v68_v16 = vld [vmem:[%s10945_s0 + $0x148] sm:$0xff]  ;;  %v67_v17 = vld [vmem:[%s10945_s0 + $0x140] sm:$0xff] }
  0x25   :  { %v654_v15 = vsel %vm539_vm0, %v65_v13, 0.0  ;;  %v663_v18 = vsel %vm539_vm0, %v68_v16, 0.0  ;;  %v660_v19 = vsel %vm539_vm0, %v67_v17, 0.0  ;;  %v70_v20 = vld [vmem:[%s10945_s0 + $0x158] sm:$0xff]  ;;  %v69_v21 = vld [vmem:[%s10945_s0 + $0x150] sm:$0xff]  ;;  %v72_v24 = vld [vmem:[%s10945_s0 + $0x168] sm:$0xff] }
  0x26   :  { %v669_v22 = vsel %vm539_vm0, %v70_v20, 0.0  ;;  %v666_v23 = vsel %vm539_vm0, %v69_v21, 0.0  ;;  %v71_v25 = vld [vmem:[%s10945_s0 + $0x160] sm:$0xff]  ;;  %v675_v26 = vsel %vm539_vm0, %v72_v24, 0.0  ;;  %v74_v28 = vld [vmem:[%s10945_s0 + $0x178] sm:$0xff]  ;;  %v73_v29 = vld [vmem:[%s10945_s0 + $0x170] sm:$0xff] }
  0x27   :  { %598 = vadd.xlane.f32.xlu1 %v597_v38  ;;  %595 = vadd.xlane.f32.xlu0 %v594_v39  ;;  %v672_v27 = vsel %vm539_vm0, %v71_v25, 0.0  ;;  %v681_v30 = vsel %vm539_vm0, %v74_v28, 0.0  ;;  %v678_v31 = vsel %vm539_vm0, %v73_v29, 0.0  ;;  %v76_v32 = vld [vmem:[%s10945_s0 + $0x188] sm:$0xff]  ;;  %v75_v33 = vld [vmem:[%s10945_s0 + $0x180] sm:$0xff]  ;;  %v78_v36 = vld [vmem:[%s10945_s0 + $0x198] sm:$0xff] }
  0x28   :  { %v687_v34 = vsel %vm539_vm0, %v76_v32, 0.0  ;;  %v684_v35 = vsel %vm539_vm0, %v75_v33, 0.0  ;;  %v77_v37 = vld [vmem:[%s10945_s0 + $0x190] sm:$0xff]  ;;  %v693_v38 = vsel %vm539_vm0, %v78_v36, 0.0  ;;  %v80_v40 = vld [vmem:[%s10945_s0 + $0x1a8] sm:$0xff]  ;;  %v79_v41 = vld [vmem:[%s10945_s0 + $0x1a0] sm:$0xff] }
  0x29   :  { %v690_v39 = vsel %vm539_vm0, %v77_v37, 0.0  ;;  %v82_v44 = vld [vmem:[%s10945_s0 + $0x1b8] sm:$0xff]  ;;  %v81_v45 = vld [vmem:[%s10945_s0 + $0x1b0] sm:$0xff]  ;;  %v84_v48 = vld [vmem:[%s10945_s0 + $0x1c8] sm:$0xff]  ;;  %vm2877_vm4 = vcmask 326912   ;;  %vm2884_vm5 = vcmask 392512  }
  0x2a   :  { %v83_v49 = vld [vmem:[%s10945_s0 + $0x1c0] sm:$0xff]  ;;  %v86_v52 = vld [vmem:[%s10945_s0 + $0x1d8] sm:$0xff]  ;;  %v85_v53 = vld [vmem:[%s10945_s0 + $0x1d0] sm:$0xff]  ;;  %vm2891_vm6 = vcmask 458112   ;;  %vm2898_vm7 = vcmask 523712   ;;  %vm10950_vm8 = vcmask 589312  }
  0x2b   :  { %604 = vadd.xlane.f32.xlu1 %v603_v42  ;;  %601 = vadd.xlane.f32.xlu0 %v600_v43  ;;  %v699_v42 = vsel %vm539_vm0, %v80_v40, 0.0  ;;  %v696_v43 = vsel %vm539_vm0, %v79_v41, 0.0  ;;  %v88_v56 = vld [vmem:[%s10945_s0 + $0x1e8] sm:$0xff]  ;;  %v87_v57 = vld [vmem:[%s10945_s0 + $0x1e0] sm:$0xff]  ;;  %v90_v60 = vld [vmem:[%s10945_s0 + $0x1f8] sm:$0xff]  ;;  %vm2912_vm9 = vcmask 654912  }
  0x2c   :  { %v89_v61 = vld [vmem:[%s10945_s0 + $0x1f0] sm:$0xff]  ;;  %v92_v0 = vld [vmem:[%s10945_s0 + $0x208] sm:$0xff]  ;;  %v91_v1 = vld [vmem:[%s10945_s0 + $0x200] sm:$0xff]  ;;  %vm10951_vm10 = vcmask 720512   ;;  %vm2926_vm11 = vcmask 786112   ;;  %vm10949_vm12 = vcmask 851712  }
  0x2d   :  { %v94_v4 = vld [vmem:[%s10945_s0 + $0x218] sm:$0xff]  ;;  %v93_v5 = vld [vmem:[%s10945_s0 + $0x210] sm:$0xff]  ;;  %v96_v8 = vld [vmem:[%s10945_s0 + $0x228] sm:$0xff]  ;;  %vm2940_vm13 = vcmask 917312   ;;  %vm2947_vm14 = vcmask 982912   ;;  %vm2954_vm15 = vcmask 1048512  }
  0x2e   :  { %v95_v9 = vld [vmem:[%s10945_s0 + $0x220] sm:$0xff]  ;;  %v98_v13 = vld [vmem:[%s10945_s0 + $0x238] sm:$0xff]  ;;  %v101_v33 = vld [vmem:[%s10945_s0 + $0x250] sm:$0xff]  ;;  %s6576_s5 = smov [#allocation2]  }
  0x2f   :  { %610 = vadd.xlane.f32.xlu1 %v609_v46  ;;  %607 = vadd.xlane.f32.xlu0 %v606_v47  ;;  %v705_v46 = vsel %vm539_vm0, %v82_v44, 0.0  ;;  %v702_v47 = vsel %vm539_vm0, %v81_v45, 0.0  ;;  %v744_v12 = vsel %vm539_vm0, %v95_v9, 0.0  ;;  %v753_v16 = vsel %vm539_vm0, %v98_v13, 0.0  ;;  %v99_v20 = vld [vmem:[%s10945_s0 + $0x240] sm:$0xff]  ;;  %v102_v28 = vld [vmem:[%s10945_s0 + $0x258] sm:$0xff] }
  0x30   :  { %v765_v36 = vsel %vm539_vm0, %v102_v28, 0.0  ;;  %v104_v41 = vld [vmem:[%s10945_s0 + $0x268] sm:$0xff]  ;;  %v107_v9 = vld [vmem:[%s10945_s0 + $0x280] sm:$0xff]  ;;  %s6006_s6 = sshll.u32 %s6576_s5, 4  ;;  %s6007_s6 = int_to_ptr.vmem [resolvable:$true] %s6006_s6 }
  0x31   :  { %p6557_p1 = scmp.lt.s32.totalorder %s6007_s6, %s6007_s6 }
  0x33   :  { %616 = vadd.xlane.f32.xlu1 %v615_v50  ;;  %613 = vadd.xlane.f32.xlu0 %v612_v51  ;;  %v711_v50 = vsel %vm539_vm0, %v84_v48, 0.0  ;;  %v708_v51 = vsel %vm539_vm0, %v83_v49, 0.0 }
  0x37   :  { %622 = vadd.xlane.f32.xlu1 %v621_v54  ;;  %619 = vadd.xlane.f32.xlu0 %v618_v55  ;;  %v717_v54 = vsel %vm539_vm0, %v86_v52, 0.0  ;;  %v714_v55 = vsel %vm539_vm0, %v85_v53, 0.0 }
  0x3b   :  { %628 = vadd.xlane.f32.xlu1 %v627_v58  ;;  %625 = vadd.xlane.f32.xlu0 %v624_v59  ;;  %v723_v58 = vsel %vm539_vm0, %v88_v56, 0.0  ;;  %v720_v59 = vsel %vm539_vm0, %v87_v57, 0.0 }
  0x3f   :  { %634 = vadd.xlane.f32.xlu1 %v633_v62  ;;  %631 = vadd.xlane.f32.xlu0 %v630_v63  ;;  %v729_v62 = vsel %vm539_vm0, %v90_v60, 0.0  ;;  %v726_v63 = vsel %vm539_vm0, %v89_v61, 0.0 }
  0x43   :  { %640 = vadd.xlane.f32.xlu1 %v639_v2  ;;  %637 = vadd.xlane.f32.xlu0 %v636_v3  ;;  %v735_v2 = vsel %vm539_vm0, %v92_v0, 0.0  ;;  %v732_v3 = vsel %vm539_vm0, %v91_v1, 0.0 }
  0x47   :  { %646 = vadd.xlane.f32.xlu1 %v645_v6  ;;  %643 = vadd.xlane.f32.xlu0 %v642_v7  ;;  %v741_v6 = vsel %vm539_vm0, %v94_v4, 0.0  ;;  %v738_v7 = vsel %vm539_vm0, %v93_v5, 0.0 }
  0x4b   :  { %652 = vadd.xlane.f32.xlu1 %v651_v10  ;;  %649 = vadd.xlane.f32.xlu0 %v648_v11  ;;  %v2845_v10 = vlaneseq  ;;  %v747_v11 = vsel %vm539_vm0, %v96_v8, 0.0  ;;  %v108_v8 = vld [vmem:[%s10945_s0 + $0x288] sm:$0xff] }
  0x4f   :  { %658 = vadd.xlane.f32.xlu1 %v657_v14  ;;  %655 = vadd.xlane.f32.xlu0 %v654_v15  ;;  %v97_v14 = vld [vmem:[%s10945_s0 + $0x230] sm:$0xff]  ;;  %v6883_v15 = vand.u32 127, %v2845_v10 }
  0x50   :  { %v750_v17 = vsel %vm539_vm0, %v97_v14, 0.0 }
  0x51   :  { %v2865_v21 = vadd.s32 4294967272, %v6883_v15  ;;  %v2879_v29 = vadd.s32 4294967256, %v6883_v15  ;;  %v2886_v44 = vadd.s32 4294967248, %v6883_v15  ;;  %v2907_v60 = vadd.s32 4294967224, %v6883_v15 }
  0x52   :  { %v2900_v0 = vadd.s32 4294967232, %v6883_v15  ;;  %v2914_v14 = vadd.s32 4294967216, %v6883_v15 }
  0x53   :  { %664 = vadd.xlane.f32.xlu1 %v663_v18  ;;  %661 = vadd.xlane.f32.xlu0 %v660_v19  ;;  %v6887_v18 = vshrl.u32 %v2845_v10, 7  ;;  %v100_v19 = vld [vmem:[%s10945_s0 + $0x248] sm:$0xff]  ;;  %v2921_v10 = vadd.s32 4294967208, %v6883_v15 }
  0x55   :  { %v6924_v40 = vsub.s32 %v2879_v29, %v6887_v18  ;;  %v6949_v57 = vsub.s32 %v2886_v44, %v6887_v18  ;;  %v6979_v13 = vsub.s32 %v2900_v0, %v6887_v18  ;;  %v6999_v29 = vsub.s32 %v2914_v14, %v6887_v18 }
  0x57   :  { %670 = vadd.xlane.f32.xlu1 %v669_v22  ;;  %667 = vadd.xlane.f32.xlu0 %v666_v23  ;;  %v2851_v22 = vadd.s32 4294967288, %v6883_v15  ;;  %v2858_v23 = vadd.s32 4294967280, %v6883_v15 }
  0x59   :  { %v6912_v32 = vsub.s32 %v2851_v22, %v6887_v18 }
  0x5b   :  { %676 = vadd.xlane.f32.xlu1 %v675_v26  ;;  %673 = vadd.xlane.f32.xlu0 %v672_v27  ;;  %v759_v26 = vsel %vm539_vm0, %v100_v19, 0.0  ;;  %v756_v27 = vsel %vm539_vm0, %v99_v20, 0.0  ;;  %v780_v19 = vsel %vm539_vm0, %v107_v9, 0.0  ;;  %v115_v9 = vld [vmem:[%s10945_s0 + $0x2c0] sm:$0xff] }
  0x5f   :  { %682 = vadd.xlane.f32.xlu1 %v681_v30  ;;  %679 = vadd.xlane.f32.xlu0 %v678_v31  ;;  %v6906_v30 = vsub.s32 %v6883_v15, %v6887_v18  ;;  %v6909_v31 = vsub.s32 %v2865_v21, %v6887_v18 }
  0x61   :  { %10958 = vst [vmem:[#allocation5_spill] sm:$0xff] %v6909_v31 }
  0x63   :  { %688 = vadd.xlane.f32.xlu1 %v687_v34  ;;  %685 = vadd.xlane.f32.xlu0 %v684_v35  ;;  %v2872_v34 = vadd.s32 4294967264, %v6883_v15  ;;  %v6919_v35 = vsub.s32 %v2858_v23, %v6887_v18  ;;  %v6987_v23 = vsub.s32 %v2921_v10, %v6887_v18 }
  0x65   :  { %10959 = vst [vmem:[#allocation6_spill] sm:$0xff] %v6919_v35  ;;  %v6938_v48 = vsub.s32 %v2872_v34, %v6887_v18 }
  0x67   :  { %694 = vadd.xlane.f32.xlu1 %v693_v38  ;;  %691 = vadd.xlane.f32.xlu0 %v690_v39  ;;  %v762_v39 = vsel %vm539_vm0, %v101_v33, 0.0  ;;  %10960 = vst [vmem:[#allocation7_spill] sm:$0xff] %v6938_v48  ;;  %v2935_v33 = vadd.s32 4294967192, %v6883_v15 }
  0x6b   :  { %700 = vadd.xlane.f32.xlu1 %v699_v42  ;;  %697 = vadd.xlane.f32.xlu0 %v696_v43  ;;  %v103_v42 = vld [vmem:[%s10945_s0 + $0x260] sm:$0xff]  ;;  %v2893_v43 = vadd.s32 4294967240, %v6883_v15 }
  0x6c   :  { %v768_v52 = vsel %vm539_vm0, %v103_v42, 0.0 }
  0x6d   :  { %v6946_v56 = vsub.s32 %v2893_v43, %v6887_v18  ;;  %v2942_v43 = vadd.s32 4294967184, %v6883_v15 }
  0x6f   :  { %706 = vadd.xlane.f32.xlu1 %v705_v46  ;;  %703 = vadd.xlane.f32.xlu0 %v702_v47 }
  0x73   :  { %712 = vadd.xlane.f32.xlu1 %v711_v50  ;;  %709 = vadd.xlane.f32.xlu0 %v708_v51  ;;  %v771_v51 = vsel %vm539_vm0, %v104_v41, 0.0 }
  0x77   :  { %718 = vadd.xlane.f32.xlu1 %v717_v54  ;;  %715 = vadd.xlane.f32.xlu0 %v714_v55 }
  0x7b   :  { %724 = vadd.xlane.f32.xlu1 %v723_v58  ;;  %721 = vadd.xlane.f32.xlu0 %v720_v59  ;;  %v106_v58 = vld [vmem:[%s10945_s0 + $0x278] sm:$0xff]  ;;  %v105_v59 = vld [vmem:[%s10945_s0 + $0x270] sm:$0xff] }
  0x7f   :  { %730 = vadd.xlane.f32.xlu1 %v729_v62  ;;  %727 = vadd.xlane.f32.xlu0 %v726_v63 }
  0x83   :  { %736 = vadd.xlane.f32.xlu1 %v735_v2  ;;  %733 = vadd.xlane.f32.xlu0 %v732_v3  ;;  %v777_v2 = vsel %vm539_vm0, %v106_v58, 0.0  ;;  %v774_v3 = vsel %vm539_vm0, %v105_v59, 0.0  ;;  %v7027_v59 = vsub.s32 %v2942_v43, %v6887_v18 }
  0x87   :  { %742 = vadd.xlane.f32.xlu1 %v741_v6  ;;  %739 = vadd.xlane.f32.xlu0 %v738_v7  ;;  %v6967_v7 = vsub.s32 %v2907_v60, %v6887_v18 }
  0x8b   :  { %748 = vadd.xlane.f32.xlu1 %v747_v11  ;;  %745 = vadd.xlane.f32.xlu0 %v744_v12 }
  0x8f   :  { %754 = vadd.xlane.f32.xlu1 %v753_v16  ;;  %751 = vadd.xlane.f32.xlu0 %v750_v17  ;;  %v783_v17 = vsel %vm539_vm0, %v108_v8, 0.0  ;;  %v116_v8 = vld [vmem:[%s10945_s0 + $0x2c8] sm:$0xff] }
  0x90   :  { %v548_v24 = vpop.xlane.xlu1 %547  ;;  %v542_v25 = vpop.xlane.xlu0 %541  ;;  %v807_v14 = vsel %vm539_vm0, %v116_v8, 0.0 }
  0x91   :  { %v2850_v45 = vrot.slane %v542_v25, %v6906_v30  ;;  %v2862_v49 = vrot.slane %v548_v24, %v6919_v35  ;;  %v110_v24 = vld [vmem:[%s10945_s0 + $0x298] sm:$0xff]  ;;  %v109_v25 = vld [vmem:[%s10945_s0 + $0x290] sm:$0xff] }
  0x93   :  { %760 = vadd.xlane.f32.xlu1 %v759_v26  ;;  %757 = vadd.xlane.f32.xlu0 %v756_v27  ;;  %v2928_v26 = vadd.s32 4294967200, %v6883_v15 }
  0x94   :  { %v551_v37 = vpop.xlane.xlu1 %550  ;;  %v545_v38 = vpop.xlane.xlu0 %544 }
  0x95   :  { %v2869_v46 = vrot.slane %v551_v37, %v6909_v31  ;;  %v2855_v47 = vrot.slane %v545_v38, %v6912_v32  ;;  %v786_v37 = vsel %vm539_vm0, %v109_v25, 0.0  ;;  %v7007_v42 = vsub.s32 %v2928_v26, %v6887_v18 }
  0x97   :  { %v2857_v50 = vsel %vm2856_vm1, %v2855_v47, %v2850_v45  ;;  %766 = vadd.xlane.f32.xlu1 %v765_v36  ;;  %763 = vadd.xlane.f32.xlu0 %v762_v39  ;;  %v789_v36 = vsel %vm539_vm0, %v110_v24, 0.0  ;;  %v112_v47 = vld [vmem:[%s10945_s0 + $0x2a8] sm:$0xff] }
  0x98   :  { %v2864_v53 = vsel %vm2863_vm2, %v2862_v49, %v2857_v50  ;;  %v557_v54 = vpop.xlane.xlu1 %556  ;;  %v554_v55 = vpop.xlane.xlu0 %553  ;;  %v111_v49 = vld [vmem:[%s10945_s0 + $0x2a0] sm:$0xff]  ;;  %v2949_v50 = vadd.s32 4294967176, %v6883_v15 }
  0x99   :  { %v2883_v61 = vrot.slane %v557_v54, %v6924_v40  ;;  %v2871_v62 = vsel %vm2870_vm3, %v2869_v46, %v2864_v53  ;;  %v2876_v63 = vrot.slane %v554_v55, %v6938_v48  ;;  %v7013_v46 = vsub.s32 %v2935_v33, %v6887_v18 }
  0x9a   :  { %v795_v55 = vsel %vm539_vm0, %v112_v47, 0.0  ;;  %v792_v58 = vsel %vm539_vm0, %v111_v49, 0.0 }
  0x9b   :  { %v2878_v1 = vsel %vm2877_vm4, %v2876_v63, %v2871_v62  ;;  %772 = vadd.xlane.f32.xlu1 %v771_v51  ;;  %769 = vadd.xlane.f32.xlu0 %v768_v52  ;;  %v114_v62 = vld [vmem:[%s10945_s0 + $0x2b8] sm:$0xff]  ;;  %v113_v63 = vld [vmem:[%s10945_s0 + $0x2b0] sm:$0xff] }
  0x9c   :  { %v563_v4 = vpop.xlane.xlu1 %562  ;;  %v2885_v5 = vsel %vm2884_vm5, %v2883_v61, %v2878_v1  ;;  %v560_v6 = vpop.xlane.xlu0 %559  ;;  %v7032_v61 = vsub.s32 %v2949_v50, %v6887_v18  ;;  %v798_v18 = vsel %vm539_vm0, %v113_v63, 0.0  ;;  %v122_v50 = vld [vmem:[%s10945_s0 + $0x2f8] sm:$0xff]  ;;  %v124_v63 = vld [vmem:[%s10945_s0 + $0x308] sm:$0xff] }
  0x9d   :  { %v2897_v11 = vrot.slane %v563_v4, %v6946_v56  ;;  %v2890_v12 = vrot.slane %v560_v6, %v6949_v57 }
  0x9f   :  { %v2892_v16 = vsel %vm2891_vm6, %v2890_v12, %v2885_v5  ;;  %778 = vadd.xlane.f32.xlu1 %v777_v2  ;;  %775 = vadd.xlane.f32.xlu0 %v774_v3  ;;  %v801_v3 = vsel %vm539_vm0, %v114_v62, 0.0 }
  0xa0   :  { %v569_v20 = vpop.xlane.xlu1 %568  ;;  %v2899_v21 = vsel %vm2898_vm7, %v2897_v11, %v2892_v16  ;;  %v566_v22 = vpop.xlane.xlu0 %565  ;;  %v804_v16 = vsel %vm539_vm0, %v115_v9, 0.0  ;;  %v126_v9 = vld [vmem:[%s10945_s0 + $0x318] sm:$0xff] }
  0xa1   :  { %v2911_v27 = vrot.slane %v569_v20, %v6967_v7  ;;  %v2904_v28 = vrot.slane %v566_v22, %v6979_v13  ;;  %v117_v22 = vld [vmem:[%s10945_s0 + $0x2d0] sm:$0xff] }
  0xa3   :  { %v2906_v34 = vsel %vm10950_vm8, %v2904_v28, %v2899_v21  ;;  %784 = vadd.xlane.f32.xlu1 %v783_v17  ;;  %781 = vadd.xlane.f32.xlu0 %v780_v19  ;;  %v118_v21 = vld [vmem:[%s10945_s0 + $0x2d8] sm:$0xff]  ;;  %v810_v28 = vsel %vm539_vm0, %v117_v22, 0.0 }
  0xa4   :  { %v575_v38 = vpop.xlane.xlu1 %574  ;;  %v2913_v39 = vsel %vm2912_vm9, %v2911_v27, %v2906_v34  ;;  %v572_v41 = vpop.xlane.xlu0 %571  ;;  %v813_v27 = vsel %vm539_vm0, %v118_v21, 0.0 }
  0xa5   :  { %v2925_v44 = vrot.slane %v575_v38, %v6987_v23  ;;  %v2918_v45 = vrot.slane %v572_v41, %v6999_v29 }
  0xa7   :  { %v2920_v51 = vsel %vm10951_vm10, %v2918_v45, %v2913_v39  ;;  %790 = vadd.xlane.f32.xlu1 %v789_v36  ;;  %787 = vadd.xlane.f32.xlu0 %v786_v37  ;;  %v120_v36 = vld [vmem:[%s10945_s0 + $0x2e8] sm:$0xff]  ;;  %v119_v37 = vld [vmem:[%s10945_s0 + $0x2e0] sm:$0xff] }
  0xa8   :  { %v581_v52 = vpop.xlane.xlu1 %580  ;;  %v2927_v53 = vsel %vm2926_vm11, %v2925_v44, %v2920_v51  ;;  %v578_v54 = vpop.xlane.xlu0 %577  ;;  %v819_v44 = vsel %vm539_vm0, %v120_v36, 0.0  ;;  %v816_v45 = vsel %vm539_vm0, %v119_v37, 0.0  ;;  %v121_v51 = vld [vmem:[%s10945_s0 + $0x2f0] sm:$0xff] }
  0xa9   :  { %v2939_v60 = vrot.slane %v581_v52, %v7013_v46  ;;  %v2932_v15 = vrot.slane %v578_v54, %v7007_v42 }
  0xab   :  { %v2934_v0 = vsel %vm10949_vm12, %v2932_v15, %v2927_v53  ;;  %796 = vadd.xlane.f32.xlu1 %v795_v55  ;;  %793 = vadd.xlane.f32.xlu0 %v792_v58  ;;  %v825_v58 = vsel %vm539_vm0, %v122_v50, 0.0 }
  0xac   :  { %v587_v1 = vpop.xlane.xlu1 %586  ;;  %v584_v2 = vpop.xlane.xlu0 %583  ;;  %v2941_v4 = vsel %vm2940_vm13, %v2939_v60, %v2934_v0  ;;  %v822_v60 = vsel %vm539_vm0, %v121_v51, 0.0  ;;  %v123_v0 = vld [vmem:[%s10945_s0 + $0x300] sm:$0xff] }
  0xad   :  { %v2953_v5 = vrot.slane %v587_v1, %v7032_v61  ;;  %v2946_v6 = vrot.slane %v584_v2, %v7027_v59 }
  0xaf   :  { %802 = vadd.xlane.f32.xlu1 %v801_v3  ;;  %799 = vadd.xlane.f32.xlu0 %v798_v18  ;;  %v2948_v10 = vsel %vm2947_vm14, %v2946_v6, %v2941_v4  ;;  %v831_v4 = vsel %vm539_vm0, %v124_v63, 0.0 }
  0xb0   :  { %v593_v11 = vpop.xlane.xlu1 %592  ;;  %v590_v12 = vpop.xlane.xlu0 %589  ;;  %v7056_v17 = vsel %vm2954_vm15, %v2953_v5, %v2948_v10  ;;  %v828_v5 = vsel %vm539_vm0, %v123_v0, 0.0  ;;  %v125_v10 = vld [vmem:[%s10945_s0 + $0x310] sm:$0xff] }
  0xb1   :  { %v2963_v19 = vrot.slane %v593_v11, %v6912_v32  ;;  %v2959_v20 = vrot.slane %v590_v12, %v6906_v30 }
  0xb3   :  { %v2964_v24 = vsel %vm2856_vm1, %v2963_v19, %v2959_v20  ;;  %808 = vadd.xlane.f32.xlu1 %v807_v14  ;;  %805 = vadd.xlane.f32.xlu0 %v804_v16  ;;  %v837_v19 = vsel %vm539_vm0, %v126_v9, 0.0  ;;  %v834_v20 = vsel %vm539_vm0, %v125_v10, 0.0 }
  0xb4   :  { %v599_v25 = vpop.xlane.xlu1 %598  ;;  %v596_v26 = vpop.xlane.xlu0 %595 }
  0xb5   :  { %v2973_v33 = vrot.slane %v599_v25, %v6909_v31  ;;  %v2968_v34 = vrot.slane %v596_v26, %v6919_v35  ;;  %v127_v25 = vld [vmem:[%s10945_s0 + $0x320] sm:$0xff] }
  0xb6   :  { %v840_v36 = vsel %vm539_vm0, %v127_v25, 0.0 }
  0xb7   :  { %v2969_v38 = vsel %vm2863_vm2, %v2968_v34, %v2964_v24  ;;  %814 = vadd.xlane.f32.xlu1 %v813_v27  ;;  %811 = vadd.xlane.f32.xlu0 %v810_v28  ;;  %v128_v24 = vld [vmem:[%s10945_s0 + $0x328] sm:$0xff] }
  0xb8   :  { %v605_v39 = vpop.xlane.xlu1 %604  ;;  %v2974_v41 = vsel %vm2870_vm3, %v2973_v33, %v2969_v38  ;;  %v602_v43 = vpop.xlane.xlu0 %601  ;;  %v843_v34 = vsel %vm539_vm0, %v128_v24, 0.0 }
  0xb9   :  { %v2983_v47 = vrot.slane %v605_v39, %v6924_v40  ;;  %v2978_v49 = vrot.slane %v602_v43, %v6938_v48  ;;  %v130_v39 = vld [vmem:[%s10945_s0 + $0x338] sm:$0xff] }
  0xbb   :  { %v2979_v52 = vsel %vm2877_vm4, %v2978_v49, %v2974_v41  ;;  %820 = vadd.xlane.f32.xlu1 %v819_v44  ;;  %817 = vadd.xlane.f32.xlu0 %v816_v45  ;;  %v129_v41 = vld [vmem:[%s10945_s0 + $0x330] sm:$0xff] }
  0xbc   :  { %v611_v53 = vpop.xlane.xlu1 %610  ;;  %v2984_v54 = vsel %vm2884_vm5, %v2983_v47, %v2979_v52  ;;  %v608_v55 = vpop.xlane.xlu0 %607  ;;  %v849_v47 = vsel %vm539_vm0, %v130_v39, 0.0  ;;  %v846_v49 = vsel %vm539_vm0, %v129_v41, 0.0 }
  0xbd   :  { %v2993_v15 = vrot.slane %v611_v53, %v6946_v56  ;;  %v2988_v62 = vrot.slane %v608_v55, %v6949_v57  ;;  %v132_v53 = vld [vmem:[%s10945_s0 + $0x348] sm:$0xff] }
  0xbf   :  { %v2989_v1 = vsel %vm2891_vm6, %v2988_v62, %v2984_v54  ;;  %826 = vadd.xlane.f32.xlu1 %v825_v58  ;;  %823 = vadd.xlane.f32.xlu0 %v822_v60  ;;  %v131_v54 = vld [vmem:[%s10945_s0 + $0x340] sm:$0xff] }
  0xc0   :  { %v617_v2 = vpop.xlane.xlu1 %616  ;;  %v2994_v3 = vsel %vm2898_vm7, %v2993_v15, %v2989_v1  ;;  %v614_v18 = vpop.xlane.xlu0 %613  ;;  %v855_v15 = vsel %vm539_vm0, %v132_v53, 0.0  ;;  %v852_v62 = vsel %vm539_vm0, %v131_v54, 0.0 }
  0xc1   :  { %v3003_v6 = vrot.slane %v617_v2, %v6967_v7  ;;  %v2998_v8 = vrot.slane %v614_v18, %v6979_v13  ;;  %v134_v2 = vld [vmem:[%s10945_s0 + $0x358] sm:$0xff] }
  0xc3   :  { %v2999_v11 = vsel %vm10950_vm8, %v2998_v8, %v2994_v3  ;;  %832 = vadd.xlane.f32.xlu1 %v831_v4  ;;  %829 = vadd.xlane.f32.xlu0 %v828_v5  ;;  %v133_v3 = vld [vmem:[%s10945_s0 + $0x350] sm:$0xff] }
  0xc4   :  { %v623_v12 = vpop.xlane.xlu1 %622  ;;  %v3004_v14 = vsel %vm2912_vm9, %v3003_v6, %v2999_v11  ;;  %v620_v16 = vpop.xlane.xlu0 %619  ;;  %v861_v6 = vsel %vm539_vm0, %v134_v2, 0.0  ;;  %v858_v8 = vsel %vm539_vm0, %v133_v3, 0.0  ;;  %v136_v11 = vld [vmem:[%s10945_s0 + $0x368] sm:$0xff] }
  0xc5   :  { %v3013_v21 = vrot.slane %v623_v12, %v6987_v23  ;;  %v3008_v22 = vrot.slane %v620_v16, %v6999_v29  ;;  %v135_v12 = vld [vmem:[%s10945_s0 + $0x360] sm:$0xff] }
  0xc7   :  { %v3009_v26 = vsel %vm10951_vm10, %v3008_v22, %v3004_v14  ;;  %838 = vadd.xlane.f32.xlu1 %v837_v19  ;;  %835 = vadd.xlane.f32.xlu0 %v834_v20  ;;  %v864_v22 = vsel %vm539_vm0, %v135_v12, 0.0 }
  0xc8   :  { %v629_v27 = vpop.xlane.xlu1 %628  ;;  %v3014_v28 = vsel %vm2926_vm11, %v3013_v21, %v3009_v26  ;;  %v626_v33 = vpop.xlane.xlu0 %625  ;;  %v867_v21 = vsel %vm539_vm0, %v136_v11, 0.0  ;;  %v138_v26 = vld [vmem:[%s10945_s0 + $0x378] sm:$0xff] }
  0xc9   :  { %v3023_v37 = vrot.slane %v629_v27, %v7013_v46  ;;  %v3018_v38 = vrot.slane %v626_v33, %v7007_v42  ;;  %v137_v27 = vld [vmem:[%s10945_s0 + $0x370] sm:$0xff] }
  0xcb   :  { %v3019_v43 = vsel %vm10949_vm12, %v3018_v38, %v3014_v28  ;;  %844 = vadd.xlane.f32.xlu1 %v843_v34  ;;  %841 = vadd.xlane.f32.xlu0 %v840_v36  ;;  %v870_v38 = vsel %vm539_vm0, %v137_v27, 0.0 }
  0xcc   :  { %v635_v44 = vpop.xlane.xlu1 %634  ;;  %v632_v45 = vpop.xlane.xlu0 %631  ;;  %v3024_v50 = vsel %vm2940_vm13, %v3023_v37, %v3019_v43  ;;  %v873_v37 = vsel %vm539_vm0, %v138_v26, 0.0  ;;  %v140_v43 = vld [vmem:[%s10945_s0 + $0x388] sm:$0xff] }
  0xcd   :  { %v3033_v51 = vrot.slane %v635_v44, %v7032_v61  ;;  %v3028_v52 = vrot.slane %v632_v45, %v7027_v59  ;;  %v139_v44 = vld [vmem:[%s10945_s0 + $0x380] sm:$0xff] }
  0xcf   :  { %850 = vadd.xlane.f32.xlu1 %v849_v47  ;;  %847 = vadd.xlane.f32.xlu0 %v846_v49  ;;  %v3029_v55 = vsel %vm2947_vm14, %v3028_v52, %v3024_v50  ;;  %v876_v52 = vsel %vm539_vm0, %v139_v44, 0.0 }
  0xd0   :  { %v641_v58 = vpop.xlane.xlu1 %640  ;;  %v638_v60 = vpop.xlane.xlu0 %637  ;;  %v7153_v63 = vsel %vm2954_vm15, %v3033_v51, %v3029_v55  ;;  %v879_v51 = vsel %vm539_vm0, %v140_v43, 0.0  ;;  %v142_v55 = vld [vmem:[%s10945_s0 + $0x398] sm:$0xff] }
  0xd1   :  { %v3042_v0 = vrot.slane %v641_v58, %v6912_v32  ;;  %v3038_v1 = vrot.slane %v638_v60, %v6906_v30  ;;  %v141_v58 = vld [vmem:[%s10945_s0 + $0x390] sm:$0xff] }
  0xd2   :  { %v882_v2 = vsel %vm539_vm0, %v141_v58, 0.0 }
  0xd3   :  { %v3043_v18 = vsel %vm2856_vm1, %v3042_v0, %v3038_v1  ;;  %856 = vadd.xlane.f32.xlu1 %v855_v15  ;;  %853 = vadd.xlane.f32.xlu0 %v852_v62  ;;  %v885_v1 = vsel %vm539_vm0, %v142_v55, 0.0 }
  0xd4   :  { %v647_v4 = vpop.xlane.xlu1 %646  ;;  %v644_v5 = vpop.xlane.xlu0 %643 }
  0xd5   :  { %v3052_v9 = vrot.slane %v647_v4, %v6909_v31  ;;  %v3047_v10 = vrot.slane %v644_v5, %v6919_v35  ;;  %v144_v4 = vld [vmem:[%s10945_s0 + $0x3a8] sm:$0xff]  ;;  %v143_v5 = vld [vmem:[%s10945_s0 + $0x3a0] sm:$0xff] }
  0xd6   :  { %v891_v11 = vsel %vm539_vm0, %v144_v4, 0.0  ;;  %v888_v12 = vsel %vm539_vm0, %v143_v5, 0.0 }
  0xd7   :  { %v3048_v14 = vsel %vm2863_vm2, %v3047_v10, %v3043_v18  ;;  %862 = vadd.xlane.f32.xlu1 %v861_v6  ;;  %859 = vadd.xlane.f32.xlu0 %v858_v8 }
  0xd8   :  { %v653_v16 = vpop.xlane.xlu1 %652  ;;  %v3053_v19 = vsel %vm2870_vm3, %v3052_v9, %v3048_v14  ;;  %v650_v20 = vpop.xlane.xlu0 %649 }
  0xd9   :  { %v3062_v24 = vrot.slane %v653_v16, %v6924_v40  ;;  %v3057_v25 = vrot.slane %v650_v20, %v6938_v48  ;;  %v145_v20 = vld [vmem:[%s10945_s0 + $0x3b0] sm:$0xff] }
  0xda   :  { %v894_v26 = vsel %vm539_vm0, %v145_v20, 0.0 }
  0xdb   :  { %v3058_v28 = vsel %vm2877_vm4, %v3057_v25, %v3053_v19  ;;  %868 = vadd.xlane.f32.xlu1 %v867_v21  ;;  %865 = vadd.xlane.f32.xlu0 %v864_v22  ;;  %v146_v19 = vld [vmem:[%s10945_s0 + $0x3b8] sm:$0xff] }
  0xdc   :  { %v659_v33 = vpop.xlane.xlu1 %658  ;;  %v3063_v34 = vsel %vm2884_vm5, %v3062_v24, %v3058_v28  ;;  %v656_v36 = vpop.xlane.xlu0 %655  ;;  %v897_v25 = vsel %vm539_vm0, %v146_v19, 0.0 }
  0xdd   :  { %v3072_v39 = vrot.slane %v659_v33, %v6946_v56  ;;  %v3067_v41 = vrot.slane %v656_v36, %v6949_v57  ;;  %v147_v36 = vld [vmem:[%s10945_s0 + $0x3c0] sm:$0xff] }
  0xde   :  { %v900_v43 = vsel %vm539_vm0, %v147_v36, 0.0 }
  0xdf   :  { %v3068_v45 = vsel %vm2891_vm6, %v3067_v41, %v3063_v34  ;;  %874 = vadd.xlane.f32.xlu1 %v873_v37  ;;  %871 = vadd.xlane.f32.xlu0 %v870_v38  ;;  %v148_v34 = vld [vmem:[%s10945_s0 + $0x3c8] sm:$0xff] }
  0xe0   :  { %v665_v47 = vpop.xlane.xlu1 %664  ;;  %v3073_v49 = vsel %vm2898_vm7, %v3072_v39, %v3068_v45  ;;  %v662_v50 = vpop.xlane.xlu0 %661  ;;  %v903_v41 = vsel %vm539_vm0, %v148_v34, 0.0 }
  0xe1   :  { %v3082_v53 = vrot.slane %v665_v47, %v6967_v7  ;;  %v3077_v54 = vrot.slane %v662_v50, %v6979_v13  ;;  %v149_v50 = vld [vmem:[%s10945_s0 + $0x3d0] sm:$0xff] }
  0xe2   :  { %v906_v55 = vsel %vm539_vm0, %v149_v50, 0.0 }
  0xe3   :  { %v3078_v60 = vsel %vm10950_vm8, %v3077_v54, %v3073_v49  ;;  %880 = vadd.xlane.f32.xlu1 %v879_v51  ;;  %877 = vadd.xlane.f32.xlu0 %v876_v52  ;;  %v150_v49 = vld [vmem:[%s10945_s0 + $0x3d8] sm:$0xff] }
  0xe4   :  { %v671_v15 = vpop.xlane.xlu1 %670  ;;  %v3083_v62 = vsel %vm2912_vm9, %v3082_v53, %v3078_v60  ;;  %v668_v0 = vpop.xlane.xlu0 %667  ;;  %v909_v54 = vsel %vm539_vm0, %v150_v49, 0.0 }
  0xe5   :  { %v3092_v3 = vrot.slane %v671_v15, %v6987_v23  ;;  %v3087_v18 = vrot.slane %v668_v0, %v6999_v29  ;;  %v152_v15 = vld [vmem:[%s10945_s0 + $0x3e8] sm:$0xff] }
  0xe7   :  { %v3088_v6 = vsel %vm10951_vm10, %v3087_v18, %v3083_v62  ;;  %886 = vadd.xlane.f32.xlu1 %v885_v1  ;;  %883 = vadd.xlane.f32.xlu0 %v882_v2  ;;  %v151_v62 = vld [vmem:[%s10945_s0 + $0x3e0] sm:$0xff]  ;;  %v915_v18 = vsel %vm539_vm0, %v152_v15, 0.0 }
  0xe8   :  { %v677_v8 = vpop.xlane.xlu1 %676  ;;  %v3093_v9 = vsel %vm2926_vm11, %v3092_v3, %v3088_v6  ;;  %v674_v10 = vpop.xlane.xlu0 %673  ;;  %v912_v4 = vsel %vm539_vm0, %v151_v62, 0.0 }
  0xe9   :  { %v3102_v14 = vrot.slane %v677_v8, %v7013_v46  ;;  %v3097_v16 = vrot.slane %v674_v10, %v7007_v42  ;;  %v154_v8 = vld [vmem:[%s10945_s0 + $0x3f8] sm:$0xff] }
  0xeb   :  { %v3098_v21 = vsel %vm10949_vm12, %v3097_v16, %v3093_v9  ;;  %892 = vadd.xlane.f32.xlu1 %v891_v11  ;;  %889 = vadd.xlane.f32.xlu0 %v888_v12  ;;  %v153_v9 = vld [vmem:[%s10945_s0 + $0x3f0] sm:$0xff]  ;;  %v921_v16 = vsel %vm539_vm0, %v154_v8, 0.0 }
  0xec   :  { %v683_v22 = vpop.xlane.xlu1 %682  ;;  %v680_v24 = vpop.xlane.xlu0 %679  ;;  %v3103_v27 = vsel %vm2940_vm13, %v3102_v14, %v3098_v21  ;;  %v918_v19 = vsel %vm539_vm0, %v153_v9, 0.0 }
  0xed   :  { %v3112_v28 = vrot.slane %v683_v22, %v7032_v61  ;;  %v3107_v33 = vrot.slane %v680_v24, %v7027_v59  ;;  %v156_v22 = vld [vmem:[%s10945_s0 + $0x408] sm:$0xff]  ;;  %v155_v24 = vld [vmem:[%s10945_s0 + $0x400] sm:$0xff] }
  0xee   :  { %v924_v34 = vsel %vm539_vm0, %v155_v24, 0.0 }
  0xef   :  { %898 = vadd.xlane.f32.xlu1 %v897_v25  ;;  %895 = vadd.xlane.f32.xlu0 %v894_v26  ;;  %v3108_v37 = vsel %vm2947_vm14, %v3107_v33, %v3103_v27  ;;  %v927_v33 = vsel %vm539_vm0, %v156_v22, 0.0 }
  0xf0   :  { %v689_v38 = vpop.xlane.xlu1 %688  ;;  %v686_v39 = vpop.xlane.xlu0 %685  ;;  %v7250_v44 = vsel %vm2954_vm15, %v3112_v28, %v3108_v37 }
  0xf1   :  { %v3121_v45 = vrot.slane %v689_v38, %v6912_v32  ;;  %v3117_v47 = vrot.slane %v686_v39, %v6906_v30  ;;  %v158_v38 = vld [vmem:[%s10945_s0 + $0x418] sm:$0xff]  ;;  %v157_v39 = vld [vmem:[%s10945_s0 + $0x410] sm:$0xff] }
  0xf2   :  { %v933_v49 = vsel %vm539_vm0, %v158_v38, 0.0  ;;  %v930_v50 = vsel %vm539_vm0, %v157_v39, 0.0 }
  0xf3   :  { %v3122_v51 = vsel %vm2856_vm1, %v3121_v45, %v3117_v47  ;;  %904 = vadd.xlane.f32.xlu1 %v903_v41  ;;  %901 = vadd.xlane.f32.xlu0 %v900_v43 }
  0xf4   :  { %v695_v52 = vpop.xlane.xlu1 %694  ;;  %v692_v53 = vpop.xlane.xlu0 %691 }
  0xf5   :  { %v3131_v58 = vrot.slane %v695_v52, %v6909_v31  ;;  %v3126_v60 = vrot.slane %v692_v53, %v6919_v35  ;;  %v160_v53 = vld [vmem:[%s10945_s0 + $0x428] sm:$0xff] }
  0xf6   :  { %v939_v62 = vsel %vm539_vm0, %v160_v53, 0.0 }
  0xf7   :  { %v3127_v0 = vsel %vm2863_vm2, %v3126_v60, %v3122_v51  ;;  %910 = vadd.xlane.f32.xlu1 %v909_v54  ;;  %907 = vadd.xlane.f32.xlu0 %v906_v55  ;;  %v159_v54 = vld [vmem:[%s10945_s0 + $0x420] sm:$0xff] }
  0xf8   :  { %v701_v1 = vpop.xlane.xlu1 %700  ;;  %v3132_v2 = vsel %vm2870_vm3, %v3131_v58, %v3127_v0  ;;  %v698_v3 = vpop.xlane.xlu0 %697  ;;  %v936_v0 = vsel %vm539_vm0, %v159_v54, 0.0 }
  0xf9   :  { %v3141_v5 = vrot.slane %v701_v1, %v6924_v40  ;;  %v3136_v6 = vrot.slane %v698_v3, %v6938_v48  ;;  %v162_v3 = vld [vmem:[%s10945_s0 + $0x438] sm:$0xff] }
  0xfa   :  { %v945_v8 = vsel %vm539_vm0, %v162_v3, 0.0 }
  0xfb   :  { %v3137_v10 = vsel %vm2877_vm4, %v3136_v6, %v3132_v2  ;;  %916 = vadd.xlane.f32.xlu1 %v915_v18  ;;  %913 = vadd.xlane.f32.xlu0 %v912_v4  ;;  %v161_v18 = vld [vmem:[%s10945_s0 + $0x430] sm:$0xff] }
  0xfc   :  { %v707_v11 = vpop.xlane.xlu1 %706  ;;  %v3142_v12 = vsel %vm2884_vm5, %v3141_v5, %v3137_v10  ;;  %v704_v14 = vpop.xlane.xlu0 %703  ;;  %v942_v9 = vsel %vm539_vm0, %v161_v18, 0.0 }
  0xfd   :  { %v3151_v20 = vrot.slane %v707_v11, %v6946_v56  ;;  %v3146_v21 = vrot.slane %v704_v14, %v6949_v57  ;;  %v164_v14 = vld [vmem:[%s10945_s0 + $0x448] sm:$0xff] }
  0xfe   :  { %v951_v22 = vsel %vm539_vm0, %v164_v14, 0.0 }
  0xff   :  { %v3147_v25 = vsel %vm2891_vm6, %v3146_v21, %v3142_v12  ;;  %922 = vadd.xlane.f32.xlu1 %v921_v16  ;;  %919 = vadd.xlane.f32.xlu0 %v918_v19  ;;  %v163_v16 = vld [vmem:[%s10945_s0 + $0x440] sm:$0xff] }
 0x100   :  { %v713_v26 = vpop.xlane.xlu1 %712  ;;  %v3152_v27 = vsel %vm2898_vm7, %v3151_v20, %v3147_v25  ;;  %v710_v28 = vpop.xlane.xlu0 %709  ;;  %v948_v24 = vsel %vm539_vm0, %v163_v16, 0.0 }
 0x101   :  { %v3161_v36 = vrot.slane %v713_v26, %v6967_v7  ;;  %v3156_v37 = vrot.slane %v710_v28, %v6979_v13  ;;  %v166_v28 = vld [vmem:[%s10945_s0 + $0x458] sm:$0xff] }
 0x102   :  { %v957_v38 = vsel %vm539_vm0, %v166_v28, 0.0 }
 0x103   :  { %v3157_v41 = vsel %vm10950_vm8, %v3156_v37, %v3152_v27  ;;  %928 = vadd.xlane.f32.xlu1 %v927_v33  ;;  %925 = vadd.xlane.f32.xlu0 %v924_v34  ;;  %v165_v33 = vld [vmem:[%s10945_s0 + $0x450] sm:$0xff] }
 0x104   :  { %v719_v43 = vpop.xlane.xlu1 %718  ;;  %v3162_v45 = vsel %vm2912_vm9, %v3161_v36, %v3157_v41  ;;  %v716_v47 = vpop.xlane.xlu0 %715  ;;  %v954_v39 = vsel %vm539_vm0, %v165_v33, 0.0 }
 0x105   :  { %v3171_v51 = vrot.slane %v719_v43, %v6987_v23  ;;  %v3166_v52 = vrot.slane %v716_v47, %v6999_v29  ;;  %v167_v47 = vld [vmem:[%s10945_s0 + $0x460] sm:$0xff] }
 0x106   :  { %v960_v54 = vsel %vm539_vm0, %v167_v47, 0.0 }
 0x107   :  { %v3167_v55 = vsel %vm10951_vm10, %v3166_v52, %v3162_v45  ;;  %934 = vadd.xlane.f32.xlu1 %v933_v49  ;;  %931 = vadd.xlane.f32.xlu0 %v930_v50  ;;  %v168_v45 = vld [vmem:[%s10945_s0 + $0x468] sm:$0xff] }
 0x108   :  { %v725_v58 = vpop.xlane.xlu1 %724  ;;  %v3172_v60 = vsel %vm2926_vm11, %v3171_v51, %v3167_v55  ;;  %v722_v15 = vpop.xlane.xlu0 %721  ;;  %v963_v53 = vsel %vm539_vm0, %v168_v45, 0.0 }
 0x109   :  { %v3181_v1 = vrot.slane %v725_v58, %v7013_v46  ;;  %v3176_v2 = vrot.slane %v722_v15, %v7007_v42  ;;  %v169_v15 = vld [vmem:[%s10945_s0 + $0x470] sm:$0xff] }
 0x10a   :  { %v966_v18 = vsel %vm539_vm0, %v169_v15, 0.0 }
 0x10b   :  { %v3177_v4 = vsel %vm10949_vm12, %v3176_v2, %v3172_v60  ;;  %940 = vadd.xlane.f32.xlu1 %v939_v62  ;;  %937 = vadd.xlane.f32.xlu0 %v936_v0  ;;  %v170_v60 = vld [vmem:[%s10945_s0 + $0x478] sm:$0xff] }
 0x10c   :  { %v731_v5 = vpop.xlane.xlu1 %730  ;;  %v728_v6 = vpop.xlane.xlu0 %727  ;;  %v3182_v10 = vsel %vm2940_vm13, %v3181_v1, %v3177_v4  ;;  %v969_v3 = vsel %vm539_vm0, %v170_v60, 0.0 }
 0x10d   :  { %v3191_v11 = vrot.slane %v731_v5, %v7032_v61  ;;  %v3186_v12 = vrot.slane %v728_v6, %v7027_v59  ;;  %v172_v6 = vld [vmem:[%s10945_s0 + $0x488] sm:$0xff] }
 0x10e   :  { %v975_v14 = vsel %vm539_vm0, %v172_v6, 0.0 }
 0x10f   :  { %946 = vadd.xlane.f32.xlu1 %v945_v8  ;;  %943 = vadd.xlane.f32.xlu0 %v942_v9  ;;  %v3187_v19 = vsel %vm2947_vm14, %v3186_v12, %v3182_v10  ;;  %v171_v8 = vld [vmem:[%s10945_s0 + $0x480] sm:$0xff] }
 0x110   :  { %v737_v20 = vpop.xlane.xlu1 %736  ;;  %v734_v21 = vpop.xlane.xlu0 %733  ;;  %v7347_v25 = vsel %vm2954_vm15, %v3191_v11, %v3187_v19  ;;  %v972_v16 = vsel %vm539_vm0, %v171_v8, 0.0 }
 0x111   :  { %v3200_v26 = vrot.slane %v737_v20, %v6912_v32  ;;  %v3196_v27 = vrot.slane %v734_v21, %v6906_v30  ;;  %v174_v21 = vld [vmem:[%s10945_s0 + $0x498] sm:$0xff] }
 0x112   :  { %v981_v33 = vsel %vm539_vm0, %v174_v21, 0.0 }
 0x113   :  { %v3201_v34 = vsel %vm2856_vm1, %v3200_v26, %v3196_v27  ;;  %952 = vadd.xlane.f32.xlu1 %v951_v22  ;;  %949 = vadd.xlane.f32.xlu0 %v948_v24  ;;  %v173_v22 = vld [vmem:[%s10945_s0 + $0x490] sm:$0xff] }
 0x114   :  { %v743_v36 = vpop.xlane.xlu1 %742  ;;  %v740_v37 = vpop.xlane.xlu0 %739 }
 0x115   :  { %v3210_v41 = vrot.slane %v743_v36, %v6909_v31  ;;  %v3205_v43 = vrot.slane %v740_v37, %v6919_v35 }
 0x117   :  { %v3206_v49 = vsel %vm2863_vm2, %v3205_v43, %v3201_v34  ;;  %958 = vadd.xlane.f32.xlu1 %v957_v38  ;;  %955 = vadd.xlane.f32.xlu0 %v954_v39  ;;  %v978_v34 = vsel %vm539_vm0, %v173_v22, 0.0  ;;  %v176_v38 = vld [vmem:[%s10945_s0 + $0x4a8] sm:$0xff]  ;;  %v175_v39 = vld [vmem:[%s10945_s0 + $0x4a0] sm:$0xff] }
 0x118   :  { %v749_v50 = vpop.xlane.xlu1 %748  ;;  %v3211_v51 = vsel %vm2870_vm3, %v3210_v41, %v3206_v49  ;;  %v746_v52 = vpop.xlane.xlu0 %745  ;;  %v987_v49 = vsel %vm539_vm0, %v176_v38, 0.0 }
 0x119   :  { %v3220_v55 = vrot.slane %v749_v50, %v6924_v40  ;;  %v3215_v58 = vrot.slane %v746_v52, %v6938_v48  ;;  %v984_v50 = vsel %vm539_vm0, %v175_v39, 0.0 }
 0x11b   :  { %v3216_v62 = vsel %vm2877_vm4, %v3215_v58, %v3211_v51  ;;  %964 = vadd.xlane.f32.xlu1 %v963_v53  ;;  %961 = vadd.xlane.f32.xlu0 %v960_v54  ;;  %v178_v53 = vld [vmem:[%s10945_s0 + $0x4b8] sm:$0xff]  ;;  %v177_v54 = vld [vmem:[%s10945_s0 + $0x4b0] sm:$0xff] }
 0x11c   :  { %v755_v0 = vpop.xlane.xlu1 %754  ;;  %v3221_v1 = vsel %vm2884_vm5, %v3220_v55, %v3216_v62  ;;  %v752_v2 = vpop.xlane.xlu0 %751  ;;  %v993_v62 = vsel %vm539_vm0, %v178_v53, 0.0 }
 0x11d   :  { %v3230_v4 = vrot.slane %v755_v0, %v6946_v56  ;;  %v3225_v5 = vrot.slane %v752_v2, %v6949_v57  ;;  %v990_v0 = vsel %vm539_vm0, %v177_v54, 0.0 }
 0x11f   :  { %v3226_v9 = vsel %vm2891_vm6, %v3225_v5, %v3221_v1  ;;  %970 = vadd.xlane.f32.xlu1 %v969_v3  ;;  %967 = vadd.xlane.f32.xlu0 %v966_v18  ;;  %v180_v3 = vld [vmem:[%s10945_s0 + $0x4c8] sm:$0xff]  ;;  %v179_v18 = vld [vmem:[%s10945_s0 + $0x4c0] sm:$0xff] }
 0x120   :  { %v761_v10 = vpop.xlane.xlu1 %760  ;;  %v3231_v11 = vsel %vm2898_vm7, %v3230_v4, %v3226_v9  ;;  %v758_v12 = vpop.xlane.xlu0 %757  ;;  %v999_v8 = vsel %vm539_vm0, %v180_v3, 0.0  ;;  %v996_v9 = vsel %vm539_vm0, %v179_v18, 0.0 }
 0x121   :  { %v3240_v19 = vrot.slane %v761_v10, %v6967_v7  ;;  %v3235_v20 = vrot.slane %v758_v12, %v6979_v13 }
 0x123   :  { %v3236_v24 = vsel %vm10950_vm8, %v3235_v20, %v3231_v11  ;;  %976 = vadd.xlane.f32.xlu1 %v975_v14  ;;  %973 = vadd.xlane.f32.xlu0 %v972_v16  ;;  %v182_v14 = vld [vmem:[%s10945_s0 + $0x4d8] sm:$0xff]  ;;  %v181_v16 = vld [vmem:[%s10945_s0 + $0x4d0] sm:$0xff] }
 0x124   :  { %v767_v26 = vpop.xlane.xlu1 %766  ;;  %v3241_v27 = vsel %vm2912_vm9, %v3240_v19, %v3236_v24  ;;  %v764_v28 = vpop.xlane.xlu0 %763  ;;  %v1005_v22 = vsel %vm539_vm0, %v182_v14, 0.0  ;;  %v1002_v24 = vsel %vm539_vm0, %v181_v16, 0.0 }
 0x125   :  { %v3250_v36 = vrot.slane %v767_v26, %v6987_v23  ;;  %v3245_v37 = vrot.slane %v764_v28, %v6999_v29  ;;  %v184_v28 = vld [vmem:[%s10945_s0 + $0x4e8] sm:$0xff] }
 0x126   :  { %v1011_v39 = vsel %vm539_vm0, %v184_v28, 0.0 }
 0x127   :  { %v3246_v41 = vsel %vm10951_vm10, %v3245_v37, %v3241_v27  ;;  %982 = vadd.xlane.f32.xlu1 %v981_v33  ;;  %979 = vadd.xlane.f32.xlu0 %v978_v34  ;;  %v183_v33 = vld [vmem:[%s10945_s0 + $0x4e0] sm:$0xff] }
 0x128   :  { %v773_v43 = vpop.xlane.xlu1 %772  ;;  %v3251_v45 = vsel %vm2926_vm11, %v3250_v36, %v3246_v41  ;;  %v770_v47 = vpop.xlane.xlu0 %769  ;;  %v1008_v41 = vsel %vm539_vm0, %v183_v33, 0.0 }
 0x129   :  { %v3260_v51 = vrot.slane %v773_v43, %v7013_v46  ;;  %v3255_v52 = vrot.slane %v770_v47, %v7007_v42  ;;  %v186_v47 = vld [vmem:[%s10945_s0 + $0x4f8] sm:$0xff] }
 0x12a   :  { %v1017_v54 = vsel %vm539_vm0, %v186_v47, 0.0 }
 0x12b   :  { %v3256_v55 = vsel %vm10949_vm12, %v3255_v52, %v3251_v45  ;;  %988 = vadd.xlane.f32.xlu1 %v987_v49  ;;  %985 = vadd.xlane.f32.xlu0 %v984_v50  ;;  %v185_v49 = vld [vmem:[%s10945_s0 + $0x4f0] sm:$0xff] }
 0x12c   :  { %v779_v58 = vpop.xlane.xlu1 %778  ;;  %v3261_v60 = vsel %vm2940_vm13, %v3260_v51, %v3256_v55  ;;  %v776_v15 = vpop.xlane.xlu0 %775  ;;  %v1014_v55 = vsel %vm539_vm0, %v185_v49, 0.0 }
 0x12d   :  { %v3270_v1 = vrot.slane %v779_v58, %v7032_v61  ;;  %v3265_v2 = vrot.slane %v776_v15, %v7027_v59  ;;  %v188_v15 = vld [vmem:[%s10945_s0 + $0x508] sm:$0xff] }
 0x12e   :  { %v1023_v18 = vsel %vm539_vm0, %v188_v15, 0.0 }
 0x12f   :  { %v3266_v4 = vsel %vm2947_vm14, %v3265_v2, %v3261_v60  ;;  %994 = vadd.xlane.f32.xlu1 %v993_v62  ;;  %991 = vadd.xlane.f32.xlu0 %v990_v0  ;;  %v187_v62 = vld [vmem:[%s10945_s0 + $0x500] sm:$0xff] }
 0x130   :  { %v785_v5 = vpop.xlane.xlu1 %784  ;;  %v782_v6 = vpop.xlane.xlu0 %781  ;;  %v7444_v10 = vsel %vm2954_vm15, %v3270_v1, %v3266_v4  ;;  %v1020_v4 = vsel %vm539_vm0, %v187_v62, 0.0 }
 0x131   :  { %v3279_v11 = vrot.slane %v785_v5, %v6912_v32  ;;  %v3275_v12 = vrot.slane %v782_v6, %v6906_v30 }
 0x133   :  { %v3280_v19 = vsel %vm2856_vm1, %v3279_v11, %v3275_v12  ;;  %1000 = vadd.xlane.f32.xlu1 %v999_v8  ;;  %997 = vadd.xlane.f32.xlu0 %v996_v9  ;;  %v190_v8 = vld [vmem:[%s10945_s0 + $0x518] sm:$0xff]  ;;  %v189_v9 = vld [vmem:[%s10945_s0 + $0x510] sm:$0xff] }
 0x134   :  { %v791_v20 = vpop.xlane.xlu1 %790  ;;  %v788_v21 = vpop.xlane.xlu0 %787 }
 0x135   :  { %v3289_v26 = vrot.slane %v791_v20, %v6909_v31  ;;  %v3284_v27 = vrot.slane %v788_v21, %v6919_v35  ;;  %v1026_v20 = vsel %vm539_vm0, %v189_v9, 0.0 }
 0x137   :  { %v3285_v34 = vsel %vm2863_vm2, %v3284_v27, %v3280_v19  ;;  %1006 = vadd.xlane.f32.xlu1 %v1005_v22  ;;  %1003 = vadd.xlane.f32.xlu0 %v1002_v24  ;;  %v1029_v19 = vsel %vm539_vm0, %v190_v8, 0.0  ;;  %v192_v24 = vld [vmem:[%s10945_s0 + $0x528] sm:$0xff] }
 0x138   :  { %v797_v36 = vpop.xlane.xlu1 %796  ;;  %v3290_v37 = vsel %vm2870_vm3, %v3289_v26, %v3285_v34  ;;  %v794_v38 = vpop.xlane.xlu0 %793  ;;  %v191_v26 = vld [vmem:[%s10945_s0 + $0x520] sm:$0xff] }
 0x139   :  { %v3299_v43 = vrot.slane %v797_v36, %v6924_v40  ;;  %v3294_v45 = vrot.slane %v794_v38, %v6938_v48  ;;  %v1035_v36 = vsel %vm539_vm0, %v192_v24, 0.0 }
 0x13b   :  { %v3295_v50 = vsel %vm2877_vm4, %v3294_v45, %v3290_v37  ;;  %1012 = vadd.xlane.f32.xlu1 %v1011_v39  ;;  %1009 = vadd.xlane.f32.xlu0 %v1008_v41  ;;  %v1032_v37 = vsel %vm539_vm0, %v191_v26, 0.0  ;;  %v194_v41 = vld [vmem:[%s10945_s0 + $0x538] sm:$0xff] }
 0x13c   :  { %v803_v51 = vpop.xlane.xlu1 %802  ;;  %v3300_v52 = vsel %vm2884_vm5, %v3299_v43, %v3295_v50  ;;  %v800_v53 = vpop.xlane.xlu0 %799  ;;  %v193_v43 = vld [vmem:[%s10945_s0 + $0x530] sm:$0xff]  ;;  %v1041_v50 = vsel %vm539_vm0, %v194_v41, 0.0 }
 0x13d   :  { %v3309_v58 = vrot.slane %v803_v51, %v6946_v56  ;;  %v3304_v60 = vrot.slane %v800_v53, %v6949_v57  ;;  %v1038_v51 = vsel %vm539_vm0, %v193_v43, 0.0 }
 0x13f   :  { %v3305_v0 = vsel %vm2891_vm6, %v3304_v60, %v3300_v52  ;;  %1018 = vadd.xlane.f32.xlu1 %v1017_v54  ;;  %1015 = vadd.xlane.f32.xlu0 %v1014_v55  ;;  %v196_v55 = vld [vmem:[%s10945_s0 + $0x548] sm:$0xff] }
 0x140   :  { %v809_v1 = vpop.xlane.xlu1 %808  ;;  %v3310_v2 = vsel %vm2898_vm7, %v3309_v58, %v3305_v0  ;;  %v806_v3 = vpop.xlane.xlu0 %805  ;;  %v195_v58 = vld [vmem:[%s10945_s0 + $0x540] sm:$0xff]  ;;  %v1047_v0 = vsel %vm539_vm0, %v196_v55, 0.0 }
 0x141   :  { %v3319_v5 = vrot.slane %v809_v1, %v6967_v7  ;;  %v3314_v6 = vrot.slane %v806_v3, %v6979_v13  ;;  %v1044_v1 = vsel %vm539_vm0, %v195_v58, 0.0 }
 0x143   :  { %v3315_v11 = vsel %vm10950_vm8, %v3314_v6, %v3310_v2  ;;  %1024 = vadd.xlane.f32.xlu1 %v1023_v18  ;;  %1021 = vadd.xlane.f32.xlu0 %v1020_v4  ;;  %v198_v4 = vld [vmem:[%s10945_s0 + $0x558] sm:$0xff] }
 0x144   :  { %v815_v12 = vpop.xlane.xlu1 %814  ;;  %v3320_v14 = vsel %vm2912_vm9, %v3319_v5, %v3315_v11  ;;  %v812_v16 = vpop.xlane.xlu0 %811  ;;  %v197_v5 = vld [vmem:[%s10945_s0 + $0x550] sm:$0xff]  ;;  %v1053_v11 = vsel %vm539_vm0, %v198_v4, 0.0 }
 0x145   :  { %v3329_v21 = vrot.slane %v815_v12, %v6987_v23  ;;  %v3324_v22 = vrot.slane %v812_v16, %v6999_v29  ;;  %v1050_v12 = vsel %vm539_vm0, %v197_v5, 0.0 }
 0x147   :  { %v3325_v27 = vsel %vm10951_vm10, %v3324_v22, %v3320_v14  ;;  %1030 = vadd.xlane.f32.xlu1 %v1029_v19  ;;  %1027 = vadd.xlane.f32.xlu0 %v1026_v20  ;;  %v200_v19 = vld [vmem:[%s10945_s0 + $0x568] sm:$0xff]  ;;  %v199_v20 = vld [vmem:[%s10945_s0 + $0x560] sm:$0xff] }
 0x148   :  { %v821_v28 = vpop.xlane.xlu1 %820  ;;  %v3330_v33 = vsel %vm2926_vm11, %v3329_v21, %v3325_v27  ;;  %v818_v34 = vpop.xlane.xlu0 %817  ;;  %v1059_v27 = vsel %vm539_vm0, %v200_v19, 0.0 }
 0x149   :  { %v3339_v38 = vrot.slane %v821_v28, %v7013_v46  ;;  %v3334_v39 = vrot.slane %v818_v34, %v7007_v42  ;;  %v1056_v28 = vsel %vm539_vm0, %v199_v20, 0.0 }
 0x14b   :  { %v3335_v45 = vsel %vm10949_vm12, %v3334_v39, %v3330_v33  ;;  %1036 = vadd.xlane.f32.xlu1 %v1035_v36  ;;  %1033 = vadd.xlane.f32.xlu0 %v1032_v37  ;;  %v202_v36 = vld [vmem:[%s10945_s0 + $0x578] sm:$0xff]  ;;  %v201_v37 = vld [vmem:[%s10945_s0 + $0x570] sm:$0xff] }
 0x14c   :  { %v827_v47 = vpop.xlane.xlu1 %826  ;;  %v824_v49 = vpop.xlane.xlu0 %823  ;;  %v3340_v52 = vsel %vm2940_vm13, %v3339_v38, %v3335_v45  ;;  %v1065_v45 = vsel %vm539_vm0, %v202_v36, 0.0 }
 0x14d   :  { %v3349_v53 = vrot.slane %v827_v47, %v7032_v61  ;;  %v3344_v54 = vrot.slane %v824_v49, %v7027_v59  ;;  %v1062_v47 = vsel %vm539_vm0, %v201_v37, 0.0 }
 0x14f   :  { %1042 = vadd.xlane.f32.xlu1 %v1041_v50  ;;  %1039 = vadd.xlane.f32.xlu0 %v1038_v51  ;;  %v3345_v60 = vsel %vm2947_vm14, %v3344_v54, %v3340_v52  ;;  %v204_v51 = vld [vmem:[%s10945_s0 + $0x588] sm:$0xff]  ;;  %v203_v52 = vld [vmem:[%s10945_s0 + $0x580] sm:$0xff] }
 0x150   :  { %v833_v15 = vpop.xlane.xlu1 %832  ;;  %v830_v62 = vpop.xlane.xlu0 %829  ;;  %v7541_v2 = vsel %vm2954_vm15, %v3349_v53, %v3345_v60  ;;  %v1071_v60 = vsel %vm539_vm0, %v204_v51, 0.0 }
 0x151   :  { %v3358_v3 = vrot.slane %v833_v15, %v6912_v32  ;;  %v3354_v18 = vrot.slane %v830_v62, %v6906_v30  ;;  %v1068_v15 = vsel %vm539_vm0, %v203_v52, 0.0 }
 0x153   :  { %v3359_v6 = vsel %vm2856_vm1, %v3358_v3, %v3354_v18  ;;  %1048 = vadd.xlane.f32.xlu1 %v1047_v0  ;;  %1045 = vadd.xlane.f32.xlu0 %v1044_v1  ;;  %v206_v1 = vld [vmem:[%s10945_s0 + $0x598] sm:$0xff]  ;;  %v205_v3 = vld [vmem:[%s10945_s0 + $0x590] sm:$0xff] }
 0x154   :  { %v839_v8 = vpop.xlane.xlu1 %838  ;;  %v836_v9 = vpop.xlane.xlu0 %835 }
 0x155   :  { %v3368_v14 = vrot.slane %v839_v8, %v6909_v31  ;;  %v3363_v16 = vrot.slane %v836_v9, %v6919_v35  ;;  %v1077_v8 = vsel %vm539_vm0, %v206_v1, 0.0  ;;  %v1074_v9 = vsel %vm539_vm0, %v205_v3, 0.0 }
 0x157   :  { %v3364_v21 = vsel %vm2863_vm2, %v3363_v16, %v3359_v6  ;;  %1054 = vadd.xlane.f32.xlu1 %v1053_v11  ;;  %1051 = vadd.xlane.f32.xlu0 %v1050_v12  ;;  %v207_v16 = vld [vmem:[%s10945_s0 + $0x5a0] sm:$0xff] }
 0x158   :  { %v845_v22 = vpop.xlane.xlu1 %844  ;;  %v3369_v24 = vsel %vm2870_vm3, %v3368_v14, %v3364_v21  ;;  %v842_v26 = vpop.xlane.xlu0 %841  ;;  %v208_v14 = vld [vmem:[%s10945_s0 + $0x5a8] sm:$0xff] }
 0x159   :  { %v3378_v33 = vrot.slane %v845_v22, %v6924_v40  ;;  %v3373_v34 = vrot.slane %v842_v26, %v6938_v48  ;;  %v1080_v26 = vsel %vm539_vm0, %v207_v16, 0.0 }
 0x15b   :  { %v3374_v38 = vsel %vm2877_vm4, %v3373_v34, %v3369_v24  ;;  %1060 = vadd.xlane.f32.xlu1 %v1059_v27  ;;  %1057 = vadd.xlane.f32.xlu0 %v1056_v28  ;;  %v1083_v24 = vsel %vm539_vm0, %v208_v14, 0.0  ;;  %v209_v34 = vld [vmem:[%s10945_s0 + $0x5b0] sm:$0xff] }
 0x15c   :  { %v851_v39 = vpop.xlane.xlu1 %850  ;;  %v3379_v41 = vsel %vm2884_vm5, %v3378_v33, %v3374_v38  ;;  %v848_v43 = vpop.xlane.xlu0 %847  ;;  %v210_v33 = vld [vmem:[%s10945_s0 + $0x5b8] sm:$0xff] }
 0x15d   :  { %v3388_v49 = vrot.slane %v851_v39, %v6946_v56  ;;  %v3383_v50 = vrot.slane %v848_v43, %v6949_v57  ;;  %v1086_v43 = vsel %vm539_vm0, %v209_v34, 0.0 }
 0x15f   :  { %v3384_v53 = vsel %vm2891_vm6, %v3383_v50, %v3379_v41  ;;  %1066 = vadd.xlane.f32.xlu1 %v1065_v45  ;;  %1063 = vadd.xlane.f32.xlu0 %v1062_v47  ;;  %v1089_v41 = vsel %vm539_vm0, %v210_v33, 0.0  ;;  %v211_v50 = vld [vmem:[%s10945_s0 + $0x5c0] sm:$0xff] }
 0x160   :  { %v857_v54 = vpop.xlane.xlu1 %856  ;;  %v3389_v55 = vsel %vm2898_vm7, %v3388_v49, %v3384_v53  ;;  %v854_v58 = vpop.xlane.xlu0 %853  ;;  %v212_v49 = vld [vmem:[%s10945_s0 + $0x5c8] sm:$0xff] }
 0x161   :  { %v3398_v62 = vrot.slane %v857_v54, %v6967_v7  ;;  %v3393_v0 = vrot.slane %v854_v58, %v6979_v13  ;;  %v1095_v54 = vsel %vm539_vm0, %v212_v49, 0.0 }
 0x163   :  { %v3394_v18 = vsel %vm10950_vm8, %v3393_v0, %v3389_v55  ;;  %1072 = vadd.xlane.f32.xlu1 %v1071_v60  ;;  %1069 = vadd.xlane.f32.xlu0 %v1068_v15  ;;  %v1092_v55 = vsel %vm539_vm0, %v211_v50, 0.0  ;;  %v213_v0 = vld [vmem:[%s10945_s0 + $0x5d0] sm:$0xff] }
 0x164   :  { %v863_v4 = vpop.xlane.xlu1 %862  ;;  %v3399_v5 = vsel %vm2912_vm9, %v3398_v62, %v3394_v18  ;;  %v860_v6 = vpop.xlane.xlu0 %859  ;;  %v214_v62 = vld [vmem:[%s10945_s0 + $0x5d8] sm:$0xff] }
 0x165   :  { %v3408_v11 = vrot.slane %v863_v4, %v6987_v23  ;;  %v3403_v12 = vrot.slane %v860_v6, %v6999_v29  ;;  %v1101_v4 = vsel %vm539_vm0, %v214_v62, 0.0 }
 0x167   :  { %v3404_v19 = vsel %vm10951_vm10, %v3403_v12, %v3399_v5  ;;  %1078 = vadd.xlane.f32.xlu1 %v1077_v8  ;;  %1075 = vadd.xlane.f32.xlu0 %v1074_v9  ;;  %v1098_v5 = vsel %vm539_vm0, %v213_v0, 0.0  ;;  %v216_v9 = vld [vmem:[%s10945_s0 + $0x5e8] sm:$0xff] }
 0x168   :  { %v869_v20 = vpop.xlane.xlu1 %868  ;;  %v3409_v21 = vsel %vm2926_vm11, %v3408_v11, %v3404_v19  ;;  %v866_v22 = vpop.xlane.xlu0 %865  ;;  %v215_v11 = vld [vmem:[%s10945_s0 + $0x5e0] sm:$0xff] }
 0x169   :  { %v3418_v27 = vrot.slane %v869_v20, %v7013_v46  ;;  %v3413_v28 = vrot.slane %v866_v22, %v7007_v42  ;;  %v1107_v20 = vsel %vm539_vm0, %v216_v9, 0.0  ;;  %v223_v9 = vld [vmem:[%s10945_s0 + $0x620] sm:$0xff] }
 0x16b   :  { %v3414_v36 = vsel %vm10949_vm12, %v3413_v28, %v3409_v21  ;;  %1084 = vadd.xlane.f32.xlu1 %v1083_v24  ;;  %1081 = vadd.xlane.f32.xlu0 %v1080_v26  ;;  %v1104_v21 = vsel %vm539_vm0, %v215_v11, 0.0  ;;  %v218_v26 = vld [vmem:[%s10945_s0 + $0x5f8] sm:$0xff] }
 0x16c   :  { %v875_v37 = vpop.xlane.xlu1 %874  ;;  %v3419_v38 = vsel %vm2940_vm13, %v3418_v27, %v3414_v36  ;;  %v872_v39 = vpop.xlane.xlu0 %871  ;;  %v217_v27 = vld [vmem:[%s10945_s0 + $0x5f0] sm:$0xff] }
 0x16d   :  { %v3428_v45 = vrot.slane %v875_v37, %v7032_v61  ;;  %v3423_v47 = vrot.slane %v872_v39, %v7027_v59  ;;  %v1113_v37 = vsel %vm539_vm0, %v218_v26, 0.0  ;;  %v225_v26 = vld [vmem:[%s10945_s0 + $0x630] sm:$0xff] }
 0x16f   :  { %v3424_v51 = vsel %vm2947_vm14, %v3423_v47, %v3419_v38  ;;  %1090 = vadd.xlane.f32.xlu1 %v1089_v41  ;;  %1087 = vadd.xlane.f32.xlu0 %v1086_v43  ;;  %v1110_v38 = vsel %vm539_vm0, %v217_v27, 0.0  ;;  %v220_v43 = vld [vmem:[%s10945_s0 + $0x608] sm:$0xff] }
 0x170   :  { %v881_v52 = vpop.xlane.xlu1 %880  ;;  %v878_v53 = vpop.xlane.xlu0 %877  ;;  %v7638_v58 = vsel %vm2954_vm15, %v3428_v45, %v3424_v51  ;;  %v219_v45 = vld [vmem:[%s10945_s0 + $0x600] sm:$0xff] }
 0x171   :  { %v3437_v60 = vrot.slane %v881_v52, %v6912_v32  ;;  %v3433_v15 = vrot.slane %v878_v53, %v6906_v30  ;;  %v1119_v52 = vsel %vm539_vm0, %v220_v43, 0.0  ;;  %v1116_v53 = vsel %vm539_vm0, %v219_v45, 0.0  ;;  %v227_v43 = vld [vmem:[%s10945_s0 + $0x640] sm:$0xff] }
 0x173   :  { %v3438_v1 = vsel %vm2856_vm1, %v3437_v60, %v3433_v15  ;;  %1096 = vadd.xlane.f32.xlu1 %v1095_v54  ;;  %1093 = vadd.xlane.f32.xlu0 %v1092_v55  ;;  %v222_v60 = vld [vmem:[%s10945_s0 + $0x618] sm:$0xff]  ;;  %v221_v15 = vld [vmem:[%s10945_s0 + $0x610] sm:$0xff] }
 0x174   :  { %v887_v3 = vpop.xlane.xlu1 %886  ;;  %v884_v18 = vpop.xlane.xlu0 %883 }
 0x175   :  { %v3447_v6 = vrot.slane %v887_v3, %v6909_v31  ;;  %v3442_v8 = vrot.slane %v884_v18, %v6919_v35  ;;  %v1125_v18 = vsel %vm539_vm0, %v222_v60, 0.0  ;;  %v229_v60 = vld [vmem:[%s10945_s0 + $0x650] sm:$0xff] }
 0x177   :  { %v3443_v12 = vsel %vm2863_vm2, %v3442_v8, %v3438_v1  ;;  %1102 = vadd.xlane.f32.xlu1 %v1101_v4  ;;  %1099 = vadd.xlane.f32.xlu0 %v1098_v5  ;;  %v1122_v4 = vsel %vm539_vm0, %v221_v15, 0.0  ;;  %v224_v8 = vld [vmem:[%s10945_s0 + $0x628] sm:$0xff] }
 0x178   :  { %v893_v14 = vpop.xlane.xlu1 %892  ;;  %v3448_v16 = vsel %vm2870_vm3, %v3447_v6, %v3443_v12  ;;  %v890_v19 = vpop.xlane.xlu0 %889 }
 0x179   :  { %v3457_v22 = vrot.slane %v893_v14, %v6924_v40  ;;  %v3452_v24 = vrot.slane %v890_v19, %v6938_v48  ;;  %v1131_v19 = vsel %vm539_vm0, %v224_v8, 0.0 }
 0x17b   :  { %v3453_v28 = vsel %vm2877_vm4, %v3452_v24, %v3448_v16  ;;  %1108 = vadd.xlane.f32.xlu1 %v1107_v20  ;;  %1105 = vadd.xlane.f32.xlu0 %v1104_v21  ;;  %v1128_v20 = vsel %vm539_vm0, %v223_v9, 0.0  ;;  %v226_v24 = vld [vmem:[%s10945_s0 + $0x638] sm:$0xff] }
 0x17c   :  { %v899_v33 = vpop.xlane.xlu1 %898  ;;  %v3458_v34 = vsel %vm2884_vm5, %v3457_v22, %v3453_v28  ;;  %v896_v36 = vpop.xlane.xlu0 %895 }
 0x17d   :  { %v3467_v39 = vrot.slane %v899_v33, %v6946_v56  ;;  %v3462_v41 = vrot.slane %v896_v36, %v6949_v57  ;;  %v1134_v36 = vsel %vm539_vm0, %v225_v26, 0.0 }
 0x17f   :  { %v3463_v47 = vsel %vm2891_vm6, %v3462_v41, %v3458_v34  ;;  %1114 = vadd.xlane.f32.xlu1 %v1113_v37  ;;  %1111 = vadd.xlane.f32.xlu0 %v1110_v38  ;;  %v1137_v34 = vsel %vm539_vm0, %v226_v24, 0.0  ;;  %v228_v41 = vld [vmem:[%s10945_s0 + $0x648] sm:$0xff] }
 0x180   :  { %v905_v49 = vpop.xlane.xlu1 %904  ;;  %v3468_v50 = vsel %vm2898_vm7, %v3467_v39, %v3463_v47  ;;  %v902_v51 = vpop.xlane.xlu0 %901 }
 0x181   :  { %v3477_v54 = vrot.slane %v905_v49, %v6967_v7  ;;  %v3472_v55 = vrot.slane %v902_v51, %v6979_v13  ;;  %v1140_v51 = vsel %vm539_vm0, %v227_v43, 0.0 }
 0x183   :  { %v3473_v62 = vsel %vm10950_vm8, %v3472_v55, %v3468_v50  ;;  %1120 = vadd.xlane.f32.xlu1 %v1119_v52  ;;  %1117 = vadd.xlane.f32.xlu0 %v1116_v53  ;;  %v1143_v50 = vsel %vm539_vm0, %v228_v41, 0.0  ;;  %v230_v55 = vld [vmem:[%s10945_s0 + $0x658] sm:$0xff] }
 0x184   :  { %v911_v0 = vpop.xlane.xlu1 %910  ;;  %v3478_v1 = vsel %vm2912_vm9, %v3477_v54, %v3473_v62  ;;  %v908_v3 = vpop.xlane.xlu0 %907 }
 0x185   :  { %v3487_v5 = vrot.slane %v911_v0, %v6987_v23  ;;  %v3482_v6 = vrot.slane %v908_v3, %v6999_v29  ;;  %v1146_v3 = vsel %vm539_vm0, %v229_v60, 0.0 }
 0x187   :  { %v3483_v11 = vsel %vm10951_vm10, %v3482_v6, %v3478_v1  ;;  %1126 = vadd.xlane.f32.xlu1 %v1125_v18  ;;  %1123 = vadd.xlane.f32.xlu0 %v1122_v4  ;;  %v1149_v1 = vsel %vm539_vm0, %v230_v55, 0.0  ;;  %v231_v6 = vld [vmem:[%s10945_s0 + $0x660] sm:$0xff]  ;;  %v237_v55 = vld [vmem:[%s10945_s0 + $0x690] sm:$0xff] }
 0x188   :  { %v917_v12 = vpop.xlane.xlu1 %916  ;;  %v3488_v14 = vsel %vm2926_vm11, %v3487_v5, %v3483_v11  ;;  %v914_v16 = vpop.xlane.xlu0 %913  ;;  %v232_v5 = vld [vmem:[%s10945_s0 + $0x668] sm:$0xff] }
 0x189   :  { %v3497_v21 = vrot.slane %v917_v12, %v7013_v46  ;;  %v3492_v22 = vrot.slane %v914_v16, %v7007_v42  ;;  %v1152_v16 = vsel %vm539_vm0, %v231_v6, 0.0  ;;  %v239_v6 = vld [vmem:[%s10945_s0 + $0x6a0] sm:$0xff] }
 0x18b   :  { %v3493_v27 = vsel %vm10949_vm12, %v3492_v22, %v3488_v14  ;;  %1132 = vadd.xlane.f32.xlu1 %v1131_v19  ;;  %1129 = vadd.xlane.f32.xlu0 %v1128_v20  ;;  %v1155_v14 = vsel %vm539_vm0, %v232_v5, 0.0  ;;  %v233_v22 = vld [vmem:[%s10945_s0 + $0x670] sm:$0xff]  ;;  %v240_v5 = vld [vmem:[%s10945_s0 + $0x6a8] sm:$0xff] }
 0x18c   :  { %v923_v28 = vpop.xlane.xlu1 %922  ;;  %v920_v33 = vpop.xlane.xlu0 %919  ;;  %v3498_v37 = vsel %vm2940_vm13, %v3497_v21, %v3493_v27  ;;  %v234_v21 = vld [vmem:[%s10945_s0 + $0x678] sm:$0xff] }
 0x18d   :  { %v3507_v38 = vrot.slane %v923_v28, %v7032_v61  ;;  %v3502_v39 = vrot.slane %v920_v33, %v7027_v59  ;;  %v1161_v33 = vsel %vm539_vm0, %v234_v21, 0.0  ;;  %v242_v21 = vld [vmem:[%s10945_s0 + $0x6b8] sm:$0xff] }
 0x18f   :  { %1138 = vadd.xlane.f32.xlu1 %v1137_v34  ;;  %1135 = vadd.xlane.f32.xlu0 %v1134_v36  ;;  %v3503_v45 = vsel %vm2947_vm14, %v3502_v39, %v3498_v37  ;;  %v1158_v34 = vsel %vm539_vm0, %v233_v22, 0.0  ;;  %v235_v39 = vld [vmem:[%s10945_s0 + $0x680] sm:$0xff]  ;;  %v241_v22 = vld [vmem:[%s10945_s0 + $0x6b0] sm:$0xff] }
 0x190   :  { %v929_v47 = vpop.xlane.xlu1 %928  ;;  %v926_v49 = vpop.xlane.xlu0 %925  ;;  %v7735_v52 = vsel %vm2954_vm15, %v3507_v38, %v3503_v45  ;;  %v236_v38 = vld [vmem:[%s10945_s0 + $0x688] sm:$0xff] }
 0x191   :  { %v3516_v53 = vrot.slane %v929_v47, %v6912_v32  ;;  %v3512_v54 = vrot.slane %v926_v49, %v6906_v30  ;;  %v1167_v49 = vsel %vm539_vm0, %v236_v38, 0.0  ;;  %v244_v38 = vld [vmem:[%s10945_s0 + $0x6c8] sm:$0xff] }
 0x193   :  { %v3517_v15 = vsel %vm2856_vm1, %v3516_v53, %v3512_v54  ;;  %1144 = vadd.xlane.f32.xlu1 %v1143_v50  ;;  %1141 = vadd.xlane.f32.xlu0 %v1140_v51  ;;  %v1164_v50 = vsel %vm539_vm0, %v235_v39, 0.0  ;;  %v238_v54 = vld [vmem:[%s10945_s0 + $0x698] sm:$0xff]  ;;  %v243_v39 = vld [vmem:[%s10945_s0 + $0x6c0] sm:$0xff] }
 0x194   :  { %v935_v62 = vpop.xlane.xlu1 %934  ;;  %v932_v0 = vpop.xlane.xlu0 %931 }
 0x195   :  { %v3526_v18 = vrot.slane %v935_v62, %v6909_v31  ;;  %v3521_v4 = vrot.slane %v932_v0, %v6919_v35 }
 0x197   :  { %v3522_v8 = vsel %vm2863_vm2, %v3521_v4, %v3517_v15  ;;  %1150 = vadd.xlane.f32.xlu1 %v1149_v1  ;;  %1147 = vadd.xlane.f32.xlu0 %v1146_v3  ;;  %v1173_v1 = vsel %vm539_vm0, %v238_v54, 0.0  ;;  %v1170_v3 = vsel %vm539_vm0, %v237_v55, 0.0  ;;  %v246_v54 = vld [vmem:[%s10945_s0 + $0x6d8] sm:$0xff]  ;;  %v245_v55 = vld [vmem:[%s10945_s0 + $0x6d0] sm:$0xff] }
 0x198   :  { %v941_v9 = vpop.xlane.xlu1 %940  ;;  %v3527_v11 = vsel %vm2870_vm3, %v3526_v18, %v3522_v8  ;;  %v938_v12 = vpop.xlane.xlu0 %937 }
 0x199   :  { %v3536_v19 = vrot.slane %v941_v9, %v6924_v40  ;;  %v3531_v20 = vrot.slane %v938_v12, %v6938_v48 }
 0x19b   :  { %v3532_v24 = vsel %vm2877_vm4, %v3531_v20, %v3527_v11  ;;  %1156 = vadd.xlane.f32.xlu1 %v1155_v14  ;;  %1153 = vadd.xlane.f32.xlu0 %v1152_v16  ;;  %v1179_v14 = vsel %vm539_vm0, %v240_v5, 0.0  ;;  %v1176_v16 = vsel %vm539_vm0, %v239_v6, 0.0  ;;  %v247_v5 = vld [vmem:[%s10945_s0 + $0x6e0] sm:$0xff] }
 0x19c   :  { %v947_v26 = vpop.xlane.xlu1 %946  ;;  %v3537_v27 = vsel %vm2884_vm5, %v3536_v19, %v3532_v24  ;;  %v944_v28 = vpop.xlane.xlu0 %943 }
 0x19d   :  { %v3546_v36 = vrot.slane %v947_v26, %v6946_v56  ;;  %v3541_v37 = vrot.slane %v944_v28, %v6949_v57 }
 0x19f   :  { %v3542_v41 = vsel %vm2891_vm6, %v3541_v37, %v3537_v27  ;;  %1162 = vadd.xlane.f32.xlu1 %v1161_v33  ;;  %1159 = vadd.xlane.f32.xlu0 %v1158_v34  ;;  %v1185_v33 = vsel %vm539_vm0, %v242_v21, 0.0  ;;  %v1182_v34 = vsel %vm539_vm0, %v241_v22, 0.0  ;;  %v249_v21 = vld [vmem:[%s10945_s0 + $0x6f0] sm:$0xff] }
 0x1a0   :  { %v953_v43 = vpop.xlane.xlu1 %952  ;;  %v3547_v45 = vsel %vm2898_vm7, %v3546_v36, %v3542_v41  ;;  %v950_v47 = vpop.xlane.xlu0 %949 }
 0x1a1   :  { %v3556_v51 = vrot.slane %v953_v43, %v6967_v7  ;;  %v3551_v53 = vrot.slane %v950_v47, %v6979_v13  ;;  %v1191_v47 = vsel %vm539_vm0, %v244_v38, 0.0  ;;  %v251_v38 = vld [vmem:[%s10945_s0 + $0x700] sm:$0xff] }
 0x1a3   :  { %v3552_v60 = vsel %vm10950_vm8, %v3551_v53, %v3547_v45  ;;  %1168 = vadd.xlane.f32.xlu1 %v1167_v49  ;;  %1165 = vadd.xlane.f32.xlu0 %v1164_v50  ;;  %v1188_v49 = vsel %vm539_vm0, %v243_v39, 0.0 }
 0x1a4   :  { %v959_v15 = vpop.xlane.xlu1 %958  ;;  %v3557_v62 = vsel %vm2912_vm9, %v3556_v51, %v3552_v60  ;;  %v956_v0 = vpop.xlane.xlu0 %955 }
 0x1a5   :  { %v3566_v18 = vrot.slane %v959_v15, %v6987_v23  ;;  %v3561_v4 = vrot.slane %v956_v0, %v6999_v29  ;;  %v1197_v0 = vsel %vm539_vm0, %v246_v54, 0.0  ;;  %v254_v54 = vld [vmem:[%s10945_s0 + $0x718] sm:$0xff] }
 0x1a7   :  { %v3562_v8 = vsel %vm10951_vm10, %v3561_v4, %v3557_v62  ;;  %1174 = vadd.xlane.f32.xlu1 %v1173_v1  ;;  %1171 = vadd.xlane.f32.xlu0 %v1170_v3  ;;  %v1194_v1 = vsel %vm539_vm0, %v245_v55, 0.0  ;;  %v248_v4 = vld [vmem:[%s10945_s0 + $0x6e8] sm:$0xff]  ;;  %v253_v55 = vld [vmem:[%s10945_s0 + $0x710] sm:$0xff] }
 0x1a8   :  { %v965_v9 = vpop.xlane.xlu1 %964  ;;  %v3567_v11 = vsel %vm2926_vm11, %v3566_v18, %v3562_v8  ;;  %v962_v12 = vpop.xlane.xlu0 %961 }
 0x1a9   :  { %v3576_v19 = vrot.slane %v965_v9, %v7013_v46  ;;  %v3571_v20 = vrot.slane %v962_v12, %v7007_v42  ;;  %v1203_v12 = vsel %vm539_vm0, %v248_v4, 0.0 }
 0x1ab   :  { %v3572_v24 = vsel %vm10949_vm12, %v3571_v20, %v3567_v11  ;;  %1180 = vadd.xlane.f32.xlu1 %v1179_v14  ;;  %1177 = vadd.xlane.f32.xlu0 %v1176_v16  ;;  %v1200_v14 = vsel %vm539_vm0, %v247_v5, 0.0  ;;  %v250_v20 = vld [vmem:[%s10945_s0 + $0x6f8] sm:$0xff]  ;;  %v256_v5 = vld [vmem:[%s10945_s0 + $0x728] sm:$0xff] }
 0x1ac   :  { %v971_v26 = vpop.xlane.xlu1 %970  ;;  %v3577_v27 = vsel %vm2940_vm13, %v3576_v19, %v3572_v24  ;;  %v968_v28 = vpop.xlane.xlu0 %967 }
 0x1ad   :  { %v3586_v36 = vrot.slane %v971_v26, %v7032_v61  ;;  %v3581_v37 = vrot.slane %v968_v28, %v7027_v59  ;;  %v1209_v28 = vsel %vm539_vm0, %v250_v20, 0.0 }
 0x1af   :  { %v3582_v41 = vsel %vm2947_vm14, %v3581_v37, %v3577_v27  ;;  %1186 = vadd.xlane.f32.xlu1 %v1185_v33  ;;  %1183 = vadd.xlane.f32.xlu0 %v1182_v34  ;;  %v1206_v33 = vsel %vm539_vm0, %v249_v21, 0.0  ;;  %v252_v37 = vld [vmem:[%s10945_s0 + $0x708] sm:$0xff]  ;;  %v258_v21 = vld [vmem:[%s10945_s0 + $0x738] sm:$0xff] }
 0x1b0   :  { %v977_v43 = vpop.xlane.xlu1 %976  ;;  %v974_v45 = vpop.xlane.xlu0 %973  ;;  %v7832_v50 = vsel %vm2954_vm15, %v3586_v36, %v3582_v41 }
 0x1b1   :  { %10961 = vst [vmem:[#allocation8_spill] sm:$0xff] %v7832_v50  ;;  %v3595_v51 = vrot.slane %v977_v43, %v6912_v32  ;;  %v3591_v53 = vrot.slane %v974_v45, %v6906_v30 }
 0x1b3   :  { %v3596_v60 = vsel %vm2856_vm1, %v3595_v51, %v3591_v53  ;;  %1192 = vadd.xlane.f32.xlu1 %v1191_v47  ;;  %1189 = vadd.xlane.f32.xlu0 %v1188_v49  ;;  %v1215_v47 = vsel %vm539_vm0, %v252_v37, 0.0  ;;  %v1212_v49 = vsel %vm539_vm0, %v251_v38, 0.0  ;;  %v260_v38 = vld [vmem:[%s10945_s0 + $0x748] sm:$0xff] }
 0x1b4   :  { %v983_v15 = vpop.xlane.xlu1 %982  ;;  %v980_v62 = vpop.xlane.xlu0 %979 }
 0x1b5   :  { %v3605_v3 = vrot.slane %v983_v15, %v6909_v31  ;;  %v3600_v18 = vrot.slane %v980_v62, %v6919_v35 }
 0x1b7   :  { %v3601_v6 = vsel %vm2863_vm2, %v3600_v18, %v3596_v60  ;;  %1198 = vadd.xlane.f32.xlu1 %v1197_v0  ;;  %1195 = vadd.xlane.f32.xlu0 %v1194_v1  ;;  %v1221_v1 = vsel %vm539_vm0, %v254_v54, 0.0 }
 0x1b8   :  { %v989_v8 = vpop.xlane.xlu1 %988  ;;  %v3606_v9 = vsel %vm2870_vm3, %v3605_v3, %v3601_v6  ;;  %v986_v11 = vpop.xlane.xlu0 %985  ;;  %v1218_v3 = vsel %vm539_vm0, %v253_v55, 0.0  ;;  %v255_v6 = vld [vmem:[%s10945_s0 + $0x720] sm:$0xff]  ;;  %v262_v55 = vld [vmem:[%s10945_s0 + $0x758] sm:$0xff] }
 0x1b9   :  { %v3615_v16 = vrot.slane %v989_v8, %v6924_v40  ;;  %v3610_v19 = vrot.slane %v986_v11, %v6938_v48 }
 0x1bb   :  { %v3611_v22 = vsel %vm2877_vm4, %v3610_v19, %v3606_v9  ;;  %1204 = vadd.xlane.f32.xlu1 %v1203_v12  ;;  %1201 = vadd.xlane.f32.xlu0 %v1200_v14  ;;  %v1227_v14 = vsel %vm539_vm0, %v256_v5, 0.0  ;;  %v264_v5 = vld [vmem:[%s10945_s0 + $0x768] sm:$0xff] }
 0x1bc   :  { %v995_v24 = vpop.xlane.xlu1 %994  ;;  %v3616_v26 = vsel %vm2884_vm5, %v3615_v16, %v3611_v22  ;;  %v992_v27 = vpop.xlane.xlu0 %991  ;;  %v1224_v16 = vsel %vm539_vm0, %v255_v6, 0.0  ;;  %v257_v22 = vld [vmem:[%s10945_s0 + $0x730] sm:$0xff]  ;;  %v263_v6 = vld [vmem:[%s10945_s0 + $0x760] sm:$0xff] }
 0x1bd   :  { %v3625_v34 = vrot.slane %v995_v24, %v6946_v56  ;;  %v3620_v36 = vrot.slane %v992_v27, %v6949_v57 }
 0x1bf   :  { %v3621_v39 = vsel %vm2891_vm6, %v3620_v36, %v3616_v26  ;;  %1210 = vadd.xlane.f32.xlu1 %v1209_v28  ;;  %1207 = vadd.xlane.f32.xlu0 %v1206_v33  ;;  %v1233_v28 = vsel %vm539_vm0, %v258_v21, 0.0  ;;  %v1230_v33 = vsel %vm539_vm0, %v257_v22, 0.0  ;;  %v266_v21 = vld [vmem:[%s10945_s0 + $0x778] sm:$0xff]  ;;  %v265_v22 = vld [vmem:[%s10945_s0 + $0x770] sm:$0xff] }
 0x1c0   :  { %v1001_v41 = vpop.xlane.xlu1 %1000  ;;  %v3626_v43 = vsel %vm2898_vm7, %v3625_v34, %v3621_v39  ;;  %v998_v45 = vpop.xlane.xlu0 %997  ;;  %v259_v39 = vld [vmem:[%s10945_s0 + $0x740] sm:$0xff] }
 0x1c1   :  { %v3635_v51 = vrot.slane %v1001_v41, %v6967_v7  ;;  %v3630_v53 = vrot.slane %v998_v45, %v6979_v13 }
 0x1c3   :  { %v3631_v60 = vsel %vm10950_vm8, %v3630_v53, %v3626_v43  ;;  %1216 = vadd.xlane.f32.xlu1 %v1215_v47  ;;  %1213 = vadd.xlane.f32.xlu0 %v1212_v49  ;;  %v1239_v47 = vsel %vm539_vm0, %v260_v38, 0.0  ;;  %v1236_v49 = vsel %vm539_vm0, %v259_v39, 0.0  ;;  %v268_v38 = vld [vmem:[%s10945_s0 + $0x788] sm:$0xff]  ;;  %v267_v39 = vld [vmem:[%s10945_s0 + $0x780] sm:$0xff] }
 0x1c4   :  { %v1007_v15 = vpop.xlane.xlu1 %1006  ;;  %v3636_v62 = vsel %vm2912_vm9, %v3635_v51, %v3631_v60  ;;  %v1004_v0 = vpop.xlane.xlu0 %1003  ;;  %v261_v60 = vld [vmem:[%s10945_s0 + $0x750] sm:$0xff] }
 0x1c5   :  { %v3645_v18 = vrot.slane %v1007_v15, %v6987_v23  ;;  %v3640_v4 = vrot.slane %v1004_v0, %v6999_v29 }
 0x1c7   :  { %v3641_v8 = vsel %vm10951_vm10, %v3640_v4, %v3636_v62  ;;  %1222 = vadd.xlane.f32.xlu1 %v1221_v1  ;;  %1219 = vadd.xlane.f32.xlu0 %v1218_v3  ;;  %v1245_v1 = vsel %vm539_vm0, %v262_v55, 0.0  ;;  %v1242_v3 = vsel %vm539_vm0, %v261_v60, 0.0  ;;  %v270_v60 = vld [vmem:[%s10945_s0 + $0x798] sm:$0xff] }
 0x1c8   :  { %v1013_v9 = vpop.xlane.xlu1 %1012  ;;  %v3646_v11 = vsel %vm2926_vm11, %v3645_v18, %v3641_v8  ;;  %v1010_v12 = vpop.xlane.xlu0 %1009 }
 0x1c9   :  { %v3655_v19 = vrot.slane %v1013_v9, %v7013_v46  ;;  %v3650_v20 = vrot.slane %v1010_v12, %v7007_v42 }
 0x1cb   :  { %v3651_v24 = vsel %vm10949_vm12, %v3650_v20, %v3646_v11  ;;  %1228 = vadd.xlane.f32.xlu1 %v1227_v14  ;;  %1225 = vadd.xlane.f32.xlu0 %v1224_v16  ;;  %v1251_v14 = vsel %vm539_vm0, %v264_v5, 0.0  ;;  %v1248_v16 = vsel %vm539_vm0, %v263_v6, 0.0 }
 0x1cc   :  { %v1019_v26 = vpop.xlane.xlu1 %1018  ;;  %v1016_v27 = vpop.xlane.xlu0 %1015  ;;  %v3656_v34 = vsel %vm2940_vm13, %v3655_v19, %v3651_v24 }
 0x1cd   :  { %v3665_v36 = vrot.slane %v1019_v26, %v7032_v61  ;;  %v3660_v37 = vrot.slane %v1016_v27, %v7027_v59 }
 0x1cf   :  { %1234 = vadd.xlane.f32.xlu1 %v1233_v28  ;;  %1231 = vadd.xlane.f32.xlu0 %v1230_v33  ;;  %v3661_v41 = vsel %vm2947_vm14, %v3660_v37, %v3656_v34  ;;  %v1257_v33 = vsel %vm539_vm0, %v266_v21, 0.0  ;;  %v1254_v34 = vsel %vm539_vm0, %v265_v22, 0.0 }
 0x1d0   :  { %v1025_v43 = vpop.xlane.xlu1 %1024  ;;  %v1022_v45 = vpop.xlane.xlu0 %1021  ;;  %v7929_v51 = vsel %vm2954_vm15, %v3665_v36, %v3661_v41 }
 0x1d1   :  { %10962 = vst [vmem:[#allocation9_spill] sm:$0xff] %v7929_v51  ;;  %v3674_v53 = vrot.slane %v1025_v43, %v6912_v32  ;;  %v3670_v54 = vrot.slane %v1022_v45, %v6906_v30 }
 0x1d3   :  { %v3675_v15 = vsel %vm2856_vm1, %v3674_v53, %v3670_v54  ;;  %1240 = vadd.xlane.f32.xlu1 %v1239_v47  ;;  %1237 = vadd.xlane.f32.xlu0 %v1236_v49  ;;  %v1263_v49 = vsel %vm539_vm0, %v268_v38, 0.0  ;;  %v1260_v53 = vsel %vm539_vm0, %v267_v39, 0.0 }
 0x1d4   :  { %v1031_v62 = vpop.xlane.xlu1 %1030  ;;  %v1028_v0 = vpop.xlane.xlu0 %1027 }
 0x1d5   :  { %v3684_v18 = vrot.slane %v1031_v62, %v6909_v31  ;;  %v3679_v4 = vrot.slane %v1028_v0, %v6919_v35 }
 0x1d7   :  { %v3680_v8 = vsel %vm2863_vm2, %v3679_v4, %v3675_v15  ;;  %1246 = vadd.xlane.f32.xlu1 %v1245_v1  ;;  %1243 = vadd.xlane.f32.xlu0 %v1242_v3  ;;  %v269_v15 = vld [vmem:[%s10945_s0 + $0x790] sm:$0xff] }
 0x1d8   :  { %v1037_v9 = vpop.xlane.xlu1 %1036  ;;  %v3685_v11 = vsel %vm2870_vm3, %v3684_v18, %v3680_v8  ;;  %v1034_v12 = vpop.xlane.xlu0 %1033  ;;  %v1269_v18 = vsel %vm539_vm0, %v270_v60, 0.0  ;;  %v1266_v4 = vsel %vm539_vm0, %v269_v15, 0.0  ;;  %v272_v8 = vld [vmem:[%s10945_s0 + $0x7a8] sm:$0xff] }
 0x1d9   :  { %v3694_v19 = vrot.slane %v1037_v9, %v6924_v40  ;;  %v3689_v20 = vrot.slane %v1034_v12, %v6938_v48  ;;  %v271_v9 = vld [vmem:[%s10945_s0 + $0x7a0] sm:$0xff] }
 0x1db   :  { %v3690_v24 = vsel %vm2877_vm4, %v3689_v20, %v3685_v11  ;;  %1252 = vadd.xlane.f32.xlu1 %v1251_v14  ;;  %1249 = vadd.xlane.f32.xlu0 %v1248_v16  ;;  %v1272_v20 = vsel %vm539_vm0, %v271_v9, 0.0  ;;  %v280_v9 = vld [vmem:[%s10945_s0 + $0x7e8] sm:$0xff] }
 0x1dc   :  { %v1043_v26 = vpop.xlane.xlu1 %1042  ;;  %v3695_v27 = vsel %vm2884_vm5, %v3694_v19, %v3690_v24  ;;  %v1040_v28 = vpop.xlane.xlu0 %1039  ;;  %v1275_v19 = vsel %vm539_vm0, %v272_v8, 0.0  ;;  %v274_v24 = vld [vmem:[%s10945_s0 + $0x7b8] sm:$0xff] }
 0x1dd   :  { %v3704_v36 = vrot.slane %v1043_v26, %v6946_v56  ;;  %v3699_v37 = vrot.slane %v1040_v28, %v6949_v57  ;;  %v273_v26 = vld [vmem:[%s10945_s0 + $0x7b0] sm:$0xff] }
 0x1df   :  { %v3700_v41 = vsel %vm2891_vm6, %v3699_v37, %v3695_v27  ;;  %1258 = vadd.xlane.f32.xlu1 %v1257_v33  ;;  %1255 = vadd.xlane.f32.xlu0 %v1254_v34  ;;  %v1278_v37 = vsel %vm539_vm0, %v273_v26, 0.0  ;;  %v282_v26 = vld [vmem:[%s10945_s0 + $0x7f8] sm:$0xff] }
 0x1e0   :  { %v1049_v43 = vpop.xlane.xlu1 %1048  ;;  %v3705_v45 = vsel %vm2898_vm7, %v3704_v36, %v3700_v41  ;;  %v1046_v47 = vpop.xlane.xlu0 %1045  ;;  %v1281_v36 = vsel %vm539_vm0, %v274_v24, 0.0  ;;  %v276_v41 = vld [vmem:[%s10945_s0 + $0x7c8] sm:$0xff] }
 0x1e1   :  { %v3714_v54 = vrot.slane %v1049_v43, %v6967_v7  ;;  %v3709_v55 = vrot.slane %v1046_v47, %v6979_v13  ;;  %v275_v43 = vld [vmem:[%s10945_s0 + $0x7c0] sm:$0xff] }
 0x1e3   :  { %v3710_v62 = vsel %vm10950_vm8, %v3709_v55, %v3705_v45  ;;  %1264 = vadd.xlane.f32.xlu1 %v1263_v49  ;;  %1261 = vadd.xlane.f32.xlu0 %v1260_v53  ;;  %v1287_v53 = vsel %vm539_vm0, %v276_v41, 0.0 }
 0x1e4   :  { %v1055_v0 = vpop.xlane.xlu1 %1054  ;;  %v3715_v1 = vsel %vm2912_vm9, %v3714_v54, %v3710_v62  ;;  %v1052_v3 = vpop.xlane.xlu0 %1051  ;;  %v1284_v54 = vsel %vm539_vm0, %v275_v43, 0.0  ;;  %v278_v62 = vld [vmem:[%s10945_s0 + $0x7d8] sm:$0xff]  ;;  %v284_v43 = vld [vmem:[%s10945_s0 + $0x808] sm:$0xff] }
 0x1e5   :  { %v3724_v5 = vrot.slane %v1055_v0, %v6987_v23  ;;  %v3719_v6 = vrot.slane %v1052_v3, %v6999_v29  ;;  %v277_v0 = vld [vmem:[%s10945_s0 + $0x7d0] sm:$0xff] }
 0x1e7   :  { %v3720_v11 = vsel %vm10951_vm10, %v3719_v6, %v3715_v1  ;;  %1270 = vadd.xlane.f32.xlu1 %v1269_v18  ;;  %1267 = vadd.xlane.f32.xlu0 %v1266_v4  ;;  %v1293_v4 = vsel %vm539_vm0, %v278_v62, 0.0 }
 0x1e8   :  { %v1061_v12 = vpop.xlane.xlu1 %1060  ;;  %v3725_v14 = vsel %vm2926_vm11, %v3724_v5, %v3720_v11  ;;  %v1058_v16 = vpop.xlane.xlu0 %1057  ;;  %v1290_v5 = vsel %vm539_vm0, %v277_v0, 0.0  ;;  %v279_v11 = vld [vmem:[%s10945_s0 + $0x7e0] sm:$0xff] }
 0x1e9   :  { %v3734_v21 = vrot.slane %v1061_v12, %v7013_v46  ;;  %v3729_v22 = vrot.slane %v1058_v16, %v7007_v42 }
 0x1eb   :  { %v3730_v27 = vsel %vm10949_vm12, %v3729_v22, %v3725_v14  ;;  %1276 = vadd.xlane.f32.xlu1 %v1275_v19  ;;  %1273 = vadd.xlane.f32.xlu0 %v1272_v20  ;;  %v1299_v20 = vsel %vm539_vm0, %v280_v9, 0.0 }
 0x1ec   :  { %v1067_v28 = vpop.xlane.xlu1 %1066  ;;  %v3735_v33 = vsel %vm2940_vm13, %v3734_v21, %v3730_v27  ;;  %v1064_v34 = vpop.xlane.xlu0 %1063  ;;  %v1296_v21 = vsel %vm539_vm0, %v279_v11, 0.0  ;;  %v281_v27 = vld [vmem:[%s10945_s0 + $0x7f0] sm:$0xff] }
 0x1ed   :  { %v3744_v38 = vrot.slane %v1067_v28, %v7032_v61  ;;  %v3739_v39 = vrot.slane %v1064_v34, %v7027_v59 }
 0x1ef   :  { %v3740_v45 = vsel %vm2947_vm14, %v3739_v39, %v3735_v33  ;;  %1282 = vadd.xlane.f32.xlu1 %v1281_v36  ;;  %1279 = vadd.xlane.f32.xlu0 %v1278_v37  ;;  %v1305_v37 = vsel %vm539_vm0, %v282_v26, 0.0 }
 0x1f0   :  { %v1073_v47 = vpop.xlane.xlu1 %1072  ;;  %v1070_v49 = vpop.xlane.xlu0 %1069  ;;  %v8026_v55 = vsel %vm2954_vm15, %v3744_v38, %v3740_v45  ;;  %v1302_v38 = vsel %vm539_vm0, %v281_v27, 0.0  ;;  %v283_v45 = vld [vmem:[%s10945_s0 + $0x800] sm:$0xff] }
 0x1f1   :  { %10963 = vst [vmem:[#allocation10_spill] sm:$0xff] %v8026_v55  ;;  %v3753_v60 = vrot.slane %v1073_v47, %v6912_v32  ;;  %v3749_v15 = vrot.slane %v1070_v49, %v6906_v30 }
 0x1f3   :  { %v3754_v1 = vsel %vm2856_vm1, %v3753_v60, %v3749_v15  ;;  %1288 = vadd.xlane.f32.xlu1 %v1287_v53  ;;  %1285 = vadd.xlane.f32.xlu0 %v1284_v54  ;;  %v1311_v60 = vsel %vm539_vm0, %v284_v43, 0.0  ;;  %v1308_v15 = vsel %vm539_vm0, %v283_v45, 0.0 }
 0x1f4   :  { %v1079_v3 = vpop.xlane.xlu1 %1078  ;;  %v1076_v18 = vpop.xlane.xlu0 %1075 }
 0x1f5   :  { %v3763_v6 = vrot.slane %v1079_v3, %v6909_v31  ;;  %v3758_v8 = vrot.slane %v1076_v18, %v6919_v35  ;;  %v285_v3 = vld [vmem:[%s10945_s0 + $0x810] sm:$0xff] }
 0x1f6   :  { %v1314_v9 = vsel %vm539_vm0, %v285_v3, 0.0 }
 0x1f7   :  { %v3759_v12 = vsel %vm2863_vm2, %v3758_v8, %v3754_v1  ;;  %1294 = vadd.xlane.f32.xlu1 %v1293_v4  ;;  %1291 = vadd.xlane.f32.xlu0 %v1290_v5  ;;  %v286_v1 = vld [vmem:[%s10945_s0 + $0x818] sm:$0xff] }
 0x1f8   :  { %v1085_v14 = vpop.xlane.xlu1 %1084  ;;  %v3764_v16 = vsel %vm2870_vm3, %v3763_v6, %v3759_v12  ;;  %v1082_v19 = vpop.xlane.xlu0 %1081  ;;  %v1317_v8 = vsel %vm539_vm0, %v286_v1, 0.0 }
 0x1f9   :  { %v3773_v22 = vrot.slane %v1085_v14, %v6924_v40  ;;  %v3768_v24 = vrot.slane %v1082_v19, %v6938_v48  ;;  %v288_v14 = vld [vmem:[%s10945_s0 + $0x828] sm:$0xff] }
 0x1fb   :  { %v3769_v28 = vsel %vm2877_vm4, %v3768_v24, %v3764_v16  ;;  %1300 = vadd.xlane.f32.xlu1 %v1299_v20  ;;  %1297 = vadd.xlane.f32.xlu0 %v1296_v21  ;;  %v287_v16 = vld [vmem:[%s10945_s0 + $0x820] sm:$0xff]  ;;  %v1323_v24 = vsel %vm539_vm0, %v288_v14, 0.0 }
 0x1fc   :  { %v1091_v33 = vpop.xlane.xlu1 %1090  ;;  %v3774_v34 = vsel %vm2884_vm5, %v3773_v22, %v3769_v28  ;;  %v1088_v36 = vpop.xlane.xlu0 %1087  ;;  %v1320_v26 = vsel %vm539_vm0, %v287_v16, 0.0 }
 0x1fd   :  { %v3783_v39 = vrot.slane %v1091_v33, %v6946_v56  ;;  %v3778_v41 = vrot.slane %v1088_v36, %v6949_v57  ;;  %v290_v33 = vld [vmem:[%s10945_s0 + $0x838] sm:$0xff] }
 0x1ff   :  { %v3779_v47 = vsel %vm2891_vm6, %v3778_v41, %v3774_v34  ;;  %1306 = vadd.xlane.f32.xlu1 %v1305_v37  ;;  %1303 = vadd.xlane.f32.xlu0 %v1302_v38  ;;  %v289_v34 = vld [vmem:[%s10945_s0 + $0x830] sm:$0xff] }
 0x200   :  { %v1097_v49 = vpop.xlane.xlu1 %1096  ;;  %v3784_v53 = vsel %vm2898_vm7, %v3783_v39, %v3779_v47  ;;  %v1094_v54 = vpop.xlane.xlu0 %1093  ;;  %v1329_v39 = vsel %vm539_vm0, %v290_v33, 0.0  ;;  %v1326_v41 = vsel %vm539_vm0, %v289_v34, 0.0 }
 0x201   :  { %v3793_v62 = vrot.slane %v1097_v49, %v6967_v7  ;;  %v3788_v0 = vrot.slane %v1094_v54, %v6979_v13  ;;  %v292_v49 = vld [vmem:[%s10945_s0 + $0x848] sm:$0xff] }
 0x203   :  { %v3789_v18 = vsel %vm10950_vm8, %v3788_v0, %v3784_v53  ;;  %1312 = vadd.xlane.f32.xlu1 %v1311_v60  ;;  %1309 = vadd.xlane.f32.xlu0 %v1308_v15  ;;  %v291_v53 = vld [vmem:[%s10945_s0 + $0x840] sm:$0xff] }
 0x204   :  { %v1103_v4 = vpop.xlane.xlu1 %1102  ;;  %v3794_v5 = vsel %vm2912_vm9, %v3793_v62, %v3789_v18  ;;  %v1100_v6 = vpop.xlane.xlu0 %1099  ;;  %v1335_v62 = vsel %vm539_vm0, %v292_v49, 0.0  ;;  %v1332_v0 = vsel %vm539_vm0, %v291_v53, 0.0 }
 0x205   :  { %v3803_v11 = vrot.slane %v1103_v4, %v6987_v23  ;;  %v3798_v12 = vrot.slane %v1100_v6, %v6999_v29  ;;  %v294_v4 = vld [vmem:[%s10945_s0 + $0x858] sm:$0xff] }
 0x207   :  { %v3799_v19 = vsel %vm10951_vm10, %v3798_v12, %v3794_v5  ;;  %1318 = vadd.xlane.f32.xlu1 %v1317_v8  ;;  %1315 = vadd.xlane.f32.xlu0 %v1314_v9  ;;  %v293_v5 = vld [vmem:[%s10945_s0 + $0x850] sm:$0xff] }
 0x208   :  { %v1109_v20 = vpop.xlane.xlu1 %1108  ;;  %v3804_v21 = vsel %vm2926_vm11, %v3803_v11, %v3799_v19  ;;  %v1106_v22 = vpop.xlane.xlu0 %1105  ;;  %v1341_v11 = vsel %vm539_vm0, %v294_v4, 0.0  ;;  %v1338_v12 = vsel %vm539_vm0, %v293_v5, 0.0  ;;  %v296_v19 = vld [vmem:[%s10945_s0 + $0x868] sm:$0xff] }
 0x209   :  { %v3813_v27 = vrot.slane %v1109_v20, %v7013_v46  ;;  %v3808_v28 = vrot.slane %v1106_v22, %v7007_v42  ;;  %v295_v20 = vld [vmem:[%s10945_s0 + $0x860] sm:$0xff] }
 0x20b   :  { %v3809_v36 = vsel %vm10949_vm12, %v3808_v28, %v3804_v21  ;;  %1324 = vadd.xlane.f32.xlu1 %v1323_v24  ;;  %1321 = vadd.xlane.f32.xlu0 %v1320_v26  ;;  %v1344_v28 = vsel %vm539_vm0, %v295_v20, 0.0 }
 0x20c   :  { %v1115_v37 = vpop.xlane.xlu1 %1114  ;;  %v1112_v38 = vpop.xlane.xlu0 %1111  ;;  %v3814_v43 = vsel %vm2940_vm13, %v3813_v27, %v3809_v36  ;;  %v1347_v27 = vsel %vm539_vm0, %v296_v19, 0.0  ;;  %v298_v36 = vld [vmem:[%s10945_s0 + $0x878] sm:$0xff] }
 0x20d   :  { %v3823_v45 = vrot.slane %v1115_v37, %v7032_v61  ;;  %v3818_v47 = vrot.slane %v1112_v38, %v7027_v59  ;;  %v297_v37 = vld [vmem:[%s10945_s0 + $0x870] sm:$0xff] }
 0x20f   :  { %1330 = vadd.xlane.f32.xlu1 %v1329_v39  ;;  %1327 = vadd.xlane.f32.xlu0 %v1326_v41  ;;  %v3819_v54 = vsel %vm2947_vm14, %v3818_v47, %v3814_v43  ;;  %v1350_v47 = vsel %vm539_vm0, %v297_v37, 0.0 }
 0x210   :  { %v1121_v60 = vpop.xlane.xlu1 %1120  ;;  %v1118_v15 = vpop.xlane.xlu0 %1117  ;;  %v8123_v1 = vsel %vm2954_vm15, %v3823_v45, %v3819_v54  ;;  %v1353_v45 = vsel %vm539_vm0, %v298_v36, 0.0  ;;  %v300_v54 = vld [vmem:[%s10945_s0 + $0x888] sm:$0xff] }
 0x211   :  { %10964 = vst [vmem:[#allocation11_spill] sm:$0xff] %v8123_v1  ;;  %v3832_v3 = vrot.slane %v1121_v60, %v6912_v32  ;;  %v3828_v18 = vrot.slane %v1118_v15, %v6906_v30  ;;  %v299_v60 = vld [vmem:[%s10945_s0 + $0x880] sm:$0xff] }
 0x212   :  { %v1356_v4 = vsel %vm539_vm0, %v299_v60, 0.0 }
 0x213   :  { %v3833_v6 = vsel %vm2856_vm1, %v3832_v3, %v3828_v18  ;;  %1336 = vadd.xlane.f32.xlu1 %v1335_v62  ;;  %1333 = vadd.xlane.f32.xlu0 %v1332_v0  ;;  %v1359_v18 = vsel %vm539_vm0, %v300_v54, 0.0 }
 0x214   :  { %v1127_v8 = vpop.xlane.xlu1 %1126  ;;  %v1124_v9 = vpop.xlane.xlu0 %1123 }
 0x215   :  { %v3842_v14 = vrot.slane %v1127_v8, %v6909_v31  ;;  %v3837_v16 = vrot.slane %v1124_v9, %v6919_v35  ;;  %v302_v8 = vld [vmem:[%s10945_s0 + $0x898] sm:$0xff]  ;;  %v301_v9 = vld [vmem:[%s10945_s0 + $0x890] sm:$0xff] }
 0x216   :  { %v1365_v19 = vsel %vm539_vm0, %v302_v8, 0.0  ;;  %v1362_v20 = vsel %vm539_vm0, %v301_v9, 0.0  ;;  %v2093_v9 = vld [vmem:[%s10946_s1 + $0x80] sm:$0xff] }
 0x217   :  { %v3838_v21 = vsel %vm2863_vm2, %v3837_v16, %v3833_v6  ;;  %1342 = vadd.xlane.f32.xlu1 %v1341_v11  ;;  %1339 = vadd.xlane.f32.xlu0 %v1338_v12 }
 0x218   :  { %v1133_v22 = vpop.xlane.xlu1 %1132  ;;  %v3843_v24 = vsel %vm2870_vm3, %v3842_v14, %v3838_v21  ;;  %v1130_v26 = vpop.xlane.xlu0 %1129 }
 0x219   :  { %v3852_v33 = vrot.slane %v1133_v22, %v6924_v40  ;;  %v3847_v34 = vrot.slane %v1130_v26, %v6938_v48  ;;  %v303_v26 = vld [vmem:[%s10945_s0 + $0x8a0] sm:$0xff] }
 0x21a   :  { %v1368_v37 = vsel %vm539_vm0, %v303_v26, 0.0 }
 0x21b   :  { %v3848_v38 = vsel %vm2877_vm4, %v3847_v34, %v3843_v24  ;;  %1348 = vadd.xlane.f32.xlu1 %v1347_v27  ;;  %1345 = vadd.xlane.f32.xlu0 %v1344_v28  ;;  %v304_v24 = vld [vmem:[%s10945_s0 + $0x8a8] sm:$0xff] }
 0x21c   :  { %v1139_v39 = vpop.xlane.xlu1 %1138  ;;  %v3853_v41 = vsel %vm2884_vm5, %v3852_v33, %v3848_v38  ;;  %v1136_v43 = vpop.xlane.xlu0 %1135  ;;  %v1371_v36 = vsel %vm539_vm0, %v304_v24, 0.0  ;;  %v2078_v24 = vld [vmem:[%s10946_s1 + $0x8] sm:$0xff] }
 0x21d   :  { %v3862_v49 = vrot.slane %v1139_v39, %v6946_v56  ;;  %v3857_v53 = vrot.slane %v1136_v43, %v6949_v57  ;;  %v305_v43 = vld [vmem:[%s10945_s0 + $0x8b0] sm:$0xff] }
 0x21e   :  { %v1374_v60 = vsel %vm539_vm0, %v305_v43, 0.0  ;;  %v312_v43 = vld [vmem:[%s10945_s0 + $0x8e8] sm:$0xff] }
 0x21f   :  { %v3858_v15 = vsel %vm2891_vm6, %v3857_v53, %v3853_v41  ;;  %1354 = vadd.xlane.f32.xlu1 %v1353_v45  ;;  %1351 = vadd.xlane.f32.xlu0 %v1350_v47  ;;  %v306_v41 = vld [vmem:[%s10945_s0 + $0x8b8] sm:$0xff] }
 0x220   :  { %v1145_v62 = vpop.xlane.xlu1 %1144  ;;  %v3863_v0 = vsel %vm2898_vm7, %v3862_v49, %v3858_v15  ;;  %v1142_v3 = vpop.xlane.xlu0 %1141  ;;  %v1377_v54 = vsel %vm539_vm0, %v306_v41, 0.0 }
 0x221   :  { %v3872_v5 = vrot.slane %v1145_v62, %v6967_v7  ;;  %v3867_v6 = vrot.slane %v1142_v3, %v6979_v13  ;;  %v307_v3 = vld [vmem:[%s10945_s0 + $0x8c0] sm:$0xff] }
 0x222   :  { %v1380_v8 = vsel %vm539_vm0, %v307_v3, 0.0  ;;  %v1395_v3 = vsel %vm539_vm0, %v312_v43, 0.0  ;;  %v2083_v43 = vld [vmem:[%s10946_s1 + $0x30] sm:$0xff] }
 0x223   :  { %v3868_v11 = vsel %vm10950_vm8, %v3867_v6, %v3863_v0  ;;  %1360 = vadd.xlane.f32.xlu1 %v1359_v18  ;;  %1357 = vadd.xlane.f32.xlu0 %v1356_v4  ;;  %v308_v0 = vld [vmem:[%s10945_s0 + $0x8c8] sm:$0xff] }
 0x224   :  { %v1151_v12 = vpop.xlane.xlu1 %1150  ;;  %v3873_v14 = vsel %vm2912_vm9, %v3872_v5, %v3868_v11  ;;  %v1148_v16 = vpop.xlane.xlu0 %1147  ;;  %v1383_v6 = vsel %vm539_vm0, %v308_v0, 0.0  ;;  %v2094_v11 = vld [vmem:[%s10946_s1 + $0x88] sm:$0xff] }
 0x225   :  { %v3882_v21 = vrot.slane %v1151_v12, %v6987_v23  ;;  %v3877_v22 = vrot.slane %v1148_v16, %v6999_v29 }
 0x227   :  { %v3878_v27 = vsel %vm10951_vm10, %v3877_v22, %v3873_v14  ;;  %1366 = vadd.xlane.f32.xlu1 %v1365_v19  ;;  %1363 = vadd.xlane.f32.xlu0 %v1362_v20  ;;  %v310_v19 = vld [vmem:[%s10945_s0 + $0x8d8] sm:$0xff]  ;;  %v309_v20 = vld [vmem:[%s10945_s0 + $0x8d0] sm:$0xff]  ;;  %v2077_v22 = vld [vmem:[%s10946_s1] sm:$0xff] }
 0x228   :  { %v1157_v28 = vpop.xlane.xlu1 %1156  ;;  %v3883_v33 = vsel %vm2926_vm11, %v3882_v21, %v3878_v27  ;;  %v1154_v34 = vpop.xlane.xlu0 %1153  ;;  %v6295_v21 = vpack.c.bf16 %v2094_v11, %v2093_v9  ;;  %v6297_v27 = vpack.c.bf16 %v2078_v24, %v2077_v22  ;;  %v314_v9 = vld [vmem:[%s10945_s0 + $0x8f8] sm:$0xff]  ;;  %v313_v11 = vld [vmem:[%s10945_s0 + $0x8f0] sm:$0xff] }
 0x229   :  { %v3892_v38 = vrot.slane %v1157_v28, %v7013_v46  ;;  %v3887_v39 = vrot.slane %v1154_v34, %v7007_v42  ;;  %v1389_v34 = vsel %vm539_vm0, %v310_v19, 0.0  ;;  %v2082_v19 = vld [vmem:[%s10946_s1 + $0x28] sm:$0xff] }
 0x22a   :  { %6296 = vmatprep.subr.bf16.mxu0 %v6295_v21 }
 0x22b   :  { %v3888_v45 = vsel %vm10949_vm12, %v3887_v39, %v3883_v33  ;;  %1372 = vadd.xlane.f32.xlu1 %v1371_v36  ;;  %1369 = vadd.xlane.f32.xlu0 %v1368_v37  ;;  %v1386_v36 = vsel %vm539_vm0, %v309_v20, 0.0  ;;  %v2095_v37 = vld [vmem:[%s10946_s1 + $0x90] sm:$0xff] }
 0x22c   :  { %v1163_v47 = vpop.xlane.xlu1 %1162  ;;  %v3893_v49 = vsel %vm2940_vm13, %v3892_v38, %v3888_v45  ;;  %v1160_v53 = vpop.xlane.xlu0 %1159  ;;  %v2096_v38 = vld [vmem:[%s10946_s1 + $0x98] sm:$0xff]  ;;  %v311_v45 = vld [vmem:[%s10945_s0 + $0x8e0] sm:$0xff]  ;;  %6298 = vmatpush3.bf16.msra.mxu0 %v6297_v27  ;;  %v1401_v27 = vsel %vm539_vm0, %v314_v9, 0.0 }
 0x22d   :  { %v3902_v15 = vrot.slane %v1163_v47, %v7032_v61  ;;  %v3897_v62 = vrot.slane %v1160_v53, %v7027_v59  ;;  %v6299_v47 = vpack.c.bf16 %v2096_v38, %v2095_v37  ;;  %v2080_v53 = vld [vmem:[%s10946_s1 + $0x18] sm:$0xff]  ;;  %v316_v38 = vld [vmem:[%s10945_s0 + $0x908] sm:$0xff]  ;;  %v2085_v9 = vld [vmem:[%s10946_s1 + $0x40] sm:$0xff] }
 0x22f   :  { %v3898_v18 = vsel %vm2947_vm14, %v3897_v62, %v3893_v49  ;;  %1378 = vadd.xlane.f32.xlu1 %v1377_v54  ;;  %1375 = vadd.xlane.f32.xlu0 %v1374_v60  ;;  %v2079_v49 = vld [vmem:[%s10946_s1 + $0x10] sm:$0xff] }
 0x230   :  { %v1169_v4 = vpop.xlane.xlu1 %1168  ;;  %v1166_v5 = vpop.xlane.xlu0 %1165  ;;  %v8226_v12 = vsel %vm2954_vm15, %v3902_v15, %v3898_v18  ;;  %v6301_v60 = vpack.c.bf16 %v2080_v53, %v2079_v49  ;;  %v1392_v18 = vsel %vm539_vm0, %v311_v45, 0.0  ;;  %6300 = vmatprep.subr.bf16.mxu0 %v6299_v47  ;;  %v2084_v45 = vld [vmem:[%s10946_s1 + $0x38] sm:$0xff] }
 0x231   :  { %10965 = vst [vmem:[#allocation12_spill] sm:$0xff] %v8226_v12  ;;  %v3911_v14 = vrot.slane %v1169_v4, %v6912_v32  ;;  %v3907_v16 = vrot.slane %v1166_v5, %v6906_v30  ;;  %v2097_v4 = vld [vmem:[%s10946_s1 + $0xa0] sm:$0xff]  ;;  %v2098_v5 = vld [vmem:[%s10946_s1 + $0xa8] sm:$0xff]  ;;  %v6309_v49 = vpack.c.bf16 %v2084_v45, %v2083_v43 }
 0x232   :  { %6302 = vmatpush3.bf16.msra.mxu0 %v6301_v60  ;;  %v456_v12 = vld [vmem:[%s10945_s0 + $0xd68] sm:$0xff] }
 0x233   :  { %v3912_v26 = vsel %vm2856_vm1, %v3911_v14, %v3907_v16  ;;  %1384 = vadd.xlane.f32.xlu1 %v1383_v6  ;;  %1381 = vadd.xlane.f32.xlu0 %v1380_v8  ;;  %v6303_v14 = vpack.c.bf16 %v2098_v5, %v2097_v4  ;;  %v2081_v16 = vld [vmem:[%s10946_s1 + $0x20] sm:$0xff]  ;;  %v318_v5 = vld [vmem:[%s10945_s0 + $0x918] sm:$0xff]  ;;  %v1827_v51 = vsel %vm539_vm0, %v456_v12, 0.0 }
 0x234   :  { %v1175_v28 = vpop.xlane.xlu1 %1174  ;;  %v1172_v33 = vpop.xlane.xlu0 %1171  ;;  %v6305_v21 = vpack.c.bf16 %v2082_v19, %v2081_v16 }
 0x235   :  { %v3921_v39 = vrot.slane %v1175_v28, %v6909_v31  ;;  %v3916_v41 = vrot.slane %v1172_v33, %v6919_v35  ;;  %v1398_v28 = vsel %vm539_vm0, %v313_v11, 0.0  ;;  %6304 = vmatprep.subr.bf16.mxu0 %v6303_v14  ;;  %v2099_v33 = vld [vmem:[%s10946_s1 + $0xb0] sm:$0xff]  ;;  %v2086_v11 = vld [vmem:[%s10946_s1 + $0x48] sm:$0xff] }
 0x236   :  { %6306 = vmatpush3.bf16.msra.mxu0 %v6305_v21  ;;  %v6313_v16 = vpack.c.bf16 %v2086_v11, %v2085_v9 }
 0x237   :  { %v3917_v54 = vsel %vm2863_vm2, %v3916_v41, %v3912_v26  ;;  %1390 = vadd.xlane.f32.xlu1 %v1389_v34  ;;  %1387 = vadd.xlane.f32.xlu0 %v1386_v36  ;;  %v2100_v34 = vld [vmem:[%s10946_s1 + $0xb8] sm:$0xff] }
 0x238   :  { %v1181_v15 = vpop.xlane.xlu1 %1180  ;;  %v3922_v62 = vsel %vm2870_vm3, %v3921_v39, %v3917_v54  ;;  %v1178_v0 = vpop.xlane.xlu0 %1177  ;;  %v315_v39 = vld [vmem:[%s10945_s0 + $0x900] sm:$0xff]  ;;  %v6307_v41 = vpack.c.bf16 %v2100_v34, %v2099_v33  ;;  %v320_v34 = vld [vmem:[%s10945_s0 + $0x928] sm:$0xff] }
 0x239   :  { %v3931_v6 = vrot.slane %v1181_v15, %v6924_v40  ;;  %v3926_v8 = vrot.slane %v1178_v0, %v6938_v48  ;;  %v1407_v15 = vsel %vm539_vm0, %v316_v38, 0.0  ;;  %v2101_v0 = vld [vmem:[%s10946_s1 + $0xc0] sm:$0xff]  ;;  %v2087_v38 = vld [vmem:[%s10946_s1 + $0x50] sm:$0xff] }
 0x23a   :  { %6308 = vmatprep.subr.bf16.mxu0 %v6307_v41 }
 0x23b   :  { %v3927_v20 = vsel %vm2877_vm4, %v3926_v8, %v3922_v62  ;;  %1396 = vadd.xlane.f32.xlu1 %v1395_v3  ;;  %1393 = vadd.xlane.f32.xlu0 %v1392_v18  ;;  %v1404_v62 = vsel %vm539_vm0, %v315_v39, 0.0  ;;  %v2102_v3 = vld [vmem:[%s10946_s1 + $0xc8] sm:$0xff]  ;;  %v2088_v39 = vld [vmem:[%s10946_s1 + $0x58] sm:$0xff] }
 0x23c   :  { %v1187_v22 = vpop.xlane.xlu1 %1186  ;;  %v3932_v24 = vsel %vm2884_vm5, %v3931_v6, %v3927_v20  ;;  %v1184_v26 = vpop.xlane.xlu0 %1183  ;;  %v317_v6 = vld [vmem:[%s10945_s0 + $0x910] sm:$0xff]  ;;  %6310 = vmatpush3.bf16.msra.mxu0 %v6309_v49  ;;  %v6311_v8 = vpack.c.bf16 %v2102_v3, %v2101_v0  ;;  %v6317_v43 = vpack.c.bf16 %v2088_v39, %v2087_v38  ;;  %v322_v3 = vld [vmem:[%s10945_s0 + $0x938] sm:$0xff] }
 0x23d   :  { %v3941_v36 = vrot.slane %v1187_v22, %v6946_v56  ;;  %v3936_v37 = vrot.slane %v1184_v26, %v6949_v57  ;;  %v1413_v22 = vsel %vm539_vm0, %v318_v5, 0.0  ;;  %v2103_v26 = vld [vmem:[%s10946_s1 + $0xd0] sm:$0xff]  ;;  %v2089_v5 = vld [vmem:[%s10946_s1 + $0x60] sm:$0xff] }
 0x23e   :  { %6312 = vmatprep.subr.bf16.mxu0 %v6311_v8 }
 0x23f   :  { %v3937_v47 = vsel %vm2891_vm6, %v3936_v37, %v3932_v24  ;;  %1402 = vadd.xlane.f32.xlu1 %v1401_v27  ;;  %1399 = vadd.xlane.f32.xlu0 %v1398_v28  ;;  %v1410_v24 = vsel %vm539_vm0, %v317_v6, 0.0  ;;  %v2104_v27 = vld [vmem:[%s10946_s1 + $0xd8] sm:$0xff]  ;;  %v2090_v6 = vld [vmem:[%s10946_s1 + $0x68] sm:$0xff] }
 0x240   :  { %v1193_v53 = vpop.xlane.xlu1 %1192  ;;  %v3942_v54 = vsel %vm2898_vm7, %v3941_v36, %v3937_v47  ;;  %v1190_v60 = vpop.xlane.xlu0 %1189  ;;  %v319_v36 = vld [vmem:[%s10945_s0 + $0x920] sm:$0xff]  ;;  %6314 = vmatpush3.bf16.msra.mxu0 %v6313_v16  ;;  %v6315_v37 = vpack.c.bf16 %v2104_v27, %v2103_v26  ;;  %v6321_v9 = vpack.c.bf16 %v2090_v6, %v2089_v5  ;;  %v1425_v16 = vsel %vm539_vm0, %v322_v3, 0.0  ;;  %v324_v27 = vld [vmem:[%s10945_s0 + $0x948] sm:$0xff] }
 0x241   :  { %v3951_v18 = vrot.slane %v1193_v53, %v6967_v7  ;;  %v3946_v4 = vrot.slane %v1190_v60, %v6979_v13  ;;  %v1419_v53 = vsel %vm539_vm0, %v320_v34, 0.0  ;;  %v2105_v60 = vld [vmem:[%s10946_s1 + $0xe0] sm:$0xff]  ;;  %v2091_v34 = vld [vmem:[%s10946_s1 + $0x70] sm:$0xff]  ;;  %v328_v6 = vld [vmem:[%s10945_s0 + $0x968] sm:$0xff] }
 0x242   :  { %6316 = vmatprep.subr.bf16.mxu0 %v6315_v37 }
 0x243   :  { %v3947_v14 = vsel %vm10950_vm8, %v3946_v4, %v3942_v54  ;;  %1408 = vadd.xlane.f32.xlu1 %v1407_v15  ;;  %1405 = vadd.xlane.f32.xlu0 %v1404_v62  ;;  %v1416_v54 = vsel %vm539_vm0, %v319_v36, 0.0  ;;  %v2106_v15 = vld [vmem:[%s10946_s1 + $0xe8] sm:$0xff]  ;;  %v2092_v36 = vld [vmem:[%s10946_s1 + $0x78] sm:$0xff] }
 0x244   :  { %v1199_v19 = vpop.xlane.xlu1 %1198  ;;  %v3952_v20 = vsel %vm2912_vm9, %v3951_v18, %v3947_v14  ;;  %v1196_v21 = vpop.xlane.xlu0 %1195  ;;  %v321_v18 = vld [vmem:[%s10945_s0 + $0x930] sm:$0xff]  ;;  %6318 = vmatpush3.bf16.msra.mxu0 %v6317_v43  ;;  %v6319_v4 = vpack.c.bf16 %v2106_v15, %v2105_v60  ;;  %v6325_v37 = vpack.c.bf16 %v2092_v36, %v2091_v34  ;;  %v1431_v43 = vsel %vm539_vm0, %v324_v27, 0.0 }
 0x245   :  { %v3961_v28 = vrot.slane %v1199_v19, %v6987_v23  ;;  %v3956_v33 = vrot.slane %v1196_v21, %v6999_v29  ;;  %v1422_v19 = vsel %vm539_vm0, %v321_v18, 0.0  ;;  %v2108_v21 = vld [vmem:[%s10946_s1 + $0xf8] sm:$0xff]  ;;  %v325_v60 = vld [vmem:[%s10945_s0 + $0x950] sm:$0xff] }
 0x246   :  { %6320 = vmatprep.subr.bf16.mxu0 %v6319_v4  ;;  %v1434_v18 = vsel %vm539_vm0, %v325_v60, 0.0 }
 0x247   :  { %v3957_v41 = vsel %vm10951_vm10, %v3956_v33, %v3952_v20  ;;  %1414 = vadd.xlane.f32.xlu1 %v1413_v22  ;;  %1411 = vadd.xlane.f32.xlu0 %v1410_v24  ;;  %v2107_v20 = vld [vmem:[%s10946_s1 + $0xf0] sm:$0xff] }
 0x248   :  { %v1205_v45 = vpop.xlane.xlu1 %1204  ;;  %v3962_v47 = vsel %vm2926_vm11, %v3961_v28, %v3957_v41  ;;  %v1202_v49 = vpop.xlane.xlu0 %1201  ;;  %v323_v28 = vld [vmem:[%s10945_s0 + $0x940] sm:$0xff]  ;;  %6322 = vmatpush3.bf16.msra.mxu0 %v6321_v9  ;;  %v6323_v33 = vpack.c.bf16 %v2108_v21, %v2107_v20 }
 0x249   :  { %v3971_v62 = vrot.slane %v1205_v45, %v7013_v46  ;;  %v3966_v0 = vrot.slane %v1202_v49, %v7007_v42  ;;  %v1428_v45 = vsel %vm539_vm0, %v323_v28, 0.0 }
 0x24a   :  { %6324 = vmatprep.subr.bf16.mxu0 %v6323_v33 }
 0x24b   :  { %v3967_v8 = vsel %vm10949_vm12, %v3966_v0, %v3962_v47  ;;  %1420 = vadd.xlane.f32.xlu1 %v1419_v53  ;;  %1417 = vadd.xlane.f32.xlu0 %v1416_v54  ;;  %v326_v54 = vld [vmem:[%s10945_s0 + $0x958] sm:$0xff] }
 0x24c   :  { %v1211_v11 = vpop.xlane.xlu1 %1210  ;;  %v1208_v14 = vpop.xlane.xlu0 %1207  ;;  %v3972_v22 = vsel %vm2940_vm13, %v3971_v62, %v3967_v8  ;;  %6326 = vmatpush3.bf16.msra.mxu0 %v6325_v37  ;;  %v1437_v3 = vsel %vm539_vm0, %v326_v54, 0.0  ;;  %v327_v8 = vld [vmem:[%s10945_s0 + $0x960] sm:$0xff] }
 0x24d   :  { %v3981_v24 = vrot.slane %v1211_v11, %v7032_v61  ;;  %v3976_v26 = vrot.slane %v1208_v14, %v7027_v59  ;;  %v1440_v20 = vsel %vm539_vm0, %v327_v8, 0.0 }
 0x24f   :  { %1426 = vadd.xlane.f32.xlu1 %v1425_v16  ;;  %1423 = vadd.xlane.f32.xlu0 %v1422_v19  ;;  %v3977_v38 = vsel %vm2947_vm14, %v3976_v26, %v3972_v22  ;;  %v1443_v19 = vsel %vm539_vm0, %v328_v6, 0.0  ;;  %v329_v26 = vld [vmem:[%s10945_s0 + $0x970] sm:$0xff] }
 0x250   :  { %v1217_v39 = vpop.xlane.xlu1 %1216  ;;  %v1214_v41 = vpop.xlane.xlu0 %1213  ;;  %v8413_v47 = vsel %vm2954_vm15, %v3981_v24, %v3977_v38  ;;  %v330_v24 = vld [vmem:[%s10945_s0 + $0x978] sm:$0xff]  ;;  %v1446_v37 = vsel %vm539_vm0, %v329_v26, 0.0 }
 0x251   :  { %10966 = vst [vmem:[#allocation13_spill] sm:$0xff] %v8413_v47  ;;  %v3990_v49 = vrot.slane %v1217_v39, %v6912_v32  ;;  %v3986_v53 = vrot.slane %v1214_v41, %v6906_v30  ;;  %v1449_v36 = vsel %vm539_vm0, %v330_v24, 0.0  ;;  %v332_v41 = vld [vmem:[%s10945_s0 + $0x988] sm:$0xff] }
 0x252   :  { %v1455_v60 = vsel %vm539_vm0, %v332_v41, 0.0 }
 0x253   :  { %v3991_v15 = vsel %vm2856_vm1, %v3990_v49, %v3986_v53  ;;  %1432 = vadd.xlane.f32.xlu1 %v1431_v43  ;;  %1429 = vadd.xlane.f32.xlu0 %v1428_v45  ;;  %v331_v43 = vld [vmem:[%s10945_s0 + $0x980] sm:$0xff] }
 0x254   :  { %v1223_v62 = vpop.xlane.xlu1 %1222  ;;  %v1220_v0 = vpop.xlane.xlu0 %1219 }
 0x255   :  { %v4000_v4 = vrot.slane %v1223_v62, %v6909_v31  ;;  %v3995_v5 = vrot.slane %v1220_v0, %v6919_v35 }
 0x257   :  { %v3996_v9 = vsel %vm2863_vm2, %v3995_v5, %v3991_v15  ;;  %1438 = vadd.xlane.f32.xlu1 %v1437_v3  ;;  %1435 = vadd.xlane.f32.xlu0 %v1434_v18  ;;  %v1452_v15 = vsel %vm539_vm0, %v331_v43, 0.0  ;;  %v334_v3 = vld [vmem:[%s10945_s0 + $0x998] sm:$0xff]  ;;  %v333_v18 = vld [vmem:[%s10945_s0 + $0x990] sm:$0xff] }
 0x258   :  { %v1229_v11 = vpop.xlane.xlu1 %1228  ;;  %v4001_v14 = vsel %vm2870_vm3, %v4000_v4, %v3996_v9  ;;  %v1226_v16 = vpop.xlane.xlu0 %1225  ;;  %v1461_v9 = vsel %vm539_vm0, %v334_v3, 0.0 }
 0x259   :  { %v4010_v21 = vrot.slane %v1229_v11, %v6924_v40  ;;  %v4005_v22 = vrot.slane %v1226_v16, %v6938_v48  ;;  %v1458_v11 = vsel %vm539_vm0, %v333_v18, 0.0 }
 0x25b   :  { %v4006_v27 = vsel %vm2877_vm4, %v4005_v22, %v4001_v14  ;;  %1444 = vadd.xlane.f32.xlu1 %v1443_v19  ;;  %1441 = vadd.xlane.f32.xlu0 %v1440_v20  ;;  %v336_v19 = vld [vmem:[%s10945_s0 + $0x9a8] sm:$0xff]  ;;  %v335_v20 = vld [vmem:[%s10945_s0 + $0x9a0] sm:$0xff] }
 0x25c   :  { %v1235_v28 = vpop.xlane.xlu1 %1234  ;;  %v4011_v33 = vsel %vm2884_vm5, %v4010_v21, %v4006_v27  ;;  %v1232_v34 = vpop.xlane.xlu0 %1231  ;;  %v1467_v27 = vsel %vm539_vm0, %v336_v19, 0.0 }
 0x25d   :  { %v4020_v38 = vrot.slane %v1235_v28, %v6946_v56  ;;  %v4015_v39 = vrot.slane %v1232_v34, %v6949_v57  ;;  %v1464_v28 = vsel %vm539_vm0, %v335_v20, 0.0  ;;  %v2109_v20 = vld [vmem:[%s10946_s1 + $0x100] sm:$0xff] }
 0x25f   :  { %v4016_v45 = vsel %vm2891_vm6, %v4015_v39, %v4011_v33  ;;  %1450 = vadd.xlane.f32.xlu1 %v1449_v36  ;;  %1447 = vadd.xlane.f32.xlu0 %v1446_v37  ;;  %v338_v36 = vld [vmem:[%s10945_s0 + $0x9b8] sm:$0xff]  ;;  %v337_v37 = vld [vmem:[%s10945_s0 + $0x9b0] sm:$0xff] }
 0x260   :  { %v1241_v49 = vpop.xlane.xlu1 %1240  ;;  %v4021_v53 = vsel %vm2898_vm7, %v4020_v38, %v4016_v45  ;;  %v1238_v54 = vpop.xlane.xlu0 %1237  ;;  %v1473_v45 = vsel %vm539_vm0, %v338_v36, 0.0 }
 0x261   :  { %v4030_v62 = vrot.slane %v1241_v49, %v6967_v7  ;;  %v4025_v0 = vrot.slane %v1238_v54, %v6979_v13  ;;  %v1470_v49 = vsel %vm539_vm0, %v337_v37, 0.0 }
 0x263   :  { %v4026_v4 = vsel %vm10950_vm8, %v4025_v0, %v4021_v53  ;;  %1456 = vadd.xlane.f32.xlu1 %v1455_v60  ;;  %1453 = vadd.xlane.f32.xlu0 %v1452_v15  ;;  %v340_v60 = vld [vmem:[%s10945_s0 + $0x9c8] sm:$0xff]  ;;  %v339_v15 = vld [vmem:[%s10945_s0 + $0x9c0] sm:$0xff] }
 0x264   :  { %v1247_v5 = vpop.xlane.xlu1 %1246  ;;  %v4031_v6 = vsel %vm2912_vm9, %v4030_v62, %v4026_v4  ;;  %v1244_v8 = vpop.xlane.xlu0 %1243  ;;  %v1479_v18 = vsel %vm539_vm0, %v340_v60, 0.0  ;;  %v1476_v4 = vsel %vm539_vm0, %v339_v15, 0.0 }
 0x265   :  { %v4040_v14 = vrot.slane %v1247_v5, %v6987_v23  ;;  %v4035_v16 = vrot.slane %v1244_v8, %v6999_v29  ;;  %v342_v5 = vld [vmem:[%s10945_s0 + $0x9d8] sm:$0xff] }
 0x267   :  { %v4036_v21 = vsel %vm10951_vm10, %v4035_v16, %v4031_v6  ;;  %1462 = vadd.xlane.f32.xlu1 %v1461_v9  ;;  %1459 = vadd.xlane.f32.xlu0 %v1458_v11  ;;  %v341_v11 = vld [vmem:[%s10945_s0 + $0x9d0] sm:$0xff]  ;;  %v2126_v16 = vld [vmem:[%s10946_s1 + $0x188] sm:$0xff] }
 0x268   :  { %v1253_v22 = vpop.xlane.xlu1 %1252  ;;  %v4041_v24 = vsel %vm2926_vm11, %v4040_v14, %v4036_v21  ;;  %v1250_v26 = vpop.xlane.xlu0 %1249  ;;  %v2125_v14 = vld [vmem:[%s10946_s1 + $0x180] sm:$0xff] }
 0x269   :  { %v4050_v33 = vrot.slane %v1253_v22, %v7013_v46  ;;  %v4045_v34 = vrot.slane %v1250_v26, %v7007_v42  ;;  %v6327_v19 = vpack.c.bf16 %v2126_v16, %v2125_v14  ;;  %v2110_v22 = vld [vmem:[%s10946_s1 + $0x108] sm:$0xff]  ;;  %v2113_v16 = vld [vmem:[%s10946_s1 + $0x120] sm:$0xff] }
 0x26b   :  { %v4046_v38 = vsel %vm10949_vm12, %v4045_v34, %v4041_v24  ;;  %1468 = vadd.xlane.f32.xlu1 %v1467_v27  ;;  %1465 = vadd.xlane.f32.xlu0 %v1464_v28  ;;  %v1485_v27 = vsel %vm539_vm0, %v342_v5, 0.0  ;;  %v1482_v28 = vsel %vm539_vm0, %v341_v11, 0.0  ;;  %v6329_v34 = vpack.c.bf16 %v2110_v22, %v2109_v20  ;;  %v2130_v11 = vld [vmem:[%s10946_s1 + $0x1a8] sm:$0xff] }
 0x26c   :  { %v1259_v39 = vpop.xlane.xlu1 %1258  ;;  %v4051_v41 = vsel %vm2940_vm13, %v4050_v33, %v4046_v38  ;;  %v1256_v43 = vpop.xlane.xlu0 %1255  ;;  %v344_v33 = vld [vmem:[%s10945_s0 + $0x9e8] sm:$0xff]  ;;  %6328 = vmatprep.subr.bf16.mxu1 %v6327_v19  ;;  %v343_v38 = vld [vmem:[%s10945_s0 + $0x9e0] sm:$0xff] }
 0x26d   :  { %v4060_v53 = vrot.slane %v1259_v39, %v7032_v61  ;;  %v4055_v54 = vrot.slane %v1256_v43, %v7027_v59  ;;  %v2127_v39 = vld [vmem:[%s10946_s1 + $0x190] sm:$0xff]  ;;  %6330 = vmatpush3.bf16.msra.mxu1 %v6329_v34  ;;  %v2114_v20 = vld [vmem:[%s10946_s1 + $0x128] sm:$0xff] }
 0x26f   :  { %v4056_v62 = vsel %vm2947_vm14, %v4055_v54, %v4051_v41  ;;  %1474 = vadd.xlane.f32.xlu1 %v1473_v45  ;;  %1471 = vadd.xlane.f32.xlu0 %v1470_v49  ;;  %v2128_v41 = vld [vmem:[%s10946_s1 + $0x198] sm:$0xff]  ;;  %v2111_v45 = vld [vmem:[%s10946_s1 + $0x110] sm:$0xff] }
 0x270   :  { %v1265_v0 = vpop.xlane.xlu1 %1264  ;;  %v1262_v3 = vpop.xlane.xlu0 %1261  ;;  %v8513_v6 = vsel %vm2954_vm15, %v4060_v53, %v4056_v62  ;;  %v6331_v43 = vpack.c.bf16 %v2128_v41, %v2127_v39  ;;  %v2112_v53 = vld [vmem:[%s10946_s1 + $0x118] sm:$0xff]  ;;  %v1491_v62 = vsel %vm539_vm0, %v344_v33, 0.0  ;;  %v6337_v33 = vpack.c.bf16 %v2114_v20, %v2113_v16 }
 0x271   :  { %10967 = vst [vmem:[#allocation14_spill] sm:$0xff] %v8513_v6  ;;  %v4069_v8 = vrot.slane %v1265_v0, %v6912_v32  ;;  %v4065_v9 = vrot.slane %v1262_v3, %v6906_v30  ;;  %v1488_v0 = vsel %vm539_vm0, %v343_v38, 0.0  ;;  %v346_v3 = vld [vmem:[%s10945_s0 + $0x9f8] sm:$0xff]  ;;  %v2131_v38 = vld [vmem:[%s10946_s1 + $0x1b0] sm:$0xff] }
 0x272   :  { %6332 = vmatprep.subr.bf16.mxu1 %v6331_v43  ;;  %v2132_v39 = vld [vmem:[%s10946_s1 + $0x1b8] sm:$0xff]  ;;  %v2115_v43 = vld [vmem:[%s10946_s1 + $0x130] sm:$0xff] }
 0x273   :  { %v4070_v21 = vsel %vm2856_vm1, %v4069_v8, %v4065_v9  ;;  %1480 = vadd.xlane.f32.xlu1 %v1479_v18  ;;  %1477 = vadd.xlane.f32.xlu0 %v1476_v4  ;;  %v6333_v18 = vpack.c.bf16 %v2112_v53, %v2111_v45  ;;  %v345_v8 = vld [vmem:[%s10945_s0 + $0x9f0] sm:$0xff]  ;;  %v2129_v9 = vld [vmem:[%s10946_s1 + $0x1a0] sm:$0xff]  ;;  %v6339_v41 = vpack.c.bf16 %v2132_v39, %v2131_v38  ;;  %v2136_v38 = vld [vmem:[%s10946_s1 + $0x1d8] sm:$0xff] }
 0x274   :  { %v1271_v24 = vpop.xlane.xlu1 %1270  ;;  %v1268_v26 = vpop.xlane.xlu0 %1267  ;;  %v6335_v14 = vpack.c.bf16 %v2130_v11, %v2129_v9  ;;  %v2134_v9 = vld [vmem:[%s10946_s1 + $0x1c8] sm:$0xff] }
 0x275   :  { %v4079_v36 = vrot.slane %v1271_v24, %v6909_v31  ;;  %v4074_v37 = vrot.slane %v1268_v26, %v6919_v35  ;;  %6334 = vmatpush3.bf16.msra.mxu1 %v6333_v18  ;;  %v1497_v26 = vsel %vm539_vm0, %v346_v3, 0.0 }
 0x276   :  { %6336 = vmatprep.subr.bf16.mxu1 %v6335_v14  ;;  %v2117_v14 = vld [vmem:[%s10946_s1 + $0x140] sm:$0xff] }
 0x277   :  { %v4075_v49 = vsel %vm2863_vm2, %v4074_v37, %v4070_v21  ;;  %1486 = vadd.xlane.f32.xlu1 %v1485_v27  ;;  %1483 = vadd.xlane.f32.xlu0 %v1482_v28  ;;  %v1494_v27 = vsel %vm539_vm0, %v345_v8, 0.0  ;;  %v348_v28 = vld [vmem:[%s10945_s0 + $0xa08] sm:$0xff]  ;;  %v347_v37 = vld [vmem:[%s10945_s0 + $0xa00] sm:$0xff] }
 0x278   :  { %v1277_v54 = vpop.xlane.xlu1 %1276  ;;  %v4080_v60 = vsel %vm2870_vm3, %v4079_v36, %v4075_v49  ;;  %v1274_v15 = vpop.xlane.xlu0 %1273  ;;  %v2116_v49 = vld [vmem:[%s10946_s1 + $0x138] sm:$0xff]  ;;  %v2133_v8 = vld [vmem:[%s10946_s1 + $0x1c0] sm:$0xff] }
 0x279   :  { %v4089_v4 = vrot.slane %v1277_v54, %v6924_v40  ;;  %v4084_v5 = vrot.slane %v1274_v15, %v6938_v48  ;;  %6338 = vmatpush3.bf16.msra.mxu1 %v6337_v33  ;;  %v1503_v15 = vsel %vm539_vm0, %v348_v28, 0.0  ;;  %v6341_v3 = vpack.c.bf16 %v2116_v49, %v2115_v43 }
 0x27a   :  { %6340 = vmatprep.subr.bf16.mxu1 %v6339_v41  ;;  %v6343_v11 = vpack.c.bf16 %v2134_v9, %v2133_v8  ;;  %v2119_v41 = vld [vmem:[%s10946_s1 + $0x150] sm:$0xff]  ;;  %v2138_v8 = vld [vmem:[%s10946_s1 + $0x1e8] sm:$0xff] }
 0x27b   :  { %v4085_v19 = vsel %vm2877_vm4, %v4084_v5, %v4080_v60  ;;  %1492 = vadd.xlane.f32.xlu1 %v1491_v62  ;;  %1489 = vadd.xlane.f32.xlu0 %v1488_v0  ;;  %v1500_v62 = vsel %vm539_vm0, %v347_v37, 0.0  ;;  %v350_v0 = vld [vmem:[%s10945_s0 + $0xa18] sm:$0xff]  ;;  %v349_v5 = vld [vmem:[%s10945_s0 + $0xa10] sm:$0xff] }
 0x27c   :  { %v1283_v21 = vpop.xlane.xlu1 %1282  ;;  %v4090_v22 = vsel %vm2884_vm5, %v4089_v4, %v4085_v19  ;;  %v1280_v24 = vpop.xlane.xlu0 %1279  ;;  %v2118_v19 = vld [vmem:[%s10946_s1 + $0x148] sm:$0xff]  ;;  %v2135_v37 = vld [vmem:[%s10946_s1 + $0x1d0] sm:$0xff] }
 0x27d   :  { %v4099_v34 = vrot.slane %v1283_v21, %v6946_v56  ;;  %v4094_v36 = vrot.slane %v1280_v24, %v6949_v57  ;;  %6342 = vmatpush3.bf16.msra.mxu1 %v6341_v3  ;;  %v1509_v24 = vsel %vm539_vm0, %v350_v0, 0.0  ;;  %v6345_v28 = vpack.c.bf16 %v2118_v19, %v2117_v14 }
 0x27e   :  { %6344 = vmatprep.subr.bf16.mxu1 %v6343_v11  ;;  %v6347_v39 = vpack.c.bf16 %v2136_v38, %v2135_v37  ;;  %v2121_v11 = vld [vmem:[%s10946_s1 + $0x160] sm:$0xff]  ;;  %v2140_v37 = vld [vmem:[%s10946_s1 + $0x1f8] sm:$0xff] }
 0x27f   :  { %v4095_v45 = vsel %vm2891_vm6, %v4094_v36, %v4090_v22  ;;  %1498 = vadd.xlane.f32.xlu1 %v1497_v26  ;;  %1495 = vadd.xlane.f32.xlu0 %v1494_v27  ;;  %v1506_v26 = vsel %vm539_vm0, %v349_v5, 0.0  ;;  %v364_v27 = vld [vmem:[%s10945_s0 + $0xa88] sm:$0xff]  ;;  %v363_v36 = vld [vmem:[%s10945_s0 + $0xa80] sm:$0xff] }
 0x280   :  { %v1289_v53 = vpop.xlane.xlu1 %1288  ;;  %v4100_v54 = vsel %vm2898_vm7, %v4099_v34, %v4095_v45  ;;  %v1286_v60 = vpop.xlane.xlu0 %1285  ;;  %v2120_v45 = vld [vmem:[%s10946_s1 + $0x158] sm:$0xff]  ;;  %v2137_v5 = vld [vmem:[%s10946_s1 + $0x1e0] sm:$0xff] }
 0x281   :  { %v4109_v18 = vrot.slane %v1289_v53, %v6967_v7  ;;  %v4104_v4 = vrot.slane %v1286_v60, %v6979_v13  ;;  %6346 = vmatpush3.bf16.msra.mxu1 %v6345_v28  ;;  %v1551_v60 = vsel %vm539_vm0, %v364_v27, 0.0  ;;  %v6349_v0 = vpack.c.bf16 %v2120_v45, %v2119_v41  ;;  %v2124_v41 = vld [vmem:[%s10946_s1 + $0x178] sm:$0xff] }
 0x282   :  { %6348 = vmatprep.subr.bf16.mxu1 %v6347_v39  ;;  %v6351_v9 = vpack.c.bf16 %v2138_v8, %v2137_v5  ;;  %v2123_v39 = vld [vmem:[%s10946_s1 + $0x170] sm:$0xff] }
 0x283   :  { %v4105_v16 = vsel %vm10950_vm8, %v4104_v4, %v4100_v54  ;;  %1504 = vadd.xlane.f32.xlu1 %v1503_v15  ;;  %1501 = vadd.xlane.f32.xlu0 %v1500_v62  ;;  %v1548_v15 = vsel %vm539_vm0, %v363_v36, 0.0  ;;  %v366_v62 = vld [vmem:[%s10945_s0 + $0xa98] sm:$0xff]  ;;  %v365_v4 = vld [vmem:[%s10945_s0 + $0xa90] sm:$0xff] }
 0x284   :  { %v1295_v20 = vpop.xlane.xlu1 %1294  ;;  %v4110_v21 = vsel %vm2912_vm9, %v4109_v18, %v4105_v16  ;;  %v1292_v22 = vpop.xlane.xlu0 %1291  ;;  %v2122_v16 = vld [vmem:[%s10946_s1 + $0x168] sm:$0xff]  ;;  %v2139_v36 = vld [vmem:[%s10946_s1 + $0x1f0] sm:$0xff] }
 0x285   :  { %v4119_v33 = vrot.slane %v1295_v20, %v6987_v23  ;;  %v4114_v34 = vrot.slane %v1292_v22, %v6999_v29  ;;  %6350 = vmatpush3.bf16.msra.mxu1 %v6349_v0  ;;  %v1554_v22 = vsel %vm539_vm0, %v365_v4, 0.0  ;;  %v6355_v38 = vpack.c.bf16 %v2140_v37, %v2139_v36  ;;  %v367_v0 = vld [vmem:[%s10945_s0 + $0xaa0] sm:$0xff]  ;;  %v397_v8 = vld [vmem:[%s10945_s0 + $0xb90] sm:$0xff] }
 0x286   :  { %6352 = vmatprep.subr.bf16.mxu1 %v6351_v9  ;;  %v1560_v5 = vsel %vm539_vm0, %v367_v0, 0.0  ;;  %v380_v9 = vld [vmem:[%s10945_s0 + $0xb08] sm:$0xff]  ;;  %v382_v0 = vld [vmem:[%s10945_s0 + $0xb18] sm:$0xff] }
 0x287   :  { %v4115_v43 = vsel %vm10951_vm10, %v4114_v34, %v4110_v21  ;;  %1510 = vadd.xlane.f32.xlu1 %v1509_v24  ;;  %1507 = vadd.xlane.f32.xlu0 %v1506_v26  ;;  %v1557_v21 = vsel %vm539_vm0, %v366_v62, 0.0  ;;  %v396_v24 = vld [vmem:[%s10945_s0 + $0xb88] sm:$0xff]  ;;  %v6353_v26 = vpack.c.bf16 %v2122_v16, %v2121_v11  ;;  %v395_v34 = vld [vmem:[%s10945_s0 + $0xb80] sm:$0xff]  ;;  %v1650_v16 = vsel %vm539_vm0, %v397_v8, 0.0 }
 0x288   :  { %v1301_v49 = vpop.xlane.xlu1 %1300  ;;  %v4120_v53 = vsel %vm2926_vm11, %v4119_v33, %v4115_v43  ;;  %v1298_v54 = vpop.xlane.xlu0 %1297  ;;  %v6357_v43 = vpack.c.bf16 %v2124_v41, %v2123_v39  ;;  %v379_v62 = vld [vmem:[%s10945_s0 + $0xb00] sm:$0xff]  ;;  %v369_v39 = vld [vmem:[%s10945_s0 + $0xab0] sm:$0xff]  ;;  %v352_v41 = vld [vmem:[%s10945_s0 + $0xa28] sm:$0xff] }
 0x289   :  { %v4129_v3 = vrot.slane %v1301_v49, %v7013_v46  ;;  %v4124_v18 = vrot.slane %v1298_v54, %v7007_v42  ;;  %6354 = vmatpush3.bf16.msra.mxu1 %v6353_v26  ;;  %v1647_v54 = vsel %vm539_vm0, %v396_v24, 0.0  ;;  %v1596_v4 = vsel %vm539_vm0, %v379_v62, 0.0  ;;  %v399_v62 = vld [vmem:[%s10945_s0 + $0xba0] sm:$0xff] }
 0x28a   :  { %6356 = vmatprep.subr.bf16.mxu1 %v6355_v38  ;;  %v1656_v8 = vsel %vm539_vm0, %v399_v62, 0.0 }
 0x28b   :  { %v4125_v14 = vsel %vm10949_vm12, %v4124_v18, %v4120_v53  ;;  %1552 = vadd.xlane.f32.xlu1 %v1551_v60  ;;  %1549 = vadd.xlane.f32.xlu0 %v1548_v15  ;;  %v1644_v60 = vsel %vm539_vm0, %v395_v34, 0.0 }
 0x28c   :  { %v1307_v19 = vpop.xlane.xlu1 %1306  ;;  %v1304_v20 = vpop.xlane.xlu0 %1303  ;;  %v4130_v27 = vsel %vm2940_vm13, %v4129_v3, %v4125_v14 }
 0x28d   :  { %v4139_v28 = vrot.slane %v1307_v19, %v7032_v61  ;;  %v4134_v33 = vrot.slane %v1304_v20, %v7027_v59  ;;  %6358 = vmatpush3.bf16.msra.mxu1 %v6357_v43  ;;  %v1599_v19 = vsel %vm539_vm0, %v380_v9, 0.0  ;;  %v368_v20 = vld [vmem:[%s10945_s0 + $0xaa8] sm:$0xff]  ;;  %v1605_v9 = vsel %vm539_vm0, %v382_v0, 0.0  ;;  %v371_v0 = vld [vmem:[%s10945_s0 + $0xac0] sm:$0xff] }
 0x28e   :  { %v1563_v26 = vsel %vm539_vm0, %v368_v20, 0.0 }
 0x28f   :  { %1558 = vadd.xlane.f32.xlu1 %v1557_v21  ;;  %1555 = vadd.xlane.f32.xlu0 %v1554_v22  ;;  %v4135_v45 = vsel %vm2947_vm14, %v4134_v33, %v4130_v27  ;;  %v351_v21 = vld [vmem:[%s10945_s0 + $0xa20] sm:$0xff]  ;;  %v381_v33 = vld [vmem:[%s10945_s0 + $0xb10] sm:$0xff] }
 0x290   :  { %v8700_v49 = vpop.xlane.xlu1 %1312  ;;  %v8702_v53 = vpop.xlane.xlu0 %1309  ;;  %v8707_v15 = vsel %vm2954_vm15, %v4139_v28, %v4135_v45  ;;  %v1512_v27 = vsel %vm539_vm0, %v351_v21, 0.0  ;;  %v398_v28 = vld [vmem:[%s10945_s0 + $0xb98] sm:$0xff]  ;;  %v1602_v38 = vsel %vm539_vm0, %v381_v33, 0.0  ;;  %v383_v33 = vld [vmem:[%s10945_s0 + $0xb20] sm:$0xff] }
 0x291   :  { %10968 = vst [vmem:[#allocation15_spill] sm:$0xff] %v8707_v15  ;;  %v1653_v37 = vsel %vm539_vm0, %v398_v28, 0.0  ;;  %v400_v28 = vld [vmem:[%s10945_s0 + $0xba8] sm:$0xff] }
 0x293   :  { %1648 = vadd.xlane.f32.xlu1 %v1647_v54  ;;  %1645 = vadd.xlane.f32.xlu0 %v1644_v60  ;;  %v1566_v54 = vsel %vm539_vm0, %v369_v39, 0.0  ;;  %v1515_v60 = vsel %vm539_vm0, %v352_v41, 0.0 }
 0x294   :  { %v8715_v3 = vpop.xlane.xlu1 %1318  ;;  %v8717_v18 = vpop.xlane.xlu0 %1315 }
 0x295   :  { %v4153_v62 = vrot.slane %v8717_v18, %v6919_v35 }
 0x297   :  { %1597 = vadd.xlane.f32.xlu1 %v1596_v4  ;;  %1561 = vadd.xlane.f32.xlu0 %v1560_v5 }
 0x298   :  { %v8727_v11 = vpop.xlane.xlu1 %1324  ;;  %v8729_v14 = vpop.xlane.xlu0 %1321 }
 0x29b   :  { %1651 = vadd.xlane.f32.xlu1 %v1650_v16  ;;  %1600 = vadd.xlane.f32.xlu0 %v1599_v19  ;;  %v370_v16 = vld [vmem:[%s10945_s0 + $0xab8] sm:$0xff]  ;;  %v353_v19 = vld [vmem:[%s10945_s0 + $0xa30] sm:$0xff] }
 0x29c   :  { %v8739_v22 = vpop.xlane.xlu1 %1330  ;;  %v8741_v24 = vpop.xlane.xlu0 %1327 }
 0x29f   :  { %1564 = vadd.xlane.f32.xlu1 %v1563_v26  ;;  %1513 = vadd.xlane.f32.xlu0 %v1512_v27  ;;  %v1569_v26 = vsel %vm539_vm0, %v370_v16, 0.0  ;;  %v1518_v27 = vsel %vm539_vm0, %v353_v19, 0.0  ;;  %v4158_v16 = vrot.slane %v8715_v3, %v6909_v31  ;;  %v384_v3 = vld [vmem:[%s10945_s0 + $0xb28] sm:$0xff] }
 0x2a0   :  { %v8751_v34 = vpop.xlane.xlu1 %1336  ;;  %v8753_v36 = vpop.xlane.xlu0 %1333 }
 0x2a3   :  { %1654 = vadd.xlane.f32.xlu1 %v1653_v37  ;;  %1603 = vadd.xlane.f32.xlu0 %v1602_v38  ;;  %v4148_v37 = vrot.slane %v8700_v49, %v6912_v32  ;;  %v4144_v38 = vrot.slane %v8702_v53, %v6906_v30  ;;  %v354_v49 = vld [vmem:[%s10945_s0 + $0xa38] sm:$0xff] }
 0x2a4   :  { %v8763_v43 = vpop.xlane.xlu1 %1342  ;;  %v8765_v45 = vpop.xlane.xlu0 %1339 }
 0x2a7   :  { %1567 = vadd.xlane.f32.xlu1 %v1566_v54  ;;  %1516 = vadd.xlane.f32.xlu0 %v1515_v60  ;;  %v1659_v54 = vsel %vm539_vm0, %v400_v28, 0.0  ;;  %v1608_v60 = vsel %vm539_vm0, %v383_v33, 0.0  ;;  %v4163_v33 = vrot.slane %v8729_v14, %v6938_v48  ;;  %v4168_v14 = vrot.slane %v8727_v11, %v6924_v40  ;;  %v355_v11 = vld [vmem:[%s10945_s0 + $0xa40] sm:$0xff] }
 0x2a8   :  { %v8775_v4 = vpop.xlane.xlu1 %1348  ;;  %v8777_v5 = vpop.xlane.xlu0 %1345 }
 0x2ab   :  { %1657 = vadd.xlane.f32.xlu1 %v1656_v8  ;;  %1606 = vadd.xlane.f32.xlu0 %v1605_v9  ;;  %v4149_v9 = vsel %vm2856_vm1, %v4148_v37, %v4144_v38  ;;  %v401_v37 = vld [vmem:[%s10945_s0 + $0xbb0] sm:$0xff] }
 0x2ac   :  { %v8787_v20 = vpop.xlane.xlu1 %1354  ;;  %v8789_v21 = vpop.xlane.xlu0 %1351  ;;  %v4154_v28 = vsel %vm2863_vm2, %v4153_v62, %v4149_v9  ;;  %v1611_v9 = vsel %vm539_vm0, %v384_v3, 0.0  ;;  %v1524_v3 = vsel %vm539_vm0, %v355_v11, 0.0  ;;  %v4193_v11 = vrot.slane %v8765_v45, %v6999_v29 }
 0x2ad   :  { %v4198_v45 = vrot.slane %v8763_v43, %v6987_v23  ;;  %v386_v43 = vld [vmem:[%s10945_s0 + $0xb38] sm:$0xff] }
 0x2af   :  { %1570 = vadd.xlane.f32.xlu1 %v1569_v26  ;;  %1519 = vadd.xlane.f32.xlu0 %v1518_v27  ;;  %v1572_v26 = vsel %vm539_vm0, %v371_v0, 0.0  ;;  %v1521_v27 = vsel %vm539_vm0, %v354_v49, 0.0  ;;  %v1662_v49 = vsel %vm539_vm0, %v401_v37, 0.0 }
 0x2b0   :  { %v1361_v39 = vpop.xlane.xlu1 %1360  ;;  %v1358_v41 = vpop.xlane.xlu0 %1357 }
 0x2b1   :  { %v4227_v8 = vrot.slane %v1361_v39, %v6912_v32  ;;  %v4223_v53 = vrot.slane %v1358_v41, %v6906_v30 }
 0x2b3   :  { %1660 = vadd.xlane.f32.xlu1 %v1659_v54  ;;  %1609 = vadd.xlane.f32.xlu0 %v1608_v60  ;;  %v4228_v38 = vsel %vm2856_vm1, %v4227_v8, %v4223_v53  ;;  %v4159_v60 = vsel %vm2870_vm3, %v4158_v16, %v4154_v28  ;;  %v4173_v8 = vrot.slane %v8741_v24, %v6949_v57 }
 0x2b4   :  { %v1367_v18 = vpop.xlane.xlu1 %1366  ;;  %v1364_v19 = vpop.xlane.xlu0 %1363  ;;  %v4178_v24 = vrot.slane %v8739_v22, %v6946_v56  ;;  %v385_v22 = vld [vmem:[%s10945_s0 + $0xb30] sm:$0xff] }
 0x2b5   :  { %v4232_v39 = vrot.slane %v1364_v19, %v6919_v35  ;;  %v4237_v41 = vrot.slane %v1367_v18, %v6909_v31  ;;  %v4164_v19 = vsel %vm2877_vm4, %v4163_v33, %v4159_v60  ;;  %v372_v18 = vld [vmem:[%s10945_s0 + $0xac8] sm:$0xff]  ;;  %v402_v60 = vld [vmem:[%s10945_s0 + $0xbb8] sm:$0xff] }
 0x2b6   :  { %v4169_v28 = vsel %vm2884_vm5, %v4168_v14, %v4164_v19  ;;  %v1575_v37 = vsel %vm539_vm0, %v372_v18, 0.0 }
 0x2b7   :  { %v4233_v54 = vsel %vm2863_vm2, %v4232_v39, %v4228_v38  ;;  %1573 = vadd.xlane.f32.xlu1 %v1572_v26  ;;  %1522 = vadd.xlane.f32.xlu0 %v1521_v27  ;;  %v4174_v38 = vsel %vm2891_vm6, %v4173_v8, %v4169_v28  ;;  %v1665_v8 = vsel %vm539_vm0, %v402_v60, 0.0 }
 0x2b8   :  { %v1373_v62 = vpop.xlane.xlu1 %1372  ;;  %v1370_v0 = vpop.xlane.xlu0 %1369  ;;  %v4238_v26 = vsel %vm2870_vm3, %v4237_v41, %v4233_v54  ;;  %v4183_v41 = vrot.slane %v8753_v36, %v6979_v13  ;;  %v4188_v36 = vrot.slane %v8751_v34, %v6967_v7  ;;  %v356_v34 = vld [vmem:[%s10945_s0 + $0xa48] sm:$0xff] }
 0x2b9   :  { %v4242_v53 = vrot.slane %v1370_v0, %v6938_v48  ;;  %v4247_v16 = vrot.slane %v1373_v62, %v6924_v40 }
 0x2bb   :  { %v4243_v27 = vsel %vm2877_vm4, %v4242_v53, %v4238_v26  ;;  %1663 = vadd.xlane.f32.xlu1 %v1662_v49  ;;  %1612 = vadd.xlane.f32.xlu0 %v1611_v9  ;;  %v4179_v49 = vsel %vm2898_vm7, %v4178_v24, %v4174_v38  ;;  %v1614_v53 = vsel %vm539_vm0, %v385_v22, 0.0  ;;  %v373_v26 = vld [vmem:[%s10945_s0 + $0xad0] sm:$0xff]  ;;  %v1527_v38 = vsel %vm539_vm0, %v356_v34, 0.0  ;;  %v403_v22 = vld [vmem:[%s10945_s0 + $0xbc0] sm:$0xff] }
 0x2bc   :  { %v1379_v33 = vpop.xlane.xlu1 %1378  ;;  %v1376_v39 = vpop.xlane.xlu0 %1375  ;;  %v4248_v62 = vsel %vm2884_vm5, %v4247_v16, %v4243_v27  ;;  %v4184_v18 = vsel %vm10950_vm8, %v4183_v41, %v4179_v49 }
 0x2bd   :  { %v4252_v54 = vrot.slane %v1376_v39, %v6949_v57  ;;  %v4257_v14 = vrot.slane %v1379_v33, %v6946_v56  ;;  %v4189_v33 = vsel %vm2912_vm9, %v4188_v36, %v4184_v18  ;;  %v4213_v18 = vrot.slane %v8789_v21, %v7027_v59 }
 0x2be   :  { %v4194_v41 = vsel %vm10951_vm10, %v4193_v11, %v4189_v33  ;;  %v4218_v21 = vrot.slane %v8787_v20, %v7032_v61  ;;  %v387_v20 = vld [vmem:[%s10945_s0 + $0xb40] sm:$0xff] }
 0x2bf   :  { %v4253_v0 = vsel %vm2891_vm6, %v4252_v54, %v4248_v62  ;;  %1576 = vadd.xlane.f32.xlu1 %v1575_v37  ;;  %1525 = vadd.xlane.f32.xlu0 %v1524_v3  ;;  %v1578_v3 = vsel %vm539_vm0, %v373_v26, 0.0  ;;  %v4203_v54 = vrot.slane %v8777_v5, %v7007_v42  ;;  %v4208_v5 = vrot.slane %v8775_v4, %v7013_v46  ;;  %v357_v4 = vld [vmem:[%s10945_s0 + $0xa50] sm:$0xff] }
 0x2c0   :  { %v1385_v9 = vpop.xlane.xlu1 %1384  ;;  %v1382_v19 = vpop.xlane.xlu0 %1381  ;;  %v4258_v24 = vsel %vm2898_vm7, %v4257_v14, %v4253_v0  ;;  %v4199_v36 = vsel %vm2926_vm11, %v4198_v45, %v4194_v41  ;;  %v1530_v33 = vsel %vm539_vm0, %v357_v4, 0.0 }
 0x2c1   :  { %v4262_v16 = vrot.slane %v1382_v19, %v6979_v13  ;;  %v4267_v27 = vrot.slane %v1385_v9, %v6967_v7  ;;  %v1668_v19 = vsel %vm539_vm0, %v403_v22, 0.0 }
 0x2c3   :  { %v4263_v28 = vsel %vm10950_vm8, %v4262_v16, %v4258_v24  ;;  %1666 = vadd.xlane.f32.xlu1 %v1665_v8  ;;  %1615 = vadd.xlane.f32.xlu0 %v1614_v53  ;;  %v1617_v8 = vsel %vm539_vm0, %v386_v43, 0.0  ;;  %v4204_v53 = vsel %vm10949_vm12, %v4203_v54, %v4199_v36  ;;  %v374_v16 = vld [vmem:[%s10945_s0 + $0xad8] sm:$0xff] }
 0x2c4   :  { %v1391_v39 = vpop.xlane.xlu1 %1390  ;;  %v1388_v37 = vpop.xlane.xlu0 %1387  ;;  %v4268_v62 = vsel %vm2912_vm9, %v4267_v27, %v4263_v28  ;;  %v1581_v45 = vsel %vm539_vm0, %v374_v16, 0.0  ;;  %v388_v16 = vld [vmem:[%s10945_s0 + $0xb48] sm:$0xff] }
 0x2c5   :  { %v4272_v60 = vrot.slane %v1388_v37, %v6999_v29  ;;  %v4277_v14 = vrot.slane %v1391_v39, %v6987_v23  ;;  %v4209_v39 = vsel %vm2940_vm13, %v4208_v5, %v4204_v53 }
 0x2c6   :  { %v4214_v41 = vsel %vm2947_vm14, %v4213_v18, %v4209_v39  ;;  %v406_v39 = vld [vmem:[%s10945_s0 + $0xbd8] sm:$0xff] }
 0x2c7   :  { %v4273_v0 = vsel %vm10951_vm10, %v4272_v60, %v4268_v62  ;;  %1579 = vadd.xlane.f32.xlu1 %v1578_v3  ;;  %1528 = vadd.xlane.f32.xlu0 %v1527_v38  ;;  %v404_v38 = vld [vmem:[%s10945_s0 + $0xbc8] sm:$0xff]  ;;  %v4219_v5 = vsel %vm2954_vm15, %v4218_v21, %v4214_v41  ;;  %v359_v21 = vld [vmem:[%s10945_s0 + $0xa60] sm:$0xff] }
 0x2c8   :  { %v1397_v49 = vpop.xlane.xlu1 %1396  ;;  %v1394_v9 = vpop.xlane.xlu0 %1393  ;;  %v4278_v34 = vsel %vm2926_vm11, %v4277_v14, %v4273_v0  ;;  %v1671_v62 = vsel %vm539_vm0, %v404_v38, 0.0  ;;  %v1620_v0 = vsel %vm539_vm0, %v387_v20, 0.0  ;;  %v1677_v20 = vsel %vm539_vm0, %v406_v39, 0.0  ;;  %v2159_v39 = vld [vmem:[%s10946_s1 + $0x290] sm:$0xff] }
 0x2c9   :  { %v4282_v11 = vrot.slane %v1394_v9, %v7007_v42  ;;  %v4287_v26 = vrot.slane %v1397_v49, %v7013_v46  ;;  %v375_v49 = vld [vmem:[%s10945_s0 + $0xae0] sm:$0xff]  ;;  %v358_v9 = vld [vmem:[%s10945_s0 + $0xa58] sm:$0xff] }
 0x2ca   :  { %v1533_v18 = vsel %vm539_vm0, %v358_v9, 0.0  ;;  %v2157_v9 = vld [vmem:[%s10946_s1 + $0x280] sm:$0xff] }
 0x2cb   :  { %v4283_v27 = vsel %vm10949_vm12, %v4282_v11, %v4278_v34  ;;  %1669 = vadd.xlane.f32.xlu1 %v1668_v19  ;;  %1618 = vadd.xlane.f32.xlu0 %v1617_v8  ;;  %vm5405_vm12 = vcmask 1041409   ;;  %v405_v11 = vld [vmem:[%s10945_s0 + $0xbd0] sm:$0xff]  ;;  %v1623_v34 = vsel %vm539_vm0, %v388_v16, 0.0 }
 0x2cc   :  { %v1403_v24 = vpop.xlane.xlu1 %1402  ;;  %v1400_v28 = vpop.xlane.xlu0 %1399  ;;  %v4288_v54 = vsel %vm2940_vm13, %v4287_v26, %v4283_v27  ;;  %v5406_v19 = vsel %vm5405_vm12, %v4219_v5, %v7056_v17  ;;  %v1674_v26 = vsel %vm539_vm0, %v405_v11, 0.0  ;;  %v376_v27 = vld [vmem:[%s10945_s0 + $0xae8] sm:$0xff] }
 0x2cd   :  { %v4297_v37 = vrot.slane %v1403_v24, %v7032_v61  ;;  %v4292_v3 = vrot.slane %v1400_v28, %v7027_v59 }
 0x2cf   :  { %1582 = vadd.xlane.f32.xlu1 %v1581_v45  ;;  %1531 = vadd.xlane.f32.xlu0 %v1530_v33  ;;  %v4293_v60 = vsel %vm2947_vm14, %v4292_v3, %v4288_v54  ;;  %v1587_v45 = vsel %vm539_vm0, %v376_v27, 0.0  ;;  %v1536_v33 = vsel %vm539_vm0, %v359_v21, 0.0  ;;  %v377_v54 = vld [vmem:[%s10945_s0 + $0xaf0] sm:$0xff]  ;;  %v2142_v27 = vld [vmem:[%s10946_s1 + $0x208] sm:$0xff]  ;;  %v378_v21 = vld [vmem:[%s10945_s0 + $0xaf8] sm:$0xff] }
 0x2d0   :  { %v8939_v22 = vpop.xlane.xlu1 %1408  ;;  %v8941_v43 = vpop.xlane.xlu0 %1405  ;;  %v4298_v14 = vsel %vm2954_vm15, %v4297_v37, %v4293_v60  ;;  %v389_v37 = vld [vmem:[%s10945_s0 + $0xb50] sm:$0xff]  ;;  %v360_v60 = vld [vmem:[%s10945_s0 + $0xa68] sm:$0xff] }
 0x2d1   :  { %v5407_v36 = vsel %vm5405_vm12, %v4298_v14, %v7153_v63  ;;  %v1584_v63 = vsel %vm539_vm0, %v375_v49, 0.0  ;;  %v1626_v41 = vsel %vm539_vm0, %v389_v37, 0.0  ;;  %v1539_v5 = vsel %vm539_vm0, %v360_v60, 0.0  ;;  %v390_v49 = vld [vmem:[%s10945_s0 + $0xb58] sm:$0xff] }
 0x2d2   :  { %5502 = vmatprep.mubr.f32.mxu0 %v5407_v36  ;;  %v407_v36 = vld [vmem:[%s10945_s0 + $0xbe0] sm:$0xff]  ;;  %v1629_v16 = vsel %vm539_vm0, %v390_v49, 0.0  ;;  %v2160_v37 = vld [vmem:[%s10946_s1 + $0x298] sm:$0xff] }
 0x2d3   :  { %1672 = vadd.xlane.f32.xlu1 %v1671_v62  ;;  %1621 = vadd.xlane.f32.xlu0 %v1620_v0  ;;  %v1590_v0 = vsel %vm539_vm0, %v377_v54, 0.0  ;;  %v1680_v11 = vsel %vm539_vm0, %v407_v36, 0.0  ;;  %v1593_v54 = vsel %vm539_vm0, %v378_v21, 0.0  ;;  %v2143_v36 = vld [vmem:[%s10946_s1 + $0x210] sm:$0xff]  ;;  %v2144_v49 = vld [vmem:[%s10946_s1 + $0x218] sm:$0xff]  ;;  %v4302_v21 = vrot.slane %v8941_v43, %v6906_v30 }
 0x2d4   :  { %5503 = vmatmul.mubr.f32.vlgmr.msra.gmra.mrb[0].mxu0 %v5406_v19  ;;  %v8957_v8 = vpop.xlane.xlu1 %1414  ;;  %v8959_v53 = vpop.xlane.xlu0 %1411  ;;  %v2158_v19 = vld [vmem:[%s10946_s1 + $0x288] sm:$0xff] }
 0x2d5   :  { %v4311_v43 = vrot.slane %v8959_v53, %v6919_v35  ;;  %v2163_v53 = vld [vmem:[%s10946_s1 + $0x2b0] sm:$0xff] }
 0x2d7   :  { %1585 = vadd.xlane.f32.xlu1 %v1584_v63  ;;  %1534 = vadd.xlane.f32.xlu0 %v1533_v18 }
 0x2d8   :  { %v8969_v17 = vpop.xlane.xlu1 %1420  ;;  %v8971_v4 = vpop.xlane.xlu0 %1417 }
 0x2db   :  { %1675 = vadd.xlane.f32.xlu1 %v1674_v26  ;;  %1624 = vadd.xlane.f32.xlu0 %v1623_v34  ;;  %v6359_v26 = vpack.c.bf16 %v2158_v19, %v2157_v9  ;;  %v2141_v34 = vld [vmem:[%s10946_s1 + $0x200] sm:$0xff]  ;;  %v6365_v19 = vpack.c.bf16 %v2144_v49, %v2143_v36  ;;  %v2190_v36 = vld [vmem:[%s10946_s1 + $0x388] sm:$0xff] }
 0x2dc   :  { %v8981_v24 = vpop.xlane.xlu1 %1426  ;;  %v8983_v28 = vpop.xlane.xlu0 %1423  ;;  %v391_v9 = vld [vmem:[%s10945_s0 + $0xb60] sm:$0xff] }
 0x2dd   :  { %6360 = vmatprep.subr.bf16.mxu0 %v6359_v26  ;;  %v2161_v26 = vld [vmem:[%s10946_s1 + $0x2a0] sm:$0xff] }
 0x2df   :  { %1588 = vadd.xlane.f32.xlu1 %v1587_v45  ;;  %1537 = vadd.xlane.f32.xlu0 %v1536_v33  ;;  %v361_v45 = vld [vmem:[%s10945_s0 + $0xa70] sm:$0xff]  ;;  %v6361_v33 = vpack.c.bf16 %v2142_v27, %v2141_v34  ;;  %v2162_v34 = vld [vmem:[%s10946_s1 + $0x2a8] sm:$0xff]  ;;  %v4306_v27 = vrot.slane %v8939_v22, %v6912_v32  ;;  %v2189_v22 = vld [vmem:[%s10946_s1 + $0x380] sm:$0xff] }
 0x2e0   :  { %v8993_v3 = vpop.xlane.xlu1 %1432  ;;  %v8995_v38 = vpop.xlane.xlu0 %1429  ;;  %v1542_v60 = vsel %vm539_vm0, %v361_v45, 0.0 }
 0x2e1   :  { %6362 = vmatpush3.bf16.msra.mxu0 %v6361_v33 }
 0x2e3   :  { %1678 = vadd.xlane.f32.xlu1 %v1677_v20  ;;  %1627 = vadd.xlane.f32.xlu0 %v1626_v41 }
 0x2e4   :  { %v9005_v14 = vpop.xlane.xlu1 %1438  ;;  %v9007_v62 = vpop.xlane.xlu0 %1435 }
 0x2e7   :  { %1591 = vadd.xlane.f32.xlu1 %v1590_v0  ;;  %1540 = vadd.xlane.f32.xlu0 %v1539_v5  ;;  %v408_v0 = vld [vmem:[%s10945_s0 + $0xbe8] sm:$0xff]  ;;  %v6363_v5 = vpack.c.bf16 %v2160_v37, %v2159_v39  ;;  %v1632_v39 = vsel %vm539_vm0, %v391_v9, 0.0  ;;  %v6367_v37 = vpack.c.bf16 %v2162_v34, %v2161_v26  ;;  %v2164_v34 = vld [vmem:[%s10946_s1 + $0x2b8] sm:$0xff] }
 0x2e8   :  { %v9023_v63 = vpop.xlane.xlu1 %1444  ;;  %v9025_v18 = vpop.xlane.xlu0 %1441 }
 0x2e9   :  { %6364 = vmatprep.subr.bf16.mxu0 %v6363_v5 }
 0x2ea   :  { %6366 = vmatpush3.bf16.msra.mxu0 %v6365_v19  ;;  %v6391_v19 = vpack.c.bf16 %v2190_v36, %v2189_v22 }
 0x2eb   :  { %1681 = vadd.xlane.f32.xlu1 %v1680_v11  ;;  %1630 = vadd.xlane.f32.xlu0 %v1629_v16  ;;  %v1683_v11 = vsel %vm539_vm0, %v408_v0, 0.0  ;;  %v392_v16 = vld [vmem:[%s10945_s0 + $0xb68] sm:$0xff]  ;;  %v362_v0 = vld [vmem:[%s10945_s0 + $0xa78] sm:$0xff] }
 0x2ec   :  { %v9047_v20 = vpop.xlane.xlu1 %1450  ;;  %v9049_v41 = vpop.xlane.xlu0 %1447  ;;  %6368 = vmatprep.subr.bf16.mxu0 %v6367_v37  ;;  %v1635_v26 = vsel %vm539_vm0, %v392_v16, 0.0  ;;  %v393_v16 = vld [vmem:[%s10945_s0 + $0xb70] sm:$0xff]  ;;  %6392 = vmatprep.subr.bf16.mxu1 %v6391_v19 }
 0x2ef   :  { %1594 = vadd.xlane.f32.xlu1 %v1593_v54  ;;  %1543 = vadd.xlane.f32.xlu0 %v1542_v60  ;;  %v2145_v54 = vld [vmem:[%s10946_s1 + $0x220] sm:$0xff]  ;;  %v2146_v60 = vld [vmem:[%s10946_s1 + $0x228] sm:$0xff] }
 0x2f0   :  { %v1457_v45 = vpop.xlane.xlu1 %1456  ;;  %v1454_v33 = vpop.xlane.xlu0 %1453  ;;  %v6369_v5 = vpack.c.bf16 %v2146_v60, %v2145_v54  ;;  %v4307_v54 = vsel %vm2856_vm1, %v4306_v27, %v4302_v21  ;;  %v2147_v60 = vld [vmem:[%s10946_s1 + $0x230] sm:$0xff]  ;;  %v2148_v27 = vld [vmem:[%s10946_s1 + $0x238] sm:$0xff]  ;;  %v4321_v21 = vrot.slane %v8971_v4, %v6938_v48  ;;  %v2165_v4 = vld [vmem:[%s10946_s1 + $0x2c0] sm:$0xff] }
 0x2f1   :  { %v4385_v49 = vrot.slane %v1457_v45, %v6912_v32  ;;  %v4381_v9 = vrot.slane %v1454_v33, %v6906_v30  ;;  %v4316_v45 = vrot.slane %v8957_v8, %v6909_v31  ;;  %v4312_v8 = vsel %vm2863_vm2, %v4311_v43, %v4307_v54 }
 0x2f2   :  { %6370 = vmatpush3.bf16.msra.mxu0 %v6369_v5  ;;  %v6373_v5 = vpack.c.bf16 %v2148_v27, %v2147_v60  ;;  %v1638_v43 = vsel %vm539_vm0, %v393_v16, 0.0  ;;  %v2149_v16 = vld [vmem:[%s10946_s1 + $0x240] sm:$0xff]  ;;  %v410_v27 = vld [vmem:[%s10945_s0 + $0xbf8] sm:$0xff] }
 0x2f3   :  { %1684 = vadd.xlane.f32.xlu1 %v1683_v11  ;;  %1633 = vadd.xlane.f32.xlu0 %v1632_v39  ;;  %v1545_v11 = vsel %vm539_vm0, %v362_v0, 0.0  ;;  %v6371_v39 = vpack.c.bf16 %v2164_v34, %v2163_v53  ;;  %v409_v0 = vld [vmem:[%s10945_s0 + $0xbf0] sm:$0xff]  ;;  %v4386_v36 = vsel %vm2856_vm1, %v4385_v49, %v4381_v9  ;;  %v2166_v34 = vld [vmem:[%s10946_s1 + $0x2c8] sm:$0xff]  ;;  %v4326_v49 = vrot.slane %v8969_v17, %v6924_v40 }
 0x2f4   :  { %v1463_v33 = vpop.xlane.xlu1 %1462  ;;  %v1460_v37 = vpop.xlane.xlu0 %1459  ;;  %v4317_v9 = vsel %vm2870_vm3, %v4316_v45, %v4312_v8  ;;  %v2150_v17 = vld [vmem:[%s10946_s1 + $0x248] sm:$0xff] }
 0x2f5   :  { %v4390_v22 = vrot.slane %v1460_v37, %v6919_v35  ;;  %v4395_v19 = vrot.slane %v1463_v33, %v6909_v31  ;;  %6372 = vmatprep.subr.bf16.mxu0 %v6371_v39  ;;  %v394_v37 = vld [vmem:[%s10945_s0 + $0xb78] sm:$0xff]  ;;  %v4322_v45 = vsel %vm2877_vm4, %v4321_v21, %v4317_v9  ;;  %v4331_v39 = vrot.slane %v8983_v28, %v6949_v57  ;;  %v2167_v28 = vld [vmem:[%s10946_s1 + $0x2d0] sm:$0xff]  ;;  %v428_v9 = vld [vmem:[%s10945_s0 + $0xc88] sm:$0xff] }
 0x2f6   :  { %6374 = vmatpush3.bf16.msra.mxu0 %v6373_v5  ;;  %v6377_v8 = vpack.c.bf16 %v2150_v17, %v2149_v16  ;;  %v1641_v21 = vsel %vm539_vm0, %v394_v37, 0.0 }
 0x2f7   :  { %v4391_v53 = vsel %vm2863_vm2, %v4390_v22, %v4386_v36  ;;  %1636 = vadd.xlane.f32.xlu1 %v1635_v26  ;;  %1546 = vadd.xlane.f32.xlu0 %v1545_v11  ;;  %v1686_v26 = vsel %vm539_vm0, %v409_v0, 0.0  ;;  %v6375_v11 = vpack.c.bf16 %v2166_v34, %v2165_v4  ;;  %v2168_v36 = vld [vmem:[%s10946_s1 + $0x2d8] sm:$0xff]  ;;  %v4336_v4 = vrot.slane %v8981_v24, %v6946_v56 }
 0x2f8   :  { %v1469_v54 = vpop.xlane.xlu1 %1468  ;;  %v1466_v33 = vpop.xlane.xlu0 %1465  ;;  %v4396_v0 = vsel %vm2870_vm3, %v4395_v19, %v4391_v53  ;;  %v4327_v19 = vsel %vm2884_vm5, %v4326_v49, %v4322_v45  ;;  %v2152_v24 = vld [vmem:[%s10946_s1 + $0x258] sm:$0xff] }
 0x2f9   :  { %v4400_v60 = vrot.slane %v1466_v33, %v6938_v48  ;;  %v4405_v22 = vrot.slane %v1469_v54, %v6924_v40  ;;  %6376 = vmatprep.subr.bf16.mxu0 %v6375_v11  ;;  %v6379_v54 = vpack.c.bf16 %v2168_v36, %v2167_v28  ;;  %v2151_v33 = vld [vmem:[%s10946_s1 + $0x250] sm:$0xff]  ;;  %v4332_v49 = vsel %vm2891_vm6, %v4331_v39, %v4327_v19  ;;  %v427_v11 = vld [vmem:[%s10945_s0 + $0xc80] sm:$0xff]  ;;  %v412_v28 = vld [vmem:[%s10945_s0 + $0xc08] sm:$0xff] }
 0x2fa   :  { %6378 = vmatpush3.bf16.msra.mxu0 %v6377_v8  ;;  %v6381_v16 = vpack.c.bf16 %v2152_v24, %v2151_v33  ;;  %v1743_v39 = vsel %vm539_vm0, %v428_v9, 0.0  ;;  %v4346_v8 = vrot.slane %v8993_v3, %v6967_v7  ;;  %v2153_v19 = vld [vmem:[%s10946_s1 + $0x260] sm:$0xff]  ;;  %v2154_v3 = vld [vmem:[%s10946_s1 + $0x268] sm:$0xff] }
 0x2fb   :  { %v4401_v5 = vsel %vm2877_vm4, %v4400_v60, %v4396_v0  ;;  %1639 = vadd.xlane.f32.xlu1 %v1638_v43  ;;  %1687 = vadd.xlane.f32.xlu0 %v1686_v26  ;;  %v1689_v43 = vsel %vm539_vm0, %v410_v27, 0.0  ;;  %v4341_v26 = vrot.slane %v8995_v38, %v6979_v13  ;;  %v2169_v38 = vld [vmem:[%s10946_s1 + $0x2e0] sm:$0xff]  ;;  %v2170_v27 = vld [vmem:[%s10946_s1 + $0x2e8] sm:$0xff]  ;;  %v6385_v9 = vpack.c.bf16 %v2154_v3, %v2153_v19 }
 0x2fc   :  { %v1475_v53 = vpop.xlane.xlu1 %1474  ;;  %v1472_v34 = vpop.xlane.xlu0 %1471  ;;  %v4406_v45 = vsel %vm2884_vm5, %v4405_v22, %v4401_v5  ;;  %6380 = vmatprep.subr.bf16.mxu0 %v6379_v54  ;;  %v4337_v22 = vsel %vm2898_vm7, %v4336_v4, %v4332_v49  ;;  %v6383_v36 = vpack.c.bf16 %v2170_v27, %v2169_v38  ;;  %v1695_v49 = vsel %vm539_vm0, %v412_v28, 0.0  ;;  %v2156_v38 = vld [vmem:[%s10946_s1 + $0x278] sm:$0xff] }
 0x2fd   :  { %v4410_v37 = vrot.slane %v1472_v34, %v6949_v57  ;;  %v4415_v17 = vrot.slane %v1475_v53, %v6946_v56  ;;  %v4342_v4 = vsel %vm10950_vm8, %v4341_v26, %v4337_v22  ;;  %v4351_v53 = vrot.slane %v9007_v62, %v6999_v29  ;;  %v2171_v62 = vld [vmem:[%s10946_s1 + $0x2f0] sm:$0xff]  ;;  %v2172_v26 = vld [vmem:[%s10946_s1 + $0x2f8] sm:$0xff] }
 0x2fe   :  { %6382 = vmatpush3.bf16.msra.mxu0 %v6381_v16  ;;  %v413_v22 = vld [vmem:[%s10945_s0 + $0xc10] sm:$0xff] }
 0x2ff   :  { %v4411_v60 = vsel %vm2891_vm6, %v4410_v37, %v4406_v45  ;;  %1642 = vadd.xlane.f32.xlu1 %v1641_v21  ;;  %1690 = vadd.xlane.f32.xlu0 %v1689_v43  ;;  %v1740_v21 = vsel %vm539_vm0, %v427_v11, 0.0  ;;  %v411_v43 = vld [vmem:[%s10945_s0 + $0xc00] sm:$0xff]  ;;  %v4356_v37 = vrot.slane %v9005_v14, %v6987_v23  ;;  %v4347_v11 = vsel %vm2912_vm9, %v4346_v8, %v4342_v4 }
 0x300   :  { %v1481_v0 = vpop.xlane.xlu1 %1480  ;;  %v1478_v5 = vpop.xlane.xlu0 %1477  ;;  %v4416_v33 = vsel %vm2898_vm7, %v4415_v17, %v4411_v60  ;;  %6384 = vmatprep.subr.bf16.mxu0 %v6383_v36  ;;  %v1692_v45 = vsel %vm539_vm0, %v411_v43, 0.0  ;;  %v6387_v60 = vpack.c.bf16 %v2172_v26, %v2171_v62  ;;  %v4352_v27 = vsel %vm10951_vm10, %v4351_v53, %v4347_v11 }
 0x301   :  { %v4420_v34 = vrot.slane %v1478_v5, %v6979_v13  ;;  %v4425_v54 = vrot.slane %v1481_v0, %v6967_v7  ;;  %v4361_v14 = vrot.slane %v9025_v18, %v7007_v42  ;;  %v429_v0 = vld [vmem:[%s10945_s0 + $0xc90] sm:$0xff]  ;;  %v4366_v18 = vrot.slane %v9023_v63, %v7013_v46  ;;  %v459_v63 = vld [vmem:[%s10945_s0 + $0xd80] sm:$0xff] }
 0x302   :  { %6386 = vmatpush3.bf16.msra.mxu0 %v6385_v9  ;;  %v4357_v19 = vsel %vm2926_vm11, %v4356_v37, %v4352_v27  ;;  %v1698_v53 = vsel %vm539_vm0, %v413_v22, 0.0  ;;  %v4371_v9 = vrot.slane %v9049_v41, %v7027_v59  ;;  %v4376_v41 = vrot.slane %v9047_v20, %v7032_v61  ;;  %v460_v20 = vld [vmem:[%s10945_s0 + $0xd88] sm:$0xff] }
 0x303   :  { %v4421_v24 = vsel %vm10950_vm8, %v4420_v34, %v4416_v33  ;;  %1744 = vadd.xlane.f32.xlu1 %v1743_v39  ;;  %1741 = vadd.xlane.f32.xlu0 %v1740_v21  ;;  %v2155_v39 = vld [vmem:[%s10946_s1 + $0x270] sm:$0xff]  ;;  %v1746_v34 = vsel %vm539_vm0, %v429_v0, 0.0  ;;  %vm10969_vm8 = vcmask 851712   ;;  %v430_v33 = vld [vmem:[%s10945_s0 + $0xc98] sm:$0xff]  ;;  %v1836_v11 = vsel %vm539_vm0, %v459_v63, 0.0 }
 0x304   :  { %v1487_v16 = vpop.xlane.xlu1 %1486  ;;  %v1484_v17 = vpop.xlane.xlu0 %1483  ;;  %v6389_v5 = vpack.c.bf16 %v2156_v38, %v2155_v39  ;;  %v4426_v28 = vsel %vm2912_vm9, %v4425_v54, %v4421_v24  ;;  %6388 = vmatprep.subr.bf16.mxu0 %v6387_v60  ;;  %v4362_v43 = vsel %vm10969_vm8, %v4361_v14, %v4357_v19  ;;  %v414_v39 = vld [vmem:[%s10945_s0 + $0xc18] sm:$0xff]  ;;  %v2173_v14 = vld [vmem:[%s10946_s1 + $0x300] sm:$0xff]  ;;  %v2191_v0 = vld [vmem:[%s10946_s1 + $0x390] sm:$0xff]  ;;  %v1839_v19 = vsel %vm539_vm0, %v460_v20, 0.0 }
 0x305   :  { %v4430_v8 = vrot.slane %v1484_v17, %v6999_v29  ;;  %v4435_v21 = vrot.slane %v1487_v16, %v6987_v23  ;;  %v1749_v16 = vsel %vm539_vm0, %v430_v33, 0.0  ;;  %v4367_v17 = vsel %vm2940_vm13, %v4366_v18, %v4362_v43  ;;  %v443_v43 = vld [vmem:[%s10945_s0 + $0xd00] sm:$0xff]  ;;  %v2175_v33 = vld [vmem:[%s10946_s1 + $0x310] sm:$0xff] }
 0x306   :  { %6390 = vmatpush3.bf16.msra.mxu0 %v6389_v5  ;;  %v4372_v38 = vsel %vm2947_vm14, %v4371_v9, %v4367_v17  ;;  %v2192_v5 = vld [vmem:[%s10946_s1 + $0x398] sm:$0xff]  ;;  %v1701_v18 = vsel %vm539_vm0, %v414_v39, 0.0  ;;  %v431_v9 = vld [vmem:[%s10945_s0 + $0xca0] sm:$0xff] }
 0x307   :  { %v4431_v36 = vsel %vm10951_vm10, %v4430_v8, %v4426_v28  ;;  %1696 = vadd.xlane.f32.xlu1 %v1695_v49  ;;  %1693 = vadd.xlane.f32.xlu0 %v1692_v45  ;;  %vm10970_vm10 = vmmov %vm10969_vm8  ;;  %v2174_v8 = vld [vmem:[%s10946_s1 + $0x308] sm:$0xff]  ;;  %v6395_v63 = vpack.c.bf16 %v2192_v5, %v2191_v0  ;;  %vm10971_vm8 = vcmask 589312  }
 0x308   :  { %v1493_v3 = vpop.xlane.xlu1 %1492  ;;  %v1490_v4 = vpop.xlane.xlu0 %1489  ;;  %v4436_v49 = vsel %vm2926_vm11, %v4435_v21, %v4431_v36 }
 0x309   :  { %v4440_v54 = vrot.slane %v1490_v4, %v7007_v42  ;;  %v4445_v24 = vrot.slane %v1493_v3, %v7013_v46  ;;  %v4377_v3 = vsel %vm2954_vm15, %v4376_v41, %v4372_v38  ;;  %v2194_v41 = vld [vmem:[%s10946_s1 + $0x3a8] sm:$0xff]  ;;  %v2177_v38 = vld [vmem:[%s10946_s1 + $0x320] sm:$0xff] }
 0x30b   :  { %v4441_v62 = vsel %vm10970_vm10, %v4440_v54, %v4436_v49  ;;  %1699 = vadd.xlane.f32.xlu1 %v1698_v53  ;;  %1747 = vadd.xlane.f32.xlu0 %v1746_v34  ;;  %v6393_v54 = vpack.c.bf16 %v2174_v8, %v2173_v14  ;;  %v5408_v49 = vsel %vm5405_vm12, %v4377_v3, %v7250_v44  ;;  %v461_v44 = vld [vmem:[%s10945_s0 + $0xd90] sm:$0xff]  ;;  %v432_v3 = vld [vmem:[%s10945_s0 + $0xca8] sm:$0xff]  ;;  %vm10972_vm10 = vcmask 720512  }
 0x30c   :  { %v1499_v26 = vpop.xlane.xlu1 %1498  ;;  %v1496_v37 = vpop.xlane.xlu0 %1495  ;;  %v4446_v27 = vsel %vm2940_vm13, %v4445_v24, %v4441_v62  ;;  %v2176_v24 = vld [vmem:[%s10946_s1 + $0x318] sm:$0xff]  ;;  %v2193_v62 = vld [vmem:[%s10946_s1 + $0x3a0] sm:$0xff]  ;;  %v2195_v8 = vld [vmem:[%s10946_s1 + $0x3b0] sm:$0xff] }
 0x30d   :  { %v4455_v45 = vrot.slane %v1499_v26, %v7032_v61  ;;  %v4450_v60 = vrot.slane %v1496_v37, %v7027_v59  ;;  %v6397_v39 = vpack.c.bf16 %v2176_v24, %v2175_v33  ;;  %v6399_v20 = vpack.c.bf16 %v2194_v41, %v2193_v62  ;;  %v2198_v33 = vld [vmem:[%s10946_s1 + $0x3c8] sm:$0xff] }
 0x30f   :  { %1837 = vadd.xlane.f32.xlu1 %v1836_v11  ;;  %1750 = vadd.xlane.f32.xlu0 %v1749_v16  ;;  %v4451_v22 = vsel %vm2947_vm14, %v4450_v60, %v4446_v27  ;;  %v1788_v11 = vsel %vm539_vm0, %v443_v43, 0.0  ;;  %v1752_v16 = vsel %vm539_vm0, %v431_v9, 0.0  ;;  %v444_v60 = vld [vmem:[%s10945_s0 + $0xd08] sm:$0xff]  ;;  %v2179_v43 = vld [vmem:[%s10946_s1 + $0x330] sm:$0xff]  ;;  %v2180_v9 = vld [vmem:[%s10946_s1 + $0x338] sm:$0xff] }
 0x310   :  { %v1505_v21 = vpop.xlane.xlu1 %1504  ;;  %v1502_v28 = vpop.xlane.xlu0 %1501  ;;  %v4456_v36 = vsel %vm2954_vm15, %v4455_v45, %v4451_v22  ;;  %v2178_v27 = vld [vmem:[%s10946_s1 + $0x328] sm:$0xff]  ;;  %v2196_v22 = vld [vmem:[%s10946_s1 + $0x3b8] sm:$0xff] }
 0x311   :  { %v4464_v4 = vrot.slane %v1505_v21, %v6912_v32  ;;  %v4460_v53 = vrot.slane %v1502_v28, %v6906_v30  ;;  %v5409_v34 = vsel %vm5405_vm12, %v4456_v36, %v7347_v25  ;;  %v1842_v21 = vsel %vm539_vm0, %v461_v44, 0.0  ;;  %v2182_v44 = vld [vmem:[%s10946_s1 + $0x348] sm:$0xff] }
 0x312   :  { %5572 = vmatprep.mubr.f32.mxu1 %v5409_v34  ;;  %v1791_v28 = vsel %vm539_vm0, %v444_v60, 0.0  ;;  %v6403_v34 = vpack.c.bf16 %v2196_v22, %v2195_v8 }
 0x313   :  { %v4465_v25 = vsel %vm2856_vm1, %v4464_v4, %v4460_v53  ;;  %1702 = vadd.xlane.f32.xlu1 %v1701_v18  ;;  %1840 = vadd.xlane.f32.xlu0 %v1839_v19  ;;  %v415_v4 = vld [vmem:[%s10945_s0 + $0xc20] sm:$0xff]  ;;  %v6401_v53 = vpack.c.bf16 %v2178_v27, %v2177_v38 }
 0x314   :  { %5573 = vmatmul.mubr.f32.vlgmr.msra.gmra.mrb[0].mxu1 %v5408_v49  ;;  %v1511_v26 = vpop.xlane.xlu1 %1510  ;;  %v1508_v37 = vpop.xlane.xlu0 %1507  ;;  %v1755_v49 = vsel %vm539_vm0, %v432_v3, 0.0  ;;  %v1704_v62 = vsel %vm539_vm0, %v415_v4, 0.0  ;;  %v2183_v3 = vld [vmem:[%s10946_s1 + $0x350] sm:$0xff]  ;;  %v2184_v4 = vld [vmem:[%s10946_s1 + $0x358] sm:$0xff] }
 0x315   :  { %v4474_v17 = vrot.slane %v1511_v26, %v6909_v31  ;;  %v4469_v45 = vrot.slane %v1508_v37, %v6919_v35  ;;  %6394 = vmatpush3.bf16.msra.mxu1 %v6393_v54  ;;  %v462_v37 = vld [vmem:[%s10945_s0 + $0xd98] sm:$0xff] }
 0x316   :  { %6396 = vmatprep.subr.bf16.mxu1 %v6395_v63  ;;  %v2197_v63 = vld [vmem:[%s10946_s1 + $0x3c0] sm:$0xff] }
 0x317   :  { %v4470_v14 = vsel %vm2863_vm2, %v4469_v45, %v4465_v25  ;;  %1789 = vadd.xlane.f32.xlu1 %v1788_v11  ;;  %1753 = vadd.xlane.f32.xlu0 %v1752_v16  ;;  %v445_v11 = vld [vmem:[%s10945_s0 + $0xd10] sm:$0xff]  ;;  %v6405_v16 = vpack.c.bf16 %v2180_v9, %v2179_v43  ;;  %v2181_v45 = vld [vmem:[%s10946_s1 + $0x340] sm:$0xff]  ;;  %v2202_v43 = vld [vmem:[%s10946_s1 + $0x3e8] sm:$0xff] }
 0x318   :  { %v1553_v0 = vpop.xlane.xlu1 %1552  ;;  %v1550_v5 = vpop.xlane.xlu0 %1549  ;;  %v9350_v36 = vsel %vm2870_vm3, %v4474_v17, %v4470_v14  ;;  %v6407_v17 = vpack.c.bf16 %v2198_v33, %v2197_v63  ;;  %v1845_v14 = vsel %vm539_vm0, %v462_v37, 0.0  ;;  %v1794_v8 = vsel %vm539_vm0, %v445_v11, 0.0  ;;  %v2186_v37 = vld [vmem:[%s10946_s1 + $0x368] sm:$0xff] }
 0x319   :  { %v4543_v18 = vrot.slane %v1553_v0, %v6912_v32  ;;  %v4539_v19 = vrot.slane %v1550_v5, %v6906_v30  ;;  %6398 = vmatpush3.bf16.msra.mxu1 %v6397_v39  ;;  %v2199_v39 = vld [vmem:[%s10946_s1 + $0x3d0] sm:$0xff] }
 0x31a   :  { %6400 = vmatprep.subr.bf16.mxu1 %v6399_v20  ;;  %v2200_v20 = vld [vmem:[%s10946_s1 + $0x3d8] sm:$0xff] }
 0x31b   :  { %v4544_v54 = vsel %vm2856_vm1, %v4543_v18, %v4539_v19  ;;  %1843 = vadd.xlane.f32.xlu1 %v1842_v21  ;;  %1792 = vadd.xlane.f32.xlu0 %v1791_v28  ;;  %v433_v21 = vld [vmem:[%s10945_s0 + $0xcb0] sm:$0xff]  ;;  %v416_v28 = vld [vmem:[%s10945_s0 + $0xc28] sm:$0xff]  ;;  %v6409_v18 = vpack.c.bf16 %v2182_v44, %v2181_v45  ;;  %v6411_v19 = vpack.c.bf16 %v2200_v20, %v2199_v39 }
 0x31c   :  { %v1559_v24 = vpop.xlane.xlu1 %1558  ;;  %v1556_v25 = vpop.xlane.xlu0 %1555  ;;  %v1758_v63 = vsel %vm539_vm0, %v433_v21, 0.0  ;;  %v1707_v33 = vsel %vm539_vm0, %v416_v28, 0.0  ;;  %v2188_v21 = vld [vmem:[%s10946_s1 + $0x378] sm:$0xff] }
 0x31d   :  { %v4553_v41 = vrot.slane %v1559_v24, %v6909_v31  ;;  %v4548_v26 = vrot.slane %v1556_v25, %v6919_v35  ;;  %6402 = vmatpush3.bf16.msra.mxu1 %v6401_v53  ;;  %v463_v25 = vld [vmem:[%s10945_s0 + $0xda0] sm:$0xff] }
 0x31e   :  { %6404 = vmatprep.subr.bf16.mxu1 %v6403_v34  ;;  %v2201_v34 = vld [vmem:[%s10946_s1 + $0x3e0] sm:$0xff] }
 0x31f   :  { %v4549_v60 = vsel %vm2863_vm2, %v4548_v26, %v4544_v54  ;;  %1756 = vadd.xlane.f32.xlu1 %v1755_v49  ;;  %1705 = vadd.xlane.f32.xlu0 %v1704_v62  ;;  %v446_v49 = vld [vmem:[%s10945_s0 + $0xd18] sm:$0xff]  ;;  %v6413_v62 = vpack.c.bf16 %v2184_v4, %v2183_v3  ;;  %v2185_v26 = vld [vmem:[%s10946_s1 + $0x360] sm:$0xff] }
 0x320   :  { %v1649_v38 = vpop.xlane.xlu1 %1648  ;;  %v1646_v27 = vpop.xlane.xlu0 %1645  ;;  %v4554_v22 = vsel %vm2870_vm3, %v4553_v41, %v4549_v60  ;;  %v6415_v41 = vpack.c.bf16 %v2202_v43, %v2201_v34  ;;  %v1848_v60 = vsel %vm539_vm0, %v463_v25, 0.0  ;;  %v1797_v39 = vsel %vm539_vm0, %v446_v49, 0.0 }
 0x321   :  { %v4701_v0 = vrot.slane %v1649_v38, %v6912_v32  ;;  %v4697_v5 = vrot.slane %v1646_v27, %v6906_v30  ;;  %6406 = vmatpush3.bf16.msra.mxu1 %v6405_v16  ;;  %v2203_v16 = vld [vmem:[%s10946_s1 + $0x3f0] sm:$0xff] }
 0x322   :  { %6408 = vmatprep.subr.bf16.mxu1 %v6407_v17  ;;  %v2204_v17 = vld [vmem:[%s10946_s1 + $0x3f8] sm:$0xff] }
 0x323   :  { %v4702_v53 = vsel %vm2856_vm1, %v4701_v0, %v4697_v5  ;;  %1846 = vadd.xlane.f32.xlu1 %v1845_v14  ;;  %1795 = vadd.xlane.f32.xlu0 %v1794_v8  ;;  %v434_v14 = vld [vmem:[%s10945_s0 + $0xcb8] sm:$0xff]  ;;  %v417_v8 = vld [vmem:[%s10945_s0 + $0xc30] sm:$0xff]  ;;  %v6419_v0 = vpack.c.bf16 %v2204_v17, %v2203_v16 }
 0x324   :  { %v1598_v9 = vpop.xlane.xlu1 %1597  ;;  %v1562_v54 = vpop.xlane.xlu0 %1561  ;;  %v2187_v5 = vld [vmem:[%s10946_s1 + $0x370] sm:$0xff]  ;;  %v1761_v4 = vsel %vm539_vm0, %v434_v14, 0.0  ;;  %v1710_v34 = vsel %vm539_vm0, %v417_v8, 0.0 }
 0x325   :  { %v4558_v24 = vrot.slane %v1562_v54, %v6938_v48  ;;  %6410 = vmatpush3.bf16.msra.mxu1 %v6409_v18  ;;  %v4618_v20 = vrot.slane %v1598_v9, %v6906_v30  ;;  %v464_v54 = vld [vmem:[%s10945_s0 + $0xda8] sm:$0xff] }
 0x326   :  { %6412 = vmatprep.subr.bf16.mxu1 %v6411_v19 }
 0x327   :  { %v4559_v11 = vsel %vm2877_vm4, %v4558_v24, %v4554_v22  ;;  %1759 = vadd.xlane.f32.xlu1 %v1758_v63  ;;  %1708 = vadd.xlane.f32.xlu0 %v1707_v33  ;;  %v6417_v22 = vpack.c.bf16 %v2186_v37, %v2185_v26  ;;  %v6421_v63 = vpack.c.bf16 %v2188_v21, %v2187_v5 }
 0x328   :  { %v1652_v45 = vpop.xlane.xlu1 %1651  ;;  %v1601_v44 = vpop.xlane.xlu0 %1600 }
 0x329   :  { %v4706_v38 = vrot.slane %v1652_v45, %v6919_v35  ;;  %v4622_v27 = vrot.slane %v1601_v44, %v6912_v32  ;;  %6414 = vmatpush3.bf16.msra.mxu1 %v6413_v62  ;;  %v1851_v62 = vsel %vm539_vm0, %v464_v54, 0.0 }
 0x32a   :  { %6416 = vmatprep.subr.bf16.mxu1 %v6415_v41 }
 0x32b   :  { %v4707_v28 = vsel %vm2863_vm2, %v4706_v38, %v4702_v53  ;;  %v4623_v18 = vsel %vm2856_vm1, %v4622_v27, %v4618_v20  ;;  %1849 = vadd.xlane.f32.xlu1 %v1848_v60  ;;  %1798 = vadd.xlane.f32.xlu0 %v1797_v39  ;;  %v447_v53 = vld [vmem:[%s10945_s0 + $0xd20] sm:$0xff]  ;;  %v465_v38 = vld [vmem:[%s10945_s0 + $0xdb0] sm:$0xff]  ;;  %v448_v27 = vld [vmem:[%s10945_s0 + $0xd28] sm:$0xff] }
 0x32c   :  { %v1565_v19 = vpop.xlane.xlu1 %1564  ;;  %v1514_v3 = vpop.xlane.xlu0 %1513  ;;  %v1800_v41 = vsel %vm539_vm0, %v447_v53, 0.0  ;;  %v1803_v5 = vsel %vm539_vm0, %v448_v27, 0.0  ;;  %v466_v53 = vld [vmem:[%s10945_s0 + $0xdb8] sm:$0xff] }
 0x32d   :  { %v4563_v43 = vrot.slane %v1565_v19, %v6924_v40  ;;  %v4479_v9 = vrot.slane %v1514_v3, %v6938_v48  ;;  %6418 = vmatpush3.bf16.msra.mxu1 %v6417_v22  ;;  %v419_v19 = vld [vmem:[%s10945_s0 + $0xc40] sm:$0xff] }
 0x32e   :  { %6420 = vmatprep.subr.bf16.mxu1 %v6419_v0  ;;  %v1854_v0 = vsel %vm539_vm0, %v465_v38, 0.0  ;;  %v1716_v54 = vsel %vm539_vm0, %v419_v19, 0.0  ;;  %v450_v38 = vld [vmem:[%s10945_s0 + $0xd38] sm:$0xff] }
 0x32f   :  { %v9472_v33 = vsel %vm2884_vm5, %v4563_v43, %v4559_v11  ;;  %v4480_v24 = vsel %vm2877_vm4, %v4479_v9, %v9350_v36  ;;  %1762 = vadd.xlane.f32.xlu1 %v1761_v4  ;;  %1711 = vadd.xlane.f32.xlu0 %v1710_v34  ;;  %v435_v11 = vld [vmem:[%s10945_s0 + $0xcc0] sm:$0xff]  ;;  %v418_v36 = vld [vmem:[%s10945_s0 + $0xc38] sm:$0xff] }
 0x330   :  { %v1655_v25 = vpop.xlane.xlu1 %1654  ;;  %v1604_v49 = vpop.xlane.xlu0 %1603  ;;  %v1764_v60 = vsel %vm539_vm0, %v435_v11, 0.0  ;;  %v1713_v39 = vsel %vm539_vm0, %v418_v36, 0.0  ;;  %v420_v11 = vld [vmem:[%s10945_s0 + $0xc48] sm:$0xff] }
 0x331   :  { %v4711_v26 = vrot.slane %v1655_v25, %v6909_v31  ;;  %v4627_v37 = vrot.slane %v1604_v49, %v6919_v35  ;;  %6422 = vmatpush3.bf16.msra.mxu1 %v6421_v63  ;;  %v449_v63 = vld [vmem:[%s10945_s0 + $0xd30] sm:$0xff]  ;;  %v1857_v49 = vsel %vm539_vm0, %v466_v53, 0.0 }
 0x333   :  { %v4712_v16 = vsel %vm2870_vm3, %v4711_v26, %v4707_v28  ;;  %v4628_v17 = vsel %vm2863_vm2, %v4627_v37, %v4623_v18  ;;  %1852 = vadd.xlane.f32.xlu1 %v1851_v62  ;;  %1801 = vadd.xlane.f32.xlu0 %v1800_v41  ;;  %v436_v18 = vld [vmem:[%s10945_s0 + $0xcc8] sm:$0xff]  ;;  %v1806_v62 = vsel %vm539_vm0, %v449_v63, 0.0  ;;  %v437_v37 = vld [vmem:[%s10945_s0 + $0xcd0] sm:$0xff] }
 0x334   :  { %v9488_v45 = vpop.xlane.xlu1 %1567  ;;  %v1517_v44 = vpop.xlane.xlu0 %1516  ;;  %v1767_v9 = vsel %vm539_vm0, %v436_v18, 0.0 }
 0x335   :  { %v4484_v20 = vrot.slane %v1517_v44, %v6924_v40 }
 0x337   :  { %v9500_v14 = vsel %vm2884_vm5, %v4484_v20, %v4480_v24  ;;  %1765 = vadd.xlane.f32.xlu1 %v1764_v60  ;;  %1714 = vadd.xlane.f32.xlu0 %v1713_v39  ;;  %v1770_v60 = vsel %vm539_vm0, %v437_v37, 0.0  ;;  %v1719_v39 = vsel %vm539_vm0, %v420_v11, 0.0  ;;  %v467_v20 = vld [vmem:[%s10945_s0 + $0xdc0] sm:$0xff]  ;;  %v469_v11 = vld [vmem:[%s10945_s0 + $0xdd0] sm:$0xff] }
 0x338   :  { %v1658_v8 = vpop.xlane.xlu1 %1657  ;;  %v1607_v22 = vpop.xlane.xlu0 %1606 }
 0x339   :  { %v4716_v21 = vrot.slane %v1658_v8, %v6938_v48  ;;  %v4632_v28 = vrot.slane %v1607_v22, %v6909_v31  ;;  %v1860_v22 = vsel %vm539_vm0, %v467_v20, 0.0 }
 0x33b   :  { %v4717_v3 = vsel %vm2877_vm4, %v4716_v21, %v4712_v16  ;;  %v4633_v4 = vsel %vm2870_vm3, %v4632_v28, %v4628_v17  ;;  %1855 = vadd.xlane.f32.xlu1 %v1854_v0  ;;  %1804 = vadd.xlane.f32.xlu0 %v1803_v5  ;;  %v1809_v0 = vsel %vm539_vm0, %v450_v38, 0.0  ;;  %v438_v5 = vld [vmem:[%s10945_s0 + $0xcd8] sm:$0xff]  ;;  %v421_v21 = vld [vmem:[%s10945_s0 + $0xc50] sm:$0xff]  ;;  %v1866_v38 = vsel %vm539_vm0, %v469_v11, 0.0  ;;  %v424_v11 = vld [vmem:[%s10945_s0 + $0xc68] sm:$0xff] }
 0x33c   :  { %v9514_v34 = vpop.xlane.xlu1 %1570  ;;  %v9516_v43 = vpop.xlane.xlu0 %1519  ;;  %v1773_v19 = vsel %vm539_vm0, %v438_v5, 0.0  ;;  %v423_v5 = vld [vmem:[%s10945_s0 + $0xc60] sm:$0xff] }
 0x33d   :  { %v4573_v47 = vrot.slane %v9514_v34, %v6946_v56 }
 0x33f   :  { %1768 = vadd.xlane.f32.xlu1 %v1767_v9  ;;  %1717 = vadd.xlane.f32.xlu0 %v1716_v54  ;;  %v451_v9 = vld [vmem:[%s10945_s0 + $0xd40] sm:$0xff] }
 0x340   :  { %v1661_v24 = vpop.xlane.xlu1 %1660  ;;  %v1610_v25 = vpop.xlane.xlu0 %1609 }
 0x341   :  { %v4721_v41 = vrot.slane %v1661_v24, %v6924_v40  ;;  %v4637_v26 = vrot.slane %v1610_v25, %v6938_v48  ;;  %v1812_v24 = vsel %vm539_vm0, %v451_v9, 0.0  ;;  %v439_v25 = vld [vmem:[%s10945_s0 + $0xce0] sm:$0xff]  ;;  %v470_v9 = vld [vmem:[%s10945_s0 + $0xdd8] sm:$0xff] }
 0x343   :  { %v9537_v36 = vsel %vm2884_vm5, %v4721_v41, %v4717_v3  ;;  %v9540_v16 = vsel %vm2877_vm4, %v4637_v26, %v4633_v4  ;;  %1858 = vadd.xlane.f32.xlu1 %v1857_v49  ;;  %1807 = vadd.xlane.f32.xlu0 %v1806_v62  ;;  %v1722_v3 = vsel %vm539_vm0, %v421_v21, 0.0  ;;  %v468_v4 = vld [vmem:[%s10945_s0 + $0xdc8] sm:$0xff]  ;;  %v422_v49 = vld [vmem:[%s10945_s0 + $0xc58] sm:$0xff]  ;;  %v1776_v26 = vsel %vm539_vm0, %v439_v25, 0.0 }
 0x344   :  { %v9542_v17 = vpop.xlane.xlu1 %1573  ;;  %v9544_v44 = vpop.xlane.xlu0 %1522  ;;  %v1863_v63 = vsel %vm539_vm0, %v468_v4, 0.0  ;;  %v1725_v37 = vsel %vm539_vm0, %v422_v49, 0.0  ;;  %v1728_v4 = vsel %vm539_vm0, %v423_v5, 0.0  ;;  %v1869_v49 = vsel %vm539_vm0, %v470_v9, 0.0  ;;  %v471_v5 = vld [vmem:[%s10945_s0 + $0xde0] sm:$0xff]  ;;  %v2222_v9 = vld [vmem:[%s10946_s1 + $0x488] sm:$0xff] }
 0x345   :  { %v4578_v1 = vrot.slane %v9542_v17, %v6979_v13 }
 0x347   :  { %1771 = vadd.xlane.f32.xlu1 %v1770_v60  ;;  %1720 = vadd.xlane.f32.xlu0 %v1719_v39  ;;  %v452_v60 = vld [vmem:[%s10945_s0 + $0xd48] sm:$0xff] }
 0x348   :  { %v9554_v27 = vpop.xlane.xlu1 %1663  ;;  %v9556_v8 = vpop.xlane.xlu0 %1612 }
 0x34b   :  { %1861 = vadd.xlane.f32.xlu1 %v1860_v22  ;;  %1810 = vadd.xlane.f32.xlu0 %v1809_v0  ;;  %v1815_v22 = vsel %vm539_vm0, %v452_v60, 0.0  ;;  %v440_v0 = vld [vmem:[%s10945_s0 + $0xce8] sm:$0xff] }
 0x34c   :  { %v9566_v28 = vpop.xlane.xlu1 %1576  ;;  %v9568_v18 = vpop.xlane.xlu0 %1525 }
 0x34d   :  { %v4583_v34 = vrot.slane %v9566_v28, %v6967_v7 }
 0x34f   :  { %1774 = vadd.xlane.f32.xlu1 %v1773_v19  ;;  %1723 = vadd.xlane.f32.xlu0 %v1722_v3  ;;  %v1779_v3 = vsel %vm539_vm0, %v440_v0, 0.0  ;;  %v1731_v0 = vsel %vm539_vm0, %v424_v11, 0.0 }
 0x350   :  { %v9578_v54 = vpop.xlane.xlu1 %1666  ;;  %v9580_v53 = vpop.xlane.xlu0 %1615 }
 0x353   :  { %1864 = vadd.xlane.f32.xlu1 %v1863_v63  ;;  %1813 = vadd.xlane.f32.xlu0 %v1812_v24  ;;  %v453_v63 = vld [vmem:[%s10945_s0 + $0xd50] sm:$0xff] }
 0x354   :  { %v9590_v62 = vpop.xlane.xlu1 %1579  ;;  %v9592_v41 = vpop.xlane.xlu0 %1528 }
 0x355   :  { %v4588_v12 = vrot.slane %v9590_v62, %v6999_v29 }
 0x357   :  { %1777 = vadd.xlane.f32.xlu1 %v1776_v26  ;;  %1726 = vadd.xlane.f32.xlu0 %v1725_v37  ;;  %v1818_v26 = vsel %vm539_vm0, %v453_v63, 0.0  ;;  %v441_v37 = vld [vmem:[%s10945_s0 + $0xcf0] sm:$0xff] }
 0x358   :  { %v9602_v39 = vpop.xlane.xlu1 %1669  ;;  %v9604_v20 = vpop.xlane.xlu0 %1618 }
 0x35b   :  { %1867 = vadd.xlane.f32.xlu1 %v1866_v38  ;;  %1816 = vadd.xlane.f32.xlu0 %v1815_v22  ;;  %v1782_v22 = vsel %vm539_vm0, %v441_v37, 0.0 }
 0x35c   :  { %v9614_v21 = vpop.xlane.xlu1 %1582  ;;  %v9616_v19 = vpop.xlane.xlu0 %1531 }
 0x35f   :  { %1780 = vadd.xlane.f32.xlu1 %v1779_v3  ;;  %1729 = vadd.xlane.f32.xlu0 %v1728_v4  ;;  %v454_v3 = vld [vmem:[%s10945_s0 + $0xd58] sm:$0xff]  ;;  %v2221_v4 = vld [vmem:[%s10946_s1 + $0x480] sm:$0xff] }
 0x360   :  { %v9626_v24 = vpop.xlane.xlu1 %1672  ;;  %v9628_v25 = vpop.xlane.xlu0 %1621  ;;  %v1821_v37 = vsel %vm539_vm0, %v454_v3, 0.0  ;;  %v6423_v11 = vpack.c.bf16 %v2222_v9, %v2221_v4  ;;  %v472_v4 = vld [vmem:[%s10945_s0 + $0xde8] sm:$0xff]  ;;  %v455_v9 = vld [vmem:[%s10945_s0 + $0xd60] sm:$0xff] }
 0x362   :  { %6424 = vmatprep.subr.bf16.mxu0 %v6423_v11  ;;  %v1875_v11 = vsel %vm539_vm0, %v472_v4, 0.0  ;;  %v4568_v4 = vrot.slane %v9488_v45, %v6949_v57  ;;  %v457_v45 = vld [vmem:[%s10945_s0 + $0xd70] sm:$0xff] }
 0x363   :  { %1870 = vadd.xlane.f32.xlu1 %v1869_v49  ;;  %1819 = vadd.xlane.f32.xlu0 %v1818_v26  ;;  %v1872_v26 = vsel %vm539_vm0, %v471_v5, 0.0  ;;  %v1830_v28 = vsel %vm539_vm0, %v457_v45, 0.0 }
 0x364   :  { %v9638_v60 = vpop.xlane.xlu1 %1585  ;;  %v9640_v38 = vpop.xlane.xlu0 %1534  ;;  %v4569_v17 = vsel %vm2891_vm6, %v4568_v4, %v9472_v33  ;;  %v474_v33 = vld [vmem:[%s10945_s0 + $0xdf8] sm:$0xff]  ;;  %v492_v4 = vld [vmem:[%s10945_s0 + $0xe88] sm:$0xff] }
 0x365   :  { %v4598_v62 = vrot.slane %v9638_v60, %v7007_v42 }
 0x367   :  { %1783 = vadd.xlane.f32.xlu1 %v1782_v22  ;;  %1732 = vadd.xlane.f32.xlu0 %v1731_v0  ;;  %v442_v22 = vld [vmem:[%s10945_s0 + $0xcf8] sm:$0xff]  ;;  %v425_v0 = vld [vmem:[%s10945_s0 + $0xc70] sm:$0xff] }
 0x368   :  { %v9656_v63 = vpop.xlane.xlu1 %1675  ;;  %v9658_v49 = vpop.xlane.xlu0 %1624  ;;  %v1785_v5 = vsel %vm539_vm0, %v442_v22, 0.0  ;;  %v1734_v3 = vsel %vm539_vm0, %v425_v0, 0.0  ;;  %v1824_v22 = vsel %vm539_vm0, %v455_v9, 0.0  ;;  %v2253_v0 = vld [vmem:[%s10946_s1 + $0x580] sm:$0xff] }
 0x36b   :  { %1873 = vadd.xlane.f32.xlu1 %v1872_v26  ;;  %1822 = vadd.xlane.f32.xlu0 %v1821_v37 }
 0x36c   :  { %v9668_v15 = vpop.xlane.xlu1 %1588  ;;  %v9670_v6 = vpop.xlane.xlu0 %1537 }
 0x36d   :  { %v4603_v60 = vrot.slane %v9668_v15, %v7013_v46 }
 0x36f   :  { %1786 = vadd.xlane.f32.xlu1 %v1785_v5  ;;  %1735 = vadd.xlane.f32.xlu0 %v1734_v3  ;;  %v426_v5 = vld [vmem:[%s10945_s0 + $0xc78] sm:$0xff]  ;;  %v2254_v3 = vld [vmem:[%s10946_s1 + $0x588] sm:$0xff] }
 0x370   :  { %v9680_v26 = vpop.xlane.xlu1 %1678  ;;  %v9682_v37 = vpop.xlane.xlu0 %1627  ;;  %v6455_v9 = vpack.c.bf16 %v2254_v3, %v2253_v0  ;;  %v1737_v48 = vsel %vm539_vm0, %v426_v5, 0.0  ;;  %v4489_v0 = vrot.slane %v9516_v43, %v6949_v57  ;;  %v4593_v5 = vrot.slane %v9614_v21, %v6987_v23  ;;  %v458_v3 = vld [vmem:[%s10945_s0 + $0xd78] sm:$0xff] }
 0x371   :  { %v4494_v43 = vrot.slane %v9544_v44, %v6946_v56  ;;  %v4499_v44 = vrot.slane %v9568_v18, %v6979_v13  ;;  %v1935_v18 = vsel %vm539_vm0, %v492_v4, 0.0  ;;  %v4519_v4 = vrot.slane %v9670_v6, %v7007_v42 }
 0x372   :  { %6456 = vmatprep.subr.bf16.mxu1 %v6455_v9  ;;  %v4490_v31 = vsel %vm2891_vm6, %v4489_v0, %v9500_v14  ;;  %v476_v0 = vld [vmem:[%s10945_s0 + $0xe08] sm:$0xff] }
 0x373   :  { %1876 = vadd.xlane.f32.xlu1 %v1875_v11  ;;  %1825 = vadd.xlane.f32.xlu0 %v1824_v22  ;;  %v473_v11 = vld [vmem:[%s10945_s0 + $0xdf0] sm:$0xff]  ;;  %v4574_v22 = vsel %vm2898_vm7, %v4573_v47, %v4569_v17  ;;  %v1833_v17 = vsel %vm539_vm0, %v458_v3, 0.0  ;;  %v4495_v15 = vsel %vm2898_vm7, %v4494_v43, %v4490_v31 }
 0x374   :  { %v1592_v55 = vpop.xlane.xlu1 %1591  ;;  %v9704_v50 = vpop.xlane.xlu0 %1540  ;;  %v4579_v47 = vsel %vm10971_vm8, %v4578_v1, %v4574_v22  ;;  %v1878_v21 = vsel %vm539_vm0, %v473_v11, 0.0  ;;  %v491_v1 = vld [vmem:[%s10945_s0 + $0xe80] sm:$0xff]  ;;  %v1881_v22 = vsel %vm539_vm0, %v474_v33, 0.0  ;;  %vm10973_vm8 = vcmask 851712  }
 0x375   :  { %v4584_v9 = vsel %vm2912_vm9, %v4583_v34, %v4579_v47  ;;  %v4608_v11 = vrot.slane %v1592_v55, %v7027_v59  ;;  %v1932_v34 = vsel %vm539_vm0, %v491_v1, 0.0  ;;  %v4726_v55 = vrot.slane %v9554_v27, %v6949_v57 }
 0x376   :  { %v4589_v45 = vsel %vm10972_vm10, %v4588_v12, %v4584_v9  ;;  %v4642_v12 = vrot.slane %v9556_v8, %v6924_v40  ;;  %vm10974_vm10 = vcmask 589312   ;;  %v4731_v8 = vrot.slane %v9578_v54, %v6946_v56  ;;  %v475_v9 = vld [vmem:[%s10945_s0 + $0xe00] sm:$0xff] }
 0x377   :  { %1828 = vadd.xlane.f32.xlu1 %v1827_v51  ;;  %1738 = vadd.xlane.f32.xlu0 %v1737_v48  ;;  %v4594_v35 = vsel %vm2926_vm11, %v4593_v5, %v4589_v45  ;;  %v4500_v5 = vsel %vm10974_vm10, %v4499_v44, %v4495_v15  ;;  %v4509_v47 = vrot.slane %v9616_v19, %v6999_v29  ;;  %v1887_v54 = vsel %vm539_vm0, %v476_v0, 0.0  ;;  %v2205_v15 = vld [vmem:[%s10946_s1 + $0x400] sm:$0xff] }
 0x378   :  { %v9737_v51 = vpop.xlane.xlu1 %1681  ;;  %v9739_v48 = vpop.xlane.xlu0 %1630  ;;  %v4599_v3 = vsel %vm10973_vm8, %v4598_v62, %v4594_v35  ;;  %v4647_v35 = vrot.slane %v9580_v53, %v6949_v57  ;;  %v4736_v62 = vrot.slane %v9602_v39, %v6979_v13  ;;  %v4652_v53 = vrot.slane %v9604_v20, %v6946_v56 }
 0x379   :  { %v4604_v31 = vsel %vm2940_vm13, %v4603_v60, %v4599_v3  ;;  %v4741_v19 = vrot.slane %v9626_v24, %v6967_v7  ;;  %v4727_v20 = vsel %vm2891_vm6, %v4726_v55, %v9537_v36  ;;  %v4643_v24 = vsel %vm2884_vm5, %v4642_v12, %v9540_v16 }
 0x37a   :  { %v4609_v43 = vsel %vm2947_vm14, %v4608_v11, %v4604_v31  ;;  %v4524_v6 = vrot.slane %v9704_v50, %v7013_v46  ;;  %v4732_v60 = vsel %vm2898_vm7, %v4731_v8, %v4727_v20  ;;  %vm10975_vm8 = vcmask 720512   ;;  %v2224_v8 = vld [vmem:[%s10946_s1 + $0x498] sm:$0xff] }
 0x37b   :  { %1831 = vadd.xlane.f32.xlu1 %v1830_v28  ;;  %1879 = vadd.xlane.f32.xlu0 %v1878_v21  ;;  %v4504_v28 = vrot.slane %v9592_v41, %v6967_v7  ;;  %v4514_v41 = vrot.slane %v9640_v38, %v6987_v23  ;;  %v4657_v36 = vrot.slane %v9628_v25, %v6979_v13  ;;  %v2206_v25 = vld [vmem:[%s10946_s1 + $0x408] sm:$0xff] }
 0x37c   :  { %v1595_v33 = vpop.xlane.xlu1 %1594  ;;  %v1544_v14 = vpop.xlane.xlu0 %1543  ;;  %v4648_v16 = vsel %vm2891_vm6, %v4647_v35, %v4643_v24  ;;  %v4746_v0 = vrot.slane %v9656_v63, %v6999_v29  ;;  %v4667_v63 = vrot.slane %v9682_v37, %v6999_v29  ;;  %v2208_v37 = vld [vmem:[%s10946_s1 + $0x418] sm:$0xff] }
 0x37d   :  { %v4613_v27 = vrot.slane %v1595_v33, %v7032_v61  ;;  %v4505_v44 = vsel %vm2912_vm9, %v4504_v28, %v4500_v5  ;;  %v4529_v11 = vrot.slane %v1544_v14, %v7027_v59  ;;  %v4653_v55 = vsel %vm2898_vm7, %v4652_v53, %v4648_v16  ;;  %v2207_v53 = vld [vmem:[%s10946_s1 + $0x410] sm:$0xff] }
 0x37e   :  { %v4510_v45 = vsel %vm10975_vm8, %v4509_v47, %v4505_v44  ;;  %vm10976_vm8 = vcmask 851712   ;;  %v4662_v5 = vrot.slane %v9658_v49, %v6967_v7  ;;  %v4658_v35 = vsel %vm10974_vm10, %v4657_v36, %v4653_v55 }
 0x37f   :  { %1834 = vadd.xlane.f32.xlu1 %v1833_v17  ;;  %1882 = vadd.xlane.f32.xlu0 %v1881_v22  ;;  %v4614_v21 = vsel %vm2954_vm15, %v4613_v27, %v4609_v43  ;;  %v4737_v17 = vsel %vm10974_vm10, %v4736_v62, %v4732_v60  ;;  %v4515_v50 = vsel %vm2926_vm11, %v4514_v41, %v4510_v45  ;;  %v1884_v22 = vsel %vm539_vm0, %v475_v9, 0.0  ;;  %v2223_v27 = vld [vmem:[%s10946_s1 + $0x490] sm:$0xff] }
 0x380   :  { %v9795_v1 = vpop.xlane.xlu1 %1684  ;;  %v9797_v39 = vpop.xlane.xlu0 %1633  ;;  %v5411_v38 = vsel %vm5405_vm12, %v4614_v21, %v7541_v2  ;;  %v477_v2 = vld [vmem:[%s10945_s0 + $0xe10] sm:$0xff]  ;;  %v4742_v12 = vsel %vm2912_vm9, %v4741_v19, %v4737_v17  ;;  %v4520_v3 = vsel %vm10976_vm8, %v4519_v4, %v4515_v50  ;;  %v6425_v49 = vpack.c.bf16 %v2206_v25, %v2205_v15  ;;  %v2209_v17 = vld [vmem:[%s10946_s1 + $0x420] sm:$0xff]  ;;  %v2210_v50 = vld [vmem:[%s10946_s1 + $0x428] sm:$0xff] }
 0x381   :  { %5642 = vmatprep.mubr.f32.mxu0 %v5411_v38  ;;  %v4525_v28 = vsel %vm2940_vm13, %v4524_v6, %v4520_v3  ;;  %v4751_v43 = vrot.slane %v9680_v26, %v6987_v23  ;;  %v4672_v62 = vrot.slane %v9739_v48, %v6987_v23  ;;  %v4756_v26 = vrot.slane %v9737_v51, %v7007_v42  ;;  %v523_v38 = vld [vmem:[%s10945_s0 + $0xf80] sm:$0xff]  ;;  %v2226_v6 = vld [vmem:[%s10946_s1 + $0x4a8] sm:$0xff]  ;;  %v478_v3 = vld [vmem:[%s10945_s0 + $0xe18] sm:$0xff] }
 0x382   :  { %v4530_v47 = vsel %vm2947_vm14, %v4529_v11, %v4525_v28  ;;  %v4677_v48 = vrot.slane %v9797_v39, %v7007_v42  ;;  %v6427_v9 = vpack.c.bf16 %v2224_v8, %v2223_v27  ;;  %vm10977_vm8 = vcmask 720512   ;;  %v494_v39 = vld [vmem:[%s10945_s0 + $0xe98] sm:$0xff]  ;;  %v2227_v27 = vld [vmem:[%s10946_s1 + $0x4b0] sm:$0xff] }
 0x383   :  { %1936 = vadd.xlane.f32.xlu1 %v1935_v18  ;;  %1933 = vadd.xlane.f32.xlu0 %v1932_v34  ;;  %v1890_v18 = vsel %vm539_vm0, %v477_v2, 0.0  ;;  %v493_v34 = vld [vmem:[%s10945_s0 + $0xe90] sm:$0xff]  ;;  %v4747_v20 = vsel %vm10977_vm8, %v4746_v0, %v4742_v12  ;;  %v4663_v24 = vsel %vm2912_vm9, %v4662_v5, %v4658_v35  ;;  %v4761_v51 = vrot.slane %v9795_v1, %v7013_v46  ;;  %vm10978_vm10 = vmmov %vm10977_vm8  ;;  %v2228_v8 = vld [vmem:[%s10946_s1 + $0x4b8] sm:$0xff] }
 0x384   :  { %v1637_v33 = vpop.xlane.xlu1 %1636  ;;  %v1547_v14 = vpop.xlane.xlu0 %1546  ;;  %v1938_v21 = vsel %vm539_vm0, %v493_v34, 0.0  ;;  %v4668_v2 = vsel %vm10978_vm10, %v4667_v63, %v4663_v24  ;;  %v6429_v45 = vpack.c.bf16 %v2208_v37, %v2207_v53  ;;  %v4752_v36 = vsel %vm2926_vm11, %v4751_v43, %v4747_v20  ;;  %v2256_v43 = vld [vmem:[%s10946_s1 + $0x598] sm:$0xff]  ;;  %v2211_v37 = vld [vmem:[%s10946_s1 + $0x430] sm:$0xff] }
 0x385   :  { %v4534_v31 = vrot.slane %v1547_v14, %v7032_v61  ;;  %v4682_v44 = vrot.slane %v1637_v33, %v7013_v46  ;;  %v4673_v11 = vsel %vm2926_vm11, %v4672_v62, %v4668_v2  ;;  %v2028_v16 = vsel %vm539_vm0, %v523_v38, 0.0  ;;  %v524_v33 = vld [vmem:[%s10945_s0 + $0xf88] sm:$0xff]  ;;  %v507_v38 = vld [vmem:[%s10945_s0 + $0xf00] sm:$0xff] }
 0x386   :  { %vm10979_vm8 = vcmask 851712   ;;  %v1941_v12 = vsel %vm539_vm0, %v494_v39, 0.0  ;;  %v2031_v53 = vsel %vm539_vm0, %v524_v33, 0.0  ;;  %v6435_v24 = vpack.c.bf16 %v2228_v8, %v2227_v27  ;;  %v2240_v39 = vld [vmem:[%s10946_s1 + $0x518] sm:$0xff] }
 0x387   :  { %1888 = vadd.xlane.f32.xlu1 %v1887_v54  ;;  %1885 = vadd.xlane.f32.xlu0 %v1884_v22  ;;  %v4535_v41 = vsel %vm2954_vm15, %v4534_v31, %v4530_v47  ;;  %v4757_v22 = vsel %vm10979_vm8, %v4756_v26, %v4752_v36  ;;  %vm10980_vm10 = vmmov %vm10979_vm8  ;;  %v2238_v31 = vld [vmem:[%s10946_s1 + $0x508] sm:$0xff]  ;;  %v6433_v47 = vpack.c.bf16 %v2210_v50, %v2209_v17  ;;  %v2212_v26 = vld [vmem:[%s10946_s1 + $0x438] sm:$0xff]  ;;  %v1980_v50 = vsel %vm539_vm0, %v507_v38, 0.0 }
 0x388   :  { %v1640_v54 = vpop.xlane.xlu1 %1639  ;;  %v1688_v19 = vpop.xlane.xlu0 %1687  ;;  %v5410_v4 = vsel %vm5405_vm12, %v4535_v41, %v7444_v10  ;;  %v2225_v10 = vld [vmem:[%s10946_s1 + $0x4a0] sm:$0xff]  ;;  %v4678_v15 = vsel %vm10980_vm10, %v4677_v48, %v4673_v11  ;;  %v4762_v34 = vsel %vm2940_vm13, %v4761_v51, %v4757_v22  ;;  %v2239_v51 = vld [vmem:[%s10946_s1 + $0x510] sm:$0xff]  ;;  %v6437_v2 = vpack.c.bf16 %v2212_v26, %v2211_v37  ;;  %v2214_v11 = vld [vmem:[%s10946_s1 + $0x448] sm:$0xff] }
 0x389   :  { %5643 = vmatmul.mubr.f32.vlgmr.msra.gmra.mrb[2].mxu0 %v5410_v4  ;;  %v4687_v60 = vrot.slane %v1640_v54, %v7027_v59  ;;  %v4766_v1 = vrot.slane %v1688_v19, %v7027_v59  ;;  %v6431_v14 = vpack.c.bf16 %v2226_v6, %v2225_v10  ;;  %v4683_v0 = vsel %vm2940_vm13, %v4682_v44, %v4678_v15  ;;  %v2229_v10 = vld [vmem:[%s10946_s1 + $0x4c0] sm:$0xff]  ;;  %v2230_v6 = vld [vmem:[%s10946_s1 + $0x4c8] sm:$0xff]  ;;  %v525_v15 = vld [vmem:[%s10945_s0 + $0xf90] sm:$0xff] }
 0x38a   :  { %6426 = vmatpush3.bf16.msra.mxu0 %v6425_v49  ;;  %v2255_v49 = vld [vmem:[%s10946_s1 + $0x590] sm:$0xff]  ;;  %v2213_v36 = vld [vmem:[%s10946_s1 + $0x440] sm:$0xff]  ;;  %v2260_v27 = vld [vmem:[%s10946_s1 + $0x5b8] sm:$0xff]  ;;  %vm10984_vm8 = vcmask 589312   ;;  %vm10985_vm10 = vcmask 720512  }
 0x38b   :  { %1891 = vadd.xlane.f32.xlu1 %v1890_v18  ;;  %1939 = vadd.xlane.f32.xlu0 %v1938_v21  ;;  %v2237_v18 = vld [vmem:[%s10946_s1 + $0x500] sm:$0xff]  ;;  %v4688_v35 = vsel %vm2947_vm14, %v4687_v60, %v4683_v0  ;;  %v4767_v63 = vsel %vm2947_vm14, %v4766_v1, %v4762_v34  ;;  %v1893_v21 = vsel %vm539_vm0, %v478_v3, 0.0  ;;  %v2258_v1 = vld [vmem:[%s10946_s1 + $0x5a8] sm:$0xff]  ;;  %v2231_v0 = vld [vmem:[%s10946_s1 + $0x4d0] sm:$0xff] }
 0x38c   :  { %v1643_v25 = vpop.xlane.xlu1 %1642  ;;  %v1691_v55 = vpop.xlane.xlu0 %1690  ;;  %6428 = vmatprep.subr.bf16.mxu0 %v6427_v9  ;;  %v495_v9 = vld [vmem:[%s10945_s0 + $0xea0] sm:$0xff]  ;;  %v6457_v20 = vpack.c.bf16 %v2238_v31, %v2237_v18  ;;  %v2242_v34 = vld [vmem:[%s10946_s1 + $0x528] sm:$0xff]  ;;  %v2259_v31 = vld [vmem:[%s10946_s1 + $0x5b0] sm:$0xff] }
 0x38d   :  { %v4692_v5 = vrot.slane %v1643_v25, %v7032_v61  ;;  %v4771_v28 = vrot.slane %v1691_v55, %v7032_v61  ;;  %v2257_v60 = vld [vmem:[%s10946_s1 + $0x5a0] sm:$0xff]  ;;  %v1944_v22 = vsel %vm539_vm0, %v495_v9, 0.0  ;;  %v508_v25 = vld [vmem:[%s10945_s0 + $0xf08] sm:$0xff]  ;;  %v6461_v55 = vpack.c.bf16 %v2240_v39, %v2239_v51  ;;  %v2243_v26 = vld [vmem:[%s10946_s1 + $0x530] sm:$0xff] }
 0x38e   :  { %6430 = vmatpush3.bf16.msra.mxu0 %v6429_v45  ;;  %v2241_v3 = vld [vmem:[%s10946_s1 + $0x520] sm:$0xff]  ;;  %v6463_v18 = vpack.c.bf16 %v2258_v1, %v2257_v60  ;;  %v2244_v38 = vld [vmem:[%s10946_s1 + $0x538] sm:$0xff] }
 0x38f   :  { %2029 = vadd.xlane.f32.xlu1 %v2028_v16  ;;  %1942 = vadd.xlane.f32.xlu0 %v1941_v12  ;;  %v4772_v62 = vsel %vm2954_vm15, %v4771_v28, %v4767_v63  ;;  %v4693_v41 = vsel %vm2954_vm15, %v4692_v5, %v4688_v35  ;;  %v6439_v12 = vpack.c.bf16 %v2230_v6, %v2229_v10  ;;  %v2232_v5 = vld [vmem:[%s10946_s1 + $0x4d8] sm:$0xff]  ;;  %v2215_v35 = vld [vmem:[%s10946_s1 + $0x450] sm:$0xff]  ;;  %v2233_v9 = vld [vmem:[%s10946_s1 + $0x4e0] sm:$0xff] }
 0x390   :  { %v1745_v48 = vpop.xlane.xlu1 %1744  ;;  %v1742_v54 = vpop.xlane.xlu0 %1741  ;;  %v5413_v19 = vsel %vm5405_vm12, %v4772_v62, %v7735_v52  ;;  %v5412_v4 = vsel %vm5405_vm12, %v4693_v41, %v7638_v58  ;;  %6432 = vmatprep.subr.bf16.mxu0 %v6431_v14  ;;  %v6459_v58 = vpack.c.bf16 %v2256_v43, %v2255_v49  ;;  %v6441_v28 = vpack.c.bf16 %v2214_v11, %v2213_v36  ;;  %v2216_v63 = vld [vmem:[%s10946_s1 + $0x458] sm:$0xff]  ;;  %v496_v41 = vld [vmem:[%s10945_s0 + $0xea8] sm:$0xff]  ;;  %v2261_v51 = vld [vmem:[%s10946_s1 + $0x5c0] sm:$0xff] }
 0x391   :  { %v4859_v52 = vrot.slane %v1745_v48, %v6912_v32  ;;  %v4855_v44 = vrot.slane %v1742_v54, %v6906_v30  ;;  %5712 = vmatprep.mubr.f32.mxu1 %v5413_v19  ;;  %v2034_v43 = vsel %vm539_vm0, %v525_v15, 0.0  ;;  %v1983_v62 = vsel %vm539_vm0, %v508_v25, 0.0  ;;  %v10981_v48 = vld [vmem:[#allocation6_spill] sm:$0xff]  ;;  %v2217_v39 = vld [vmem:[%s10946_s1 + $0x460] sm:$0xff] }
 0x392   :  { %5713 = vmatmul.mubr.f32.vlgmr.msra.gmra.mrb[2].mxu1 %v5412_v4  ;;  %6434 = vmatpush3.bf16.msra.mxu0 %v6433_v47  ;;  %v6443_v37 = vpack.c.bf16 %v2232_v5, %v2231_v0  ;;  %v6467_v4 = vpack.c.bf16 %v2260_v27, %v2259_v31  ;;  %v2218_v10 = vld [vmem:[%s10946_s1 + $0x468] sm:$0xff]  ;;  %v1947_v60 = vsel %vm539_vm0, %v496_v41, 0.0  ;;  %v509_v36 = vld [vmem:[%s10945_s0 + $0xf10] sm:$0xff]  ;;  %v6469_v11 = vpack.c.bf16 %v2244_v38, %v2243_v26  ;;  %v2220_v0 = vld [vmem:[%s10946_s1 + $0x478] sm:$0xff] }
 0x393   :  { %v4860_v45 = vsel %vm2856_vm1, %v4859_v52, %v4855_v44  ;;  %1894 = vadd.xlane.f32.xlu1 %v1893_v21  ;;  %2032 = vadd.xlane.f32.xlu0 %v2031_v53  ;;  %v479_v21 = vld [vmem:[%s10945_s0 + $0xe20] sm:$0xff]  ;;  %v6465_v53 = vpack.c.bf16 %v2242_v34, %v2241_v3  ;;  %v2262_v52 = vld [vmem:[%s10946_s1 + $0x5c8] sm:$0xff]  ;;  %v6449_v3 = vpack.c.bf16 %v2218_v10, %v2217_v39  ;;  %v2219_v34 = vld [vmem:[%s10946_s1 + $0x470] sm:$0xff]  ;;  %v1986_v27 = vsel %vm539_vm0, %v509_v36, 0.0 }
 0x394   :  { %v1697_v16 = vpop.xlane.xlu1 %1696  ;;  %v1694_v17 = vpop.xlane.xlu0 %1693  ;;  %6458 = vmatpush3.bf16.msra.mxu1 %v6457_v20  ;;  %6436 = vmatprep.subr.bf16.mxu0 %v6435_v24  ;;  %v2234_v20 = vld [vmem:[%s10946_s1 + $0x4e8] sm:$0xff]  ;;  %v6445_v24 = vpack.c.bf16 %v2216_v63, %v2215_v35  ;;  %v1896_v1 = vsel %vm539_vm0, %v479_v21, 0.0  ;;  %v6471_v15 = vpack.c.bf16 %v2262_v52, %v2261_v51  ;;  %v2247_v21 = vld [vmem:[%s10946_s1 + $0x550] sm:$0xff]  ;;  %v2265_v26 = vld [vmem:[%s10946_s1 + $0x5e0] sm:$0xff] }
 0x395   :  { %v4780_v33 = vrot.slane %v1697_v16, %v6912_v32  ;;  %v4776_v14 = vrot.slane %v1694_v17, %v6906_v30  ;;  %6460 = vmatprep.subr.bf16.mxu1 %v6459_v58  ;;  %v6447_v16 = vpack.c.bf16 %v2234_v20, %v2233_v9  ;;  %v2245_v17 = vld [vmem:[%s10946_s1 + $0x540] sm:$0xff]  ;;  %v2246_v25 = vld [vmem:[%s10946_s1 + $0x548] sm:$0xff] }
 0x396   :  { %6438 = vmatpush3.bf16.msra.mxu0 %v6437_v2  ;;  %v6473_v35 = vpack.c.bf16 %v2246_v25, %v2245_v17  ;;  %v527_v51 = vld [vmem:[%s10945_s0 + $0xfa0] sm:$0xff] }
 0x397   :  { %v4781_v8 = vsel %vm2856_vm1, %v4780_v33, %v4776_v14  ;;  %1981 = vadd.xlane.f32.xlu1 %v1980_v50  ;;  %1945 = vadd.xlane.f32.xlu0 %v1944_v22  ;;  %v10982_v50 = vld [vmem:[#allocation5_spill] sm:$0xff]  ;;  %v2263_v33 = vld [vmem:[%s10946_s1 + $0x5d0] sm:$0xff]  ;;  %v2264_v14 = vld [vmem:[%s10946_s1 + $0x5d8] sm:$0xff]  ;;  %v2040_v17 = vsel %vm539_vm0, %v527_v51, 0.0 }
 0x398   :  { %v1700_v47 = vpop.xlane.xlu1 %1699  ;;  %v1748_v49 = vpop.xlane.xlu0 %1747  ;;  %6462 = vmatpush3.bf16.msra.mxu1 %v6461_v55  ;;  %6440 = vmatprep.subr.bf16.mxu0 %v6439_v12  ;;  %v2235_v55 = vld [vmem:[%s10946_s1 + $0x4f0] sm:$0xff]  ;;  %v2236_v12 = vld [vmem:[%s10946_s1 + $0x4f8] sm:$0xff]  ;;  %v6475_v41 = vpack.c.bf16 %v2264_v14, %v2263_v33 }
 0x399   :  { %v4785_v54 = vrot.slane %v1700_v47, %v10981_v48  ;;  %v4864_v19 = vrot.slane %v1748_v49, %v10981_v48  ;;  %6464 = vmatprep.subr.bf16.mxu1 %v6463_v18  ;;  %v6451_v63 = vpack.c.bf16 %v2236_v12, %v2235_v55  ;;  %v481_v33 = vld [vmem:[%s10945_s0 + $0xe30] sm:$0xff] }
 0x39a   :  { %6442 = vmatpush3.bf16.msra.mxu0 %v6441_v28 }
 0x39b   :  { %v4786_v44 = vsel %vm2863_vm2, %v4785_v54, %v4781_v8  ;;  %v4865_v58 = vsel %vm2863_vm2, %v4864_v19, %v4860_v45  ;;  %2035 = vadd.xlane.f32.xlu1 %v2034_v43  ;;  %1984 = vadd.xlane.f32.xlu0 %v1983_v62  ;;  %v526_v45 = vld [vmem:[%s10945_s0 + $0xf98] sm:$0xff]  ;;  %v497_v8 = vld [vmem:[%s10945_s0 + $0xeb0] sm:$0xff]  ;;  %v480_v62 = vld [vmem:[%s10945_s0 + $0xe28] sm:$0xff] }
 0x39c   :  { %v1838_v6 = vpop.xlane.xlu1 %1837  ;;  %v1751_v2 = vpop.xlane.xlu0 %1750  ;;  %6466 = vmatpush3.bf16.msra.mxu1 %v6465_v53  ;;  %6444 = vmatprep.subr.bf16.mxu0 %v6443_v37  ;;  %v2037_v31 = vsel %vm539_vm0, %v526_v45, 0.0  ;;  %v2248_v53 = vld [vmem:[%s10946_s1 + $0x558] sm:$0xff]  ;;  %v6453_v37 = vpack.c.bf16 %v2220_v0, %v2219_v34  ;;  %v2266_v54 = vld [vmem:[%s10946_s1 + $0x5e8] sm:$0xff]  ;;  %v1950_v20 = vsel %vm539_vm0, %v497_v8, 0.0 }
 0x39d   :  { %v4869_v22 = vrot.slane %v1751_v2, %v10982_v50  ;;  %6468 = vmatprep.subr.bf16.mxu1 %v6467_v4  ;;  %v5013_v47 = vrot.slane %v1838_v6, %v6906_v30  ;;  %v6477_v52 = vpack.c.bf16 %v2248_v53, %v2247_v21  ;;  %v6479_v10 = vpack.c.bf16 %v2266_v54, %v2265_v26  ;;  %v2249_v6 = vld [vmem:[%s10946_s1 + $0x560] sm:$0xff]  ;;  %v2250_v2 = vld [vmem:[%s10946_s1 + $0x568] sm:$0xff]  ;;  %v2252_v34 = vld [vmem:[%s10946_s1 + $0x578] sm:$0xff] }
 0x39e   :  { %6446 = vmatpush3.bf16.msra.mxu0 %v6445_v24  ;;  %v1899_v24 = vsel %vm539_vm0, %v480_v62, 0.0  ;;  %v6481_v25 = vpack.c.bf16 %v2250_v2, %v2249_v6  ;;  %v511_v62 = vld [vmem:[%s10945_s0 + $0xf20] sm:$0xff]  ;;  %v529_v6 = vld [vmem:[%s10945_s0 + $0xfb0] sm:$0xff]  ;;  %v512_v2 = vld [vmem:[%s10945_s0 + $0xf28] sm:$0xff] }
 0x39f   :  { %v4870_v18 = vsel %vm2870_vm3, %v4869_v22, %v4865_v58  ;;  %1948 = vadd.xlane.f32.xlu1 %v1947_v60  ;;  %1897 = vadd.xlane.f32.xlu0 %v1896_v1  ;;  %v10983_v58 = vld [vmem:[#allocation7_spill] sm:$0xff]  ;;  %v1992_v54 = vsel %vm539_vm0, %v511_v62, 0.0 }
 0x3a0   :  { %v1703_v5 = vpop.xlane.xlu1 %1702  ;;  %v1841_v28 = vpop.xlane.xlu0 %1840  ;;  %6470 = vmatpush3.bf16.msra.mxu1 %v6469_v11  ;;  %6448 = vmatprep.subr.bf16.mxu0 %v6447_v16  ;;  %v2267_v60 = vld [vmem:[%s10946_s1 + $0x5f0] sm:$0xff]  ;;  %v2268_v1 = vld [vmem:[%s10946_s1 + $0x5f8] sm:$0xff] }
 0x3a1   :  { %v4790_v49 = vrot.slane %v1703_v5, %v10982_v50  ;;  %v5017_v43 = vrot.slane %v1841_v28, %v6912_v32  ;;  %6472 = vmatprep.subr.bf16.mxu1 %v6471_v15  ;;  %v498_v15 = vld [vmem:[%s10945_s0 + $0xeb8] sm:$0xff]  ;;  %v6483_v14 = vpack.c.bf16 %v2268_v1, %v2267_v60 }
 0x3a2   :  { %6450 = vmatpush3.bf16.msra.mxu0 %v6449_v3  ;;  %v1953_v8 = vsel %vm539_vm0, %v498_v15, 0.0  ;;  %v483_v15 = vld [vmem:[%s10945_s0 + $0xe40] sm:$0xff] }
 0x3a3   :  { %v4791_v19 = vsel %vm2870_vm3, %v4790_v49, %v4786_v44  ;;  %v5018_v4 = vsel %vm2856_vm1, %v5017_v43, %v5013_v47  ;;  %2038 = vadd.xlane.f32.xlu1 %v2037_v31  ;;  %1987 = vadd.xlane.f32.xlu0 %v1986_v27  ;;  %v510_v44 = vld [vmem:[%s10945_s0 + $0xf18] sm:$0xff]  ;;  %v528_v43 = vld [vmem:[%s10945_s0 + $0xfa8] sm:$0xff] }
 0x3a4   :  { %v1790_v38 = vpop.xlane.xlu1 %1789  ;;  %v1754_v9 = vpop.xlane.xlu0 %1753  ;;  %6474 = vmatpush3.bf16.msra.mxu1 %v6473_v35  ;;  %6452 = vmatprep.subr.bf16.mxu0 %v6451_v63  ;;  %v1989_v22 = vsel %vm539_vm0, %v510_v44, 0.0  ;;  %v1902_v35 = vsel %vm539_vm0, %v481_v33, 0.0  ;;  %v2043_v26 = vsel %vm539_vm0, %v528_v43, 0.0 }
 0x3a5   :  { %v4874_v39 = vrot.slane %v1754_v9, %v10983_v58  ;;  %6476 = vmatprep.subr.bf16.mxu1 %v6475_v41  ;;  %v4934_v0 = vrot.slane %v1790_v38, %v6906_v30  ;;  %v499_v9 = vld [vmem:[%s10945_s0 + $0xec0] sm:$0xff] }
 0x3a6   :  { %6454 = vmatpush3.bf16.msra.mxu0 %v6453_v37 }
 0x3a7   :  { %v4875_v45 = vsel %vm2877_vm4, %v4874_v39, %v4870_v18  ;;  %v6047_v36 = vpop.f32.mrb[0].mxu0  ;;  %1951 = vadd.xlane.f32.xlu1 %v1950_v20  ;;  %1900 = vadd.xlane.f32.xlu0 %v1899_v24  ;;  %v2251_v18 = vld [vmem:[%s10946_s1 + $0x570] sm:$0xff]  ;;  %v482_v20 = vld [vmem:[%s10945_s0 + $0xe38] sm:$0xff]  ;;  %v1956_v39 = vsel %vm539_vm0, %v499_v9, 0.0 }
 0x3a8   :  { %v6048_v11 = vpop.f32.mrb[1].mxu0  ;;  %v1844_v16 = vpop.xlane.xlu1 %1843  ;;  %6478 = vmatpush3.bf16.msra.mxu1 %v6477_v52  ;;  %v6485_v63 = vpack.c.bf16 %v2252_v34, %v2251_v18  ;;  %v1905_v44 = vsel %vm539_vm0, %v482_v20, 0.0  ;;  %v1908_v18 = vsel %vm539_vm0, %v483_v15, 0.0 }
 0x3a9   :  { %v10136_v55 = vadd.f32 %v6048_v11, %v6047_v36  ;;  %v5022_v12 = vrot.slane %v1844_v16, %v10981_v48  ;;  %v1793_v3 = vpop.xlane.xlu0 %1792  ;;  %6480 = vmatprep.subr.bf16.mxu1 %v6479_v10  ;;  %v2046_v36 = vsel %vm539_vm0, %v529_v6, 0.0  ;;  %v1995_v11 = vsel %vm539_vm0, %v512_v2, 0.0  ;;  %v532_v2 = vld [vmem:[%s10945_s0 + $0xfc8] sm:$0xff] }
 0x3aa   :  { %v4938_v5 = vrot.slane %v1793_v3, %v6912_v32 }
 0x3ab   :  { %v5023_v28 = vsel %vm2863_vm2, %v5022_v12, %v5018_v4  ;;  %2041 = vadd.xlane.f32.xlu1 %v2040_v17  ;;  %1990 = vadd.xlane.f32.xlu0 %v1989_v22  ;;  %v500_v22 = vld [vmem:[%s10945_s0 + $0xec8] sm:$0xff] }
 0x3ac   :  { %v4939_v31 = vsel %vm2856_vm1, %v4938_v5, %v4934_v0  ;;  %v1757_v27 = vpop.xlane.xlu1 %1756  ;;  %6482 = vmatpush3.bf16.msra.mxu1 %v6481_v25  ;;  %v530_v0 = vld [vmem:[%s10945_s0 + $0xfb8] sm:$0xff]  ;;  %v513_v5 = vld [vmem:[%s10945_s0 + $0xf30] sm:$0xff] }
 0x3ad   :  { %v4879_v47 = vrot.slane %v1757_v27, %v6924_v40  ;;  %v1706_v49 = vpop.xlane.xlu0 %1705  ;;  %6484 = vmatprep.subr.bf16.mxu1 %v6483_v14  ;;  %v1959_v14 = vsel %vm539_vm0, %v500_v22, 0.0  ;;  %v1998_v27 = vsel %vm539_vm0, %v513_v5, 0.0  ;;  %v486_v22 = vld [vmem:[%s10945_s0 + $0xe58] sm:$0xff] }
 0x3ae   :  { %v4795_v41 = vrot.slane %v1706_v49, %v10983_v58 }
 0x3af   :  { %v10163_v21 = vsel %vm2884_vm5, %v4879_v47, %v4875_v45  ;;  %1954 = vadd.xlane.f32.xlu1 %v1953_v8  ;;  %1903 = vadd.xlane.f32.xlu0 %v1902_v35  ;;  %v484_v47 = vld [vmem:[%s10945_s0 + $0xe48] sm:$0xff] }
 0x3b0   :  { %v4796_v53 = vsel %vm2877_vm4, %v4795_v41, %v4791_v19  ;;  %v1847_v37 = vpop.xlane.xlu1 %1846  ;;  %6486 = vmatpush3.bf16.msra.mxu1 %v6485_v63  ;;  %v501_v63 = vld [vmem:[%s10945_s0 + $0xed0] sm:$0xff] }
 0x3b1   :  { %v5027_v4 = vrot.slane %v1847_v37, %v10982_v50  ;;  %v1796_v38 = vpop.xlane.xlu0 %1795  ;;  %v1911_v37 = vsel %vm539_vm0, %v484_v47, 0.0 }
 0x3b2   :  { %v4943_v24 = vrot.slane %v1796_v38, %v10981_v48 }
 0x3b3   :  { %v5028_v19 = vsel %vm2870_vm3, %v5027_v4, %v5023_v28  ;;  %2044 = vadd.xlane.f32.xlu1 %v2043_v26  ;;  %1993 = vadd.xlane.f32.xlu0 %v1992_v54  ;;  %v531_v54 = vld [vmem:[%s10945_s0 + $0xfc0] sm:$0xff]  ;;  %v514_v4 = vld [vmem:[%s10945_s0 + $0xf38] sm:$0xff] }
 0x3b4   :  { %v4944_v51 = vsel %vm2863_vm2, %v4943_v24, %v4939_v31  ;;  %v10178_v52 = vpop.xlane.xlu1 %1759  ;;  %v2049_v31 = vsel %vm539_vm0, %v530_v0, 0.0  ;;  %v2052_v9 = vsel %vm539_vm0, %v531_v54, 0.0  ;;  %v2001_v20 = vsel %vm539_vm0, %v514_v4, 0.0 }
 0x3b5   :  { %v1709_v10 = vpop.xlane.xlu0 %1708 }
 0x3b6   :  { %v4800_v60 = vrot.slane %v1709_v10, %v6924_v40 }
 0x3b7   :  { %1957 = vadd.xlane.f32.xlu1 %v1956_v39  ;;  %1906 = vadd.xlane.f32.xlu0 %v1905_v44 }
 0x3b8   :  { %v10190_v1 = vsel %vm2884_vm5, %v4800_v60, %v4796_v53  ;;  %v1850_v45 = vpop.xlane.xlu1 %1849  ;;  %v1962_v53 = vsel %vm539_vm0, %v501_v63, 0.0  ;;  %v515_v60 = vld [vmem:[%s10945_s0 + $0xf40] sm:$0xff] }
 0x3b9   :  { %v5032_v16 = vrot.slane %v1850_v45, %v10983_v58  ;;  %v1799_v17 = vpop.xlane.xlu0 %1798 }
 0x3ba   :  { %v4948_v25 = vrot.slane %v1799_v17, %v10982_v50  ;;  %v503_v17 = vld [vmem:[%s10945_s0 + $0xee0] sm:$0xff] }
 0x3bb   :  { %v5033_v12 = vsel %vm2877_vm4, %v5032_v16, %v5028_v19  ;;  %2047 = vadd.xlane.f32.xlu1 %v2046_v36  ;;  %1996 = vadd.xlane.f32.xlu0 %v1995_v11  ;;  %v502_v19 = vld [vmem:[%s10945_s0 + $0xed8] sm:$0xff]  ;;  %v2055_v36 = vsel %vm539_vm0, %v532_v2, 0.0  ;;  %v2004_v11 = vsel %vm539_vm0, %v515_v60, 0.0 }
 0x3bc   :  { %v4949_v3 = vsel %vm2870_vm3, %v4948_v25, %v4944_v51  ;;  %v10204_v33 = vpop.xlane.xlu1 %1762  ;;  %v485_v51 = vld [vmem:[%s10945_s0 + $0xe50] sm:$0xff]  ;;  %v1965_v44 = vsel %vm539_vm0, %v502_v19, 0.0  ;;  %v1968_v25 = vsel %vm539_vm0, %v503_v17, 0.0 }
 0x3bd   :  { %v10208_v34 = vpop.xlane.xlu0 %1711  ;;  %v1914_v10 = vsel %vm539_vm0, %v485_v51, 0.0  ;;  %v505_v19 = vld [vmem:[%s10945_s0 + $0xef0] sm:$0xff]  ;;  %v488_v51 = vld [vmem:[%s10945_s0 + $0xe68] sm:$0xff] }
 0x3be   :  { %v1923_v2 = vsel %vm539_vm0, %v488_v51, 0.0  ;;  %v536_v51 = vld [vmem:[%s10945_s0 + $0xfe8] sm:$0xff] }
 0x3bf   :  { %1960 = vadd.xlane.f32.xlu1 %v1959_v14  ;;  %1909 = vadd.xlane.f32.xlu0 %v1908_v18  ;;  %v533_v14 = vld [vmem:[%s10945_s0 + $0xfd0] sm:$0xff]  ;;  %v516_v18 = vld [vmem:[%s10945_s0 + $0xf48] sm:$0xff] }
 0x3c0   :  { %v1853_v28 = vpop.xlane.xlu1 %1852  ;;  %v2058_v5 = vsel %vm539_vm0, %v533_v14, 0.0 }
 0x3c1   :  { %v5037_v8 = vrot.slane %v1853_v28, %v6924_v40  ;;  %v1802_v35 = vpop.xlane.xlu0 %1801  ;;  %v2007_v28 = vsel %vm539_vm0, %v516_v18, 0.0 }
 0x3c2   :  { %v4953_v49 = vrot.slane %v1802_v35, %v10983_v58 }
 0x3c3   :  { %v10227_v43 = vsel %vm2884_vm5, %v5037_v8, %v5033_v12  ;;  %2050 = vadd.xlane.f32.xlu1 %v2049_v31  ;;  %1999 = vadd.xlane.f32.xlu0 %v1998_v27  ;;  %v1917_v12 = vsel %vm539_vm0, %v486_v22, 0.0  ;;  %v504_v27 = vld [vmem:[%s10945_s0 + $0xee8] sm:$0xff]  ;;  %v487_v8 = vld [vmem:[%s10945_s0 + $0xe60] sm:$0xff] }
 0x3c4   :  { %v10230_v62 = vsel %vm2877_vm4, %v4953_v49, %v4949_v3  ;;  %v10232_v41 = vpop.xlane.xlu1 %1765  ;;  %v1971_v63 = vsel %vm539_vm0, %v504_v27, 0.0  ;;  %v1920_v47 = vsel %vm539_vm0, %v487_v8, 0.0  ;;  %v2285_v22 = vld [vmem:[%s10946_s1 + $0x680] sm:$0xff] }
 0x3c5   :  { %v10236_v26 = vpop.xlane.xlu0 %1714 }
 0x3c7   :  { %1963 = vadd.xlane.f32.xlu1 %v1962_v53  ;;  %1912 = vadd.xlane.f32.xlu0 %v1911_v37  ;;  %v534_v53 = vld [vmem:[%s10945_s0 + $0xfd8] sm:$0xff]  ;;  %v517_v37 = vld [vmem:[%s10945_s0 + $0xf50] sm:$0xff] }
 0x3c8   :  { %v10244_v38 = vpop.xlane.xlu1 %1855  ;;  %v2061_v4 = vsel %vm539_vm0, %v534_v53, 0.0 }
 0x3c9   :  { %v10248_v24 = vpop.xlane.xlu0 %1804 }
 0x3cb   :  { %2053 = vadd.xlane.f32.xlu1 %v2052_v9  ;;  %2002 = vadd.xlane.f32.xlu0 %v2001_v20  ;;  %v2010_v9 = vsel %vm539_vm0, %v517_v37, 0.0 }
 0x3cc   :  { %v10256_v39 = vpop.xlane.xlu1 %1768 }
 0x3cd   :  { %v10260_v6 = vpop.xlane.xlu0 %1717 }
 0x3cf   :  { %1966 = vadd.xlane.f32.xlu1 %v1965_v44  ;;  %1915 = vadd.xlane.f32.xlu0 %v1914_v10  ;;  %v1974_v10 = vsel %vm539_vm0, %v505_v19, 0.0 }
 0x3d0   :  { %v10268_v45 = vpop.xlane.xlu1 %1858 }
 0x3d1   :  { %v10272_v16 = vpop.xlane.xlu0 %1807 }
 0x3d3   :  { %2056 = vadd.xlane.f32.xlu1 %v2055_v36  ;;  %2005 = vadd.xlane.f32.xlu0 %v2004_v11  ;;  %v535_v36 = vld [vmem:[%s10945_s0 + $0xfe0] sm:$0xff]  ;;  %v518_v11 = vld [vmem:[%s10945_s0 + $0xf58] sm:$0xff] }
 0x3d4   :  { %v10280_v15 = vpop.xlane.xlu1 %1771  ;;  %v2064_v18 = vsel %vm539_vm0, %v535_v36, 0.0 }
 0x3d5   :  { %v10284_v3 = vpop.xlane.xlu0 %1720 }
 0x3d7   :  { %1969 = vadd.xlane.f32.xlu1 %v1968_v25  ;;  %1918 = vadd.xlane.f32.xlu0 %v1917_v12  ;;  %v2286_v25 = vld [vmem:[%s10946_s1 + $0x688] sm:$0xff] }
 0x3d8   :  { %v10292_v0 = vpop.xlane.xlu1 %1861 }
 0x3d9   :  { %v10296_v31 = vpop.xlane.xlu0 %1810 }
 0x3db   :  { %2059 = vadd.xlane.f32.xlu1 %v2058_v5  ;;  %2008 = vadd.xlane.f32.xlu0 %v2007_v28  ;;  %v2013_v5 = vsel %vm539_vm0, %v518_v11, 0.0  ;;  %v6487_v28 = vpack.c.bf16 %v2286_v25, %v2285_v22  ;;  %v2317_v11 = vld [vmem:[%s10946_s1 + $0x780] sm:$0xff]  ;;  %v520_v22 = vld [vmem:[%s10945_s0 + $0xf68] sm:$0xff]  ;;  %v490_v25 = vld [vmem:[%s10945_s0 + $0xe78] sm:$0xff] }
 0x3dc   :  { %v10304_v35 = vpop.xlane.xlu1 %1774 }
 0x3dd   :  { %v10308_v49 = vpop.xlane.xlu0 %1723  ;;  %6488 = vmatprep.subr.bf16.mxu0 %v6487_v28  ;;  %v4889_v28 = vrot.slane %v10204_v33, %v6946_v56  ;;  %v537_v33 = vld [vmem:[%s10945_s0 + $0xff0] sm:$0xff] }
 0x3df   :  { %1972 = vadd.xlane.f32.xlu1 %v1971_v63  ;;  %1921 = vadd.xlane.f32.xlu0 %v1920_v47  ;;  %v506_v63 = vld [vmem:[%s10945_s0 + $0xef8] sm:$0xff]  ;;  %v489_v47 = vld [vmem:[%s10945_s0 + $0xe70] sm:$0xff] }
 0x3e0   :  { %v10316_v54 = vpop.xlane.xlu1 %1864 }
 0x3e1   :  { %v10320_v20 = vpop.xlane.xlu0 %1813 }
 0x3e3   :  { %2062 = vadd.xlane.f32.xlu1 %v2061_v4  ;;  %2011 = vadd.xlane.f32.xlu0 %v2010_v9  ;;  %v1977_v4 = vsel %vm539_vm0, %v506_v63, 0.0  ;;  %v1926_v9 = vsel %vm539_vm0, %v489_v47, 0.0  ;;  %v2019_v47 = vsel %vm539_vm0, %v520_v22, 0.0 }
 0x3e4   :  { %v10328_v44 = vpop.xlane.xlu1 %1777 }
 0x3e5   :  { %v10332_v60 = vpop.xlane.xlu0 %1726 }
 0x3e7   :  { %v6082_v17 = vpop.f32.mrb[0].mxu1  ;;  %1975 = vadd.xlane.f32.xlu1 %v1974_v10  ;;  %1924 = vadd.xlane.f32.xlu0 %v1923_v2  ;;  %v519_v10 = vld [vmem:[%s10945_s0 + $0xf60] sm:$0xff]  ;;  %v2067_v2 = vsel %vm539_vm0, %v536_v51, 0.0 }
 0x3e8   :  { %v6083_v12 = vpop.f32.mrb[1].mxu1  ;;  %v10346_v14 = vpop.xlane.xlu1 %1867  ;;  %v2016_v36 = vsel %vm539_vm0, %v519_v10, 0.0  ;;  %v4904_v10 = vrot.slane %v10280_v15, %v6999_v29  ;;  %v2070_v15 = vsel %vm539_vm0, %v537_v33, 0.0 }
 0x3e9   :  { %v6084_v27 = vadd.f32 %v6083_v12, %v6082_v17  ;;  %v10350_v8 = vpop.xlane.xlu0 %1816  ;;  %v2318_v12 = vld [vmem:[%s10946_s1 + $0x788] sm:$0xff] }
 0x3eb   :  { %v10359_v53 = vadd.f32 %v6084_v27, %v10136_v55  ;;  %2065 = vadd.xlane.f32.xlu1 %v2064_v18  ;;  %2014 = vadd.xlane.f32.xlu0 %v2013_v5  ;;  %v4884_v18 = vrot.slane %v10178_v52, %v6949_v57  ;;  %v6519_v5 = vpack.c.bf16 %v2318_v12, %v2317_v11 }
 0x3ec   :  { %v1781_v37 = vpop.xlane.xlu1 %1780  ;;  %v4894_v27 = vrot.slane %v10232_v41, %v6979_v13  ;;  %v4899_v52 = vrot.slane %v10256_v39, %v6967_v7  ;;  %v4805_v11 = vrot.slane %v10208_v34, %v6949_v57  ;;  %v4810_v12 = vrot.slane %v10236_v26, %v6946_v56  ;;  %v522_v34 = vld [vmem:[%s10945_s0 + $0xf78] sm:$0xff] }
 0x3ed   :  { %v10363_v19 = vpop.xlane.xlu0 %1729  ;;  %6520 = vmatprep.subr.bf16.mxu1 %v6519_v5  ;;  %v4885_v41 = vsel %vm2891_vm6, %v4884_v18, %v10163_v21  ;;  %v4914_v21 = vrot.slane %v10328_v44, %v7007_v42  ;;  %v4919_v18 = vrot.slane %v1781_v37, %v7013_v46  ;;  %v538_v44 = vld [vmem:[%s10945_s0 + $0xff8] sm:$0xff] }
 0x3ee   :  { %v4806_v37 = vsel %vm2891_vm6, %v4805_v11, %v10190_v1  ;;  %v5042_v1 = vrot.slane %v10244_v38, %v6949_v57  ;;  %v4963_v38 = vrot.slane %v10272_v16, %v6949_v57 }
 0x3ef   :  { %1978 = vadd.xlane.f32.xlu1 %v1977_v4  ;;  %1927 = vadd.xlane.f32.xlu0 %v1926_v9  ;;  %v1929_v4 = vsel %vm539_vm0, %v490_v25, 0.0  ;;  %v521_v9 = vld [vmem:[%s10945_s0 + $0xf70] sm:$0xff]  ;;  %v4811_v33 = vsel %vm2898_vm7, %v4810_v12, %v4806_v37  ;;  %v10987_v12 = vld [vmem:[#allocation9_spill] sm:$0xff] }
 0x3f0   :  { %v10371_v55 = vpop.xlane.xlu1 %1870  ;;  %v2022_v39 = vsel %vm539_vm0, %v521_v9, 0.0  ;;  %v2025_v9 = vsel %vm539_vm0, %v522_v34, 0.0  ;;  %v4973_v34 = vrot.slane %v10320_v20, %v6979_v13  ;;  %v2269_v20 = vld [vmem:[%s10946_s1 + $0x600] sm:$0xff] }
 0x3f1   :  { %v10378_v17 = vpop.xlane.xlu0 %1819 }
 0x3f3   :  { %2068 = vadd.xlane.f32.xlu1 %v2067_v2  ;;  %2017 = vadd.xlane.f32.xlu0 %v2016_v36  ;;  %v4890_v2 = vsel %vm2898_vm7, %v4889_v28, %v4885_v41  ;;  %v4909_v36 = vrot.slane %v10304_v35, %v6987_v23  ;;  %v4815_v41 = vrot.slane %v10260_v6, %v6979_v13 }
 0x3f4   :  { %v1784_v63 = vpop.xlane.xlu1 %1783  ;;  %v4895_v22 = vsel %vm10984_vm8, %v4894_v27, %v4890_v2  ;;  %vm10986_vm8 = vcmask 851712   ;;  %v4825_v6 = vrot.slane %v10308_v49, %v6999_v29 }
 0x3f5   :  { %v10402_v51 = vpop.xlane.xlu0 %1732  ;;  %v4900_v35 = vsel %vm2912_vm9, %v4899_v52, %v4895_v22  ;;  %v4924_v27 = vrot.slane %v1784_v63, %v7027_v59  ;;  %v2073_v52 = vsel %vm539_vm0, %v538_v44, 0.0  ;;  %v5047_v22 = vrot.slane %v10268_v45, %v6946_v56 }
 0x3f6   :  { %v4905_v28 = vsel %vm10985_vm10, %v4904_v10, %v4900_v35  ;;  %vm10988_vm0 = vcmask 589312   ;;  %v4968_v35 = vrot.slane %v10296_v31, %v6946_v56  ;;  %v4840_v44 = vrot.slane %v10402_v51, %v7013_v46 }
 0x3f7   :  { %2020 = vadd.xlane.f32.xlu1 %v2019_v47  ;;  %1930 = vadd.xlane.f32.xlu0 %v1929_v4  ;;  %v4910_v26 = vsel %vm2926_vm11, %v4909_v36, %v4905_v28  ;;  %v4958_v36 = vrot.slane %v10248_v24, %v6924_v40  ;;  %v5052_v24 = vrot.slane %v10292_v0, %v6979_v13 }
 0x3f8   :  { %v10420_v25 = vpop.xlane.xlu1 %1873  ;;  %v4915_v47 = vsel %vm10986_vm8, %v4914_v21, %v4910_v26  ;;  %v4816_v49 = vsel %vm10988_vm0, %v4815_v41, %v4811_v33  ;;  %v5043_v0 = vsel %vm2891_vm6, %v5042_v1, %v10227_v43  ;;  %vm10989_vm8 = vmmov %vm10988_vm0  ;;  %vm10990_vm0 = vcmask 851712   ;;  %v2287_v41 = vld [vmem:[%s10946_s1 + $0x690] sm:$0xff] }
 0x3f9   :  { %v10427_v5 = vpop.xlane.xlu0 %1822  ;;  %v4920_v63 = vsel %vm2940_vm13, %v4919_v18, %v4915_v47  ;;  %v4835_v18 = vrot.slane %v10363_v19, %v7007_v42  ;;  %v4959_v28 = vsel %vm2884_vm5, %v4958_v36, %v10230_v62  ;;  %v5048_v31 = vsel %vm2898_vm7, %v5047_v22, %v5043_v0  ;;  %v2270_v62 = vld [vmem:[%s10946_s1 + $0x608] sm:$0xff] }
 0x3fa   :  { %v4925_v11 = vsel %vm2947_vm14, %v4924_v27, %v4920_v63  ;;  %v4964_v26 = vsel %vm2891_vm6, %v4963_v38, %v4959_v28  ;;  %v5053_v43 = vsel %vm10989_vm8, %v5052_v24, %v5048_v31  ;;  %v2288_v63 = vld [vmem:[%s10946_s1 + $0x698] sm:$0xff]  ;;  %v5062_v1 = vrot.slane %v10346_v14, %v6999_v29  ;;  %v2271_v24 = vld [vmem:[%s10946_s1 + $0x610] sm:$0xff] }
 0x3fb   :  { %2023 = vadd.xlane.f32.xlu1 %v2022_v39  ;;  %2071 = vadd.xlane.f32.xlu0 %v2070_v15  ;;  %v4820_v39 = vrot.slane %v10284_v3, %v6967_v7  ;;  %v4830_v3 = vrot.slane %v10332_v60, %v6987_v23  ;;  %v4969_v51 = vsel %vm2898_vm7, %v4968_v35, %v4964_v26  ;;  %v2272_v14 = vld [vmem:[%s10946_s1 + $0x618] sm:$0xff]  ;;  %v2289_v35 = vld [vmem:[%s10946_s1 + $0x6a0] sm:$0xff] }
 0x3fc   :  { %v1787_v4 = vpop.xlane.xlu1 %1786  ;;  %v4988_v36 = vrot.slane %v10427_v5, %v6987_v23  ;;  %v5067_v22 = vrot.slane %v10371_v55, %v6987_v23  ;;  %v6491_v38 = vpack.c.bf16 %v2288_v63, %v2287_v41  ;;  %v6493_v31 = vpack.c.bf16 %v2272_v14, %v2271_v24  ;;  %v2276_v24 = vld [vmem:[%s10946_s1 + $0x638] sm:$0xff]  ;;  %v2303_v14 = vld [vmem:[%s10946_s1 + $0x710] sm:$0xff] }
 0x3fd   :  { %v4929_v10 = vrot.slane %v1787_v4, %v7032_v61  ;;  %v1736_v2 = vpop.xlane.xlu0 %1735  ;;  %v4821_v60 = vsel %vm2912_vm9, %v4820_v39, %v4816_v49  ;;  %v5057_v4 = vrot.slane %v10316_v54, %v6967_v7 }
 0x3fe   :  { %v4826_v19 = vsel %vm10985_vm10, %v4825_v6, %v4821_v60  ;;  %v4845_v27 = vrot.slane %v1736_v2, %v7027_v59  ;;  %vm10991_vm10 = vmmov %vm10989_vm8  ;;  %v4983_v2 = vrot.slane %v10378_v17, %v6999_v29  ;;  %vm10993_vm8 = vcmask 720512  }
 0x3ff   :  { %2026 = vadd.xlane.f32.xlu1 %v2025_v9  ;;  %2074 = vadd.xlane.f32.xlu0 %v2073_v52  ;;  %v4930_v21 = vsel %vm2954_vm15, %v4929_v10, %v4925_v11  ;;  %v4831_v37 = vsel %vm2926_vm11, %v4830_v3, %v4826_v19  ;;  %v4978_v9 = vrot.slane %v10350_v8, %v6967_v7 }
 0x400   :  { %v10466_v15 = vpop.xlane.xlu1 %1876  ;;  %v5415_v45 = vsel %vm5405_vm12, %v4930_v21, %v10987_v12  ;;  %v4836_v52 = vsel %vm10990_vm0, %v4835_v18, %v4831_v37  ;;  %v4974_v10 = vsel %vm10991_vm10, %v4973_v34, %v4969_v51  ;;  %v6489_v11 = vpack.c.bf16 %v2270_v62, %v2269_v20  ;;  %v2290_v18 = vld [vmem:[%s10946_s1 + $0x6a8] sm:$0xff]  ;;  %vm10994_vm0 = vmmov %vm10993_vm8 }
 0x401   :  { %v1826_v16 = vpop.xlane.xlu0 %1825  ;;  %5782 = vmatprep.mubr.f32.mxu0 %v5415_v45  ;;  %v4841_v54 = vsel %vm2940_vm13, %v4840_v44, %v4836_v52  ;;  %v4979_v5 = vsel %vm2912_vm9, %v4978_v9, %v4974_v10  ;;  %v5072_v3 = vrot.slane %v10420_v25, %v7007_v42  ;;  %v10992_v45 = vld [vmem:[#allocation8_spill] sm:$0xff]  ;;  %v5077_v25 = vrot.slane %v10466_v15, %v7013_v46  ;;  %v2274_v37 = vld [vmem:[%s10946_s1 + $0x628] sm:$0xff]  ;;  %v2291_v52 = vld [vmem:[%s10946_s1 + $0x6b0] sm:$0xff] }
 0x402   :  { %v4846_v39 = vsel %vm2947_vm14, %v4845_v27, %v4841_v54  ;;  %v4993_v6 = vrot.slane %v1826_v16, %v7007_v42  ;;  %v5058_v16 = vsel %vm2912_vm9, %v5057_v4, %v5053_v43  ;;  %v4984_v0 = vsel %vm10993_vm8, %v4983_v2, %v4979_v5  ;;  %v2273_v15 = vld [vmem:[%s10946_s1 + $0x620] sm:$0xff]  ;;  %v2302_v9 = vld [vmem:[%s10946_s1 + $0x708] sm:$0xff]  ;;  %v2319_v2 = vld [vmem:[%s10946_s1 + $0x790] sm:$0xff] }
 0x403   :  { %v5063_v34 = vsel %vm10994_vm0, %v5062_v1, %v5058_v16  ;;  %v4989_v44 = vsel %vm2926_vm11, %v4988_v36, %v4984_v0  ;;  %vm10995_vm10 = vcmask 851712   ;;  %v6495_v43 = vpack.c.bf16 %v2290_v18, %v2289_v35  ;;  %v2320_v54 = vld [vmem:[%s10946_s1 + $0x798] sm:$0xff]  ;;  %v2293_v35 = vld [vmem:[%s10946_s1 + $0x6c0] sm:$0xff]  ;;  %v2294_v18 = vld [vmem:[%s10946_s1 + $0x6c8] sm:$0xff] }
 0x404   :  { %v1829_v47 = vpop.xlane.xlu1 %1828  ;;  %v5068_v19 = vsel %vm2926_vm11, %v5067_v22, %v5063_v34  ;;  %v4994_v27 = vsel %vm10995_vm10, %v4993_v6, %v4989_v44  ;;  %vm10996_vm8 = vmmov %vm10995_vm10  ;;  %v6497_v36 = vpack.c.bf16 %v2274_v37, %v2273_v15  ;;  %v10997_v22 = vld [vmem:[#allocation10_spill] sm:$0xff]  ;;  %v2321_v0 = vld [vmem:[%s10946_s1 + $0x7a0] sm:$0xff] }
 0x405   :  { %v1739_v33 = vpop.xlane.xlu0 %1738  ;;  %v4998_v55 = vrot.slane %v1829_v47, %v7013_v46  ;;  %v2301_v47 = vld [vmem:[%s10946_s1 + $0x700] sm:$0xff]  ;;  %v5073_v20 = vsel %vm10996_vm8, %v5072_v3, %v5068_v19 }
 0x406   :  { %v4850_v8 = vrot.slane %v1739_v33, %v7032_v61  ;;  %v2292_v33 = vld [vmem:[%s10946_s1 + $0x6b8] sm:$0xff]  ;;  %v5078_v41 = vsel %vm2940_vm13, %v5077_v25, %v5073_v20  ;;  %v2322_v25 = vld [vmem:[%s10946_s1 + $0x7a8] sm:$0xff]  ;;  %v2277_v19 = vld [vmem:[%s10946_s1 + $0x640] sm:$0xff] }
 0x407   :  { %v4999_v62 = vsel %vm2940_vm13, %v4998_v55, %v4994_v27  ;;  %v10998_v55 = vld [vmem:[#allocation11_spill] sm:$0xff]  ;;  %v2278_v27 = vld [vmem:[%s10946_s1 + $0x648] sm:$0xff]  ;;  %v6527_v37 = vpack.c.bf16 %v2322_v25, %v2321_v0 }
 0x408   :  { %v4851_v17 = vsel %vm2954_vm15, %v4850_v8, %v4846_v39  ;;  %v1832_v21 = vpop.xlane.xlu1 %1831  ;;  %v2295_v20 = vld [vmem:[%s10946_s1 + $0x6d0] sm:$0xff]  ;;  %v2310_v0 = vld [vmem:[%s10946_s1 + $0x748] sm:$0xff] }
 0x409   :  { %v1880_v12 = vpop.xlane.xlu0 %1879  ;;  %v5414_v49 = vsel %vm5405_vm12, %v4851_v17, %v10992_v45  ;;  %v5003_v60 = vrot.slane %v1832_v21, %v7027_v59  ;;  %v6521_v17 = vpack.c.bf16 %v2302_v9, %v2301_v47  ;;  %v6499_v21 = vpack.c.bf16 %v2292_v33, %v2291_v52  ;;  %v2306_v47 = vld [vmem:[%s10946_s1 + $0x728] sm:$0xff]  ;;  %v2324_v9 = vld [vmem:[%s10946_s1 + $0x7b8] sm:$0xff]  ;;  %v2299_v25 = vld [vmem:[%s10946_s1 + $0x6f0] sm:$0xff] }
 0x40a   :  { %5783 = vmatmul.mubr.f32.vlgmr.msra.gmra.mrb[4].mxu0 %v5414_v49  ;;  %v5082_v28 = vrot.slane %v1880_v12, %v7027_v59  ;;  %v6523_v45 = vpack.c.bf16 %v2320_v54, %v2319_v2  ;;  %v2304_v49 = vld [vmem:[%s10946_s1 + $0x718] sm:$0xff]  ;;  %v6505_v52 = vpack.c.bf16 %v2278_v27, %v2277_v19  ;;  %v2279_v2 = vld [vmem:[%s10946_s1 + $0x650] sm:$0xff] }
 0x40b   :  { %6490 = vmatpush3.bf16.msra.mxu0 %v6489_v11  ;;  %v5004_v63 = vsel %vm2947_vm14, %v5003_v60, %v4999_v62  ;;  %v2296_v62 = vld [vmem:[%s10946_s1 + $0x6d8] sm:$0xff] }
 0x40c   :  { %v1835_v26 = vpop.xlane.xlu1 %1834  ;;  %6492 = vmatprep.subr.bf16.mxu0 %v6491_v38  ;;  %v5083_v8 = vsel %vm2947_vm14, %v5082_v28, %v5078_v41  ;;  %v2275_v38 = vld [vmem:[%s10946_s1 + $0x630] sm:$0xff]  ;;  %v6525_v28 = vpack.c.bf16 %v2304_v49, %v2303_v14  ;;  %v2280_v54 = vld [vmem:[%s10946_s1 + $0x658] sm:$0xff]  ;;  %v2282_v49 = vld [vmem:[%s10946_s1 + $0x668] sm:$0xff] }
 0x40d   :  { %v5008_v51 = vrot.slane %v1835_v26, %v7032_v61  ;;  %v1883_v4 = vpop.xlane.xlu0 %1882  ;;  %v6501_v60 = vpack.c.bf16 %v2276_v24, %v2275_v38  ;;  %v2305_v26 = vld [vmem:[%s10946_s1 + $0x720] sm:$0xff]  ;;  %v2326_v38 = vld [vmem:[%s10946_s1 + $0x7c8] sm:$0xff]  ;;  %v6509_v14 = vpack.c.bf16 %v2280_v54, %v2279_v2 }
 0x40e   :  { %v5087_v10 = vrot.slane %v1883_v4, %v7032_v61  ;;  %v2323_v4 = vld [vmem:[%s10946_s1 + $0x7b0] sm:$0xff] }
 0x40f   :  { %v5009_v1 = vsel %vm2954_vm15, %v5008_v51, %v5004_v63  ;;  %6494 = vmatpush3.bf16.msra.mxu0 %v6493_v31  ;;  %v6503_v31 = vpack.c.bf16 %v2294_v18, %v2293_v35  ;;  %v6529_v63 = vpack.c.bf16 %v2306_v47, %v2305_v26  ;;  %v2309_v35 = vld [vmem:[%s10946_s1 + $0x740] sm:$0xff] }
 0x410   :  { %v1937_v39 = vpop.xlane.xlu1 %1936  ;;  %v5088_v11 = vsel %vm2954_vm15, %v5087_v10, %v5083_v8  ;;  %v5416_v6 = vsel %vm5405_vm12, %v5009_v1, %v10997_v22  ;;  %6496 = vmatprep.subr.bf16.mxu0 %v6495_v43  ;;  %v6507_v10 = vpack.c.bf16 %v2296_v62, %v2295_v20  ;;  %v2307_v8 = vld [vmem:[%s10946_s1 + $0x730] sm:$0xff]  ;;  %v2297_v22 = vld [vmem:[%s10946_s1 + $0x6e0] sm:$0xff]  ;;  %v6537_v26 = vpack.c.bf16 %v2310_v0, %v2309_v35 }
 0x411   :  { %v5175_v5 = vrot.slane %v1937_v39, %v6912_v32  ;;  %v1934_v3 = vpop.xlane.xlu0 %1933  ;;  %v5417_v12 = vsel %vm5405_vm12, %v5088_v11, %v10998_v55  ;;  %v6531_v39 = vpack.c.bf16 %v2324_v9, %v2323_v4  ;;  %v2308_v11 = vld [vmem:[%s10946_s1 + $0x738] sm:$0xff] }
 0x412   :  { %v5171_v16 = vrot.slane %v1934_v3, %v6906_v30  ;;  %5852 = vmatprep.mubr.f32.mxu1 %v5417_v12  ;;  %v6533_v55 = vpack.c.bf16 %v2308_v11, %v2307_v8  ;;  %v2312_v4 = vld [vmem:[%s10946_s1 + $0x758] sm:$0xff]  ;;  %v2314_v11 = vld [vmem:[%s10946_s1 + $0x768] sm:$0xff] }
 0x413   :  { %5853 = vmatmul.mubr.f32.vlgmr.msra.gmra.mrb[4].mxu1 %v5416_v6  ;;  %6498 = vmatpush3.bf16.msra.mxu0 %v6497_v36  ;;  %v2298_v6 = vld [vmem:[%s10946_s1 + $0x6e8] sm:$0xff] }
 0x414   :  { %v5176_v34 = vsel %vm2856_vm1, %v5175_v5, %v5171_v16  ;;  %v1889_v44 = vpop.xlane.xlu1 %1888  ;;  %6522 = vmatpush3.bf16.msra.mxu1 %v6521_v17  ;;  %6500 = vmatprep.subr.bf16.mxu0 %v6499_v21  ;;  %v2325_v21 = vld [vmem:[%s10946_s1 + $0x7c0] sm:$0xff]  ;;  %v6511_v12 = vpack.c.bf16 %v2298_v6, %v2297_v22  ;;  %v2331_v6 = vld [vmem:[%s10946_s1 + $0x7f0] sm:$0xff] }
 0x415   :  { %v5096_v43 = vrot.slane %v1889_v44, %v6912_v32  ;;  %v1886_v15 = vpop.xlane.xlu0 %1885  ;;  %6524 = vmatprep.subr.bf16.mxu1 %v6523_v45  ;;  %v2281_v45 = vld [vmem:[%s10946_s1 + $0x660] sm:$0xff]  ;;  %v6535_v16 = vpack.c.bf16 %v2326_v38, %v2325_v21  ;;  %v2327_v44 = vld [vmem:[%s10946_s1 + $0x7d0] sm:$0xff] }
 0x416   :  { %v5092_v51 = vrot.slane %v1886_v15, %v6906_v30  ;;  %v2283_v15 = vld [vmem:[%s10946_s1 + $0x670] sm:$0xff] }
 0x417   :  { %6502 = vmatpush3.bf16.msra.mxu0 %v6501_v60  ;;  %v2300_v60 = vld [vmem:[%s10946_s1 + $0x6f8] sm:$0xff] }
 0x418   :  { %v5097_v33 = vsel %vm2856_vm1, %v5096_v43, %v5092_v51  ;;  %v1892_v41 = vpop.xlane.xlu1 %1891  ;;  %6526 = vmatpush3.bf16.msra.mxu1 %v6525_v28  ;;  %6504 = vmatprep.subr.bf16.mxu0 %v6503_v31  ;;  %v2328_v28 = vld [vmem:[%s10946_s1 + $0x7d8] sm:$0xff]  ;;  %v6513_v31 = vpack.c.bf16 %v2282_v49, %v2281_v45  ;;  %v6515_v43 = vpack.c.bf16 %v2300_v60, %v2299_v25  ;;  %v2311_v51 = vld [vmem:[%s10946_s1 + $0x750] sm:$0xff] }
 0x419   :  { %v5101_v1 = vrot.slane %v1892_v41, %v10981_v48  ;;  %v1940_v36 = vpop.xlane.xlu0 %1939  ;;  %6528 = vmatprep.subr.bf16.mxu1 %v6527_v37  ;;  %v2284_v37 = vld [vmem:[%s10946_s1 + $0x678] sm:$0xff]  ;;  %v6539_v62 = vpack.c.bf16 %v2328_v28, %v2327_v44  ;;  %v2330_v41 = vld [vmem:[%s10946_s1 + $0x7e8] sm:$0xff]  ;;  %v6541_v8 = vpack.c.bf16 %v2312_v4, %v2311_v51 }
 0x41a   :  { %v5180_v17 = vrot.slane %v1940_v36, %v10981_v48 }
 0x41b   :  { %v5102_v24 = vsel %vm2863_vm2, %v5101_v1, %v5097_v33  ;;  %6506 = vmatpush3.bf16.msra.mxu0 %v6505_v52  ;;  %v2329_v33 = vld [vmem:[%s10946_s1 + $0x7e0] sm:$0xff] }
 0x41c   :  { %v5181_v5 = vsel %vm2863_vm2, %v5180_v17, %v5176_v34  ;;  %v2030_v3 = vpop.xlane.xlu1 %2029  ;;  %6530 = vmatpush3.bf16.msra.mxu1 %v6529_v63  ;;  %6508 = vmatprep.subr.bf16.mxu0 %v6507_v10  ;;  %v6517_v10 = vpack.c.bf16 %v2284_v37, %v2283_v15  ;;  %v6543_v36 = vpack.c.bf16 %v2330_v41, %v2329_v33  ;;  %v2332_v17 = vld [vmem:[%s10946_s1 + $0x7f8] sm:$0xff] }
 0x41d   :  { %v1943_v18 = vpop.xlane.xlu0 %1942  ;;  %6532 = vmatprep.subr.bf16.mxu1 %v6531_v39  ;;  %v5329_v9 = vrot.slane %v2030_v3, %v6906_v30  ;;  %v2313_v39 = vld [vmem:[%s10946_s1 + $0x760] sm:$0xff]  ;;  %v6547_v3 = vpack.c.bf16 %v2332_v17, %v2331_v6 }
 0x41e   :  { %v5185_v34 = vrot.slane %v1943_v18, %v10982_v50 }
 0x41f   :  { %6510 = vmatpush3.bf16.msra.mxu0 %v6509_v14 }
 0x420   :  { %v5186_v19 = vsel %vm2870_vm3, %v5185_v34, %v5181_v5  ;;  %v1895_v27 = vpop.xlane.xlu1 %1894  ;;  %6534 = vmatpush3.bf16.msra.mxu1 %v6533_v55  ;;  %6512 = vmatprep.subr.bf16.mxu0 %v6511_v12  ;;  %v2315_v55 = vld [vmem:[%s10946_s1 + $0x770] sm:$0xff]  ;;  %v2316_v12 = vld [vmem:[%s10946_s1 + $0x778] sm:$0xff] }
 0x421   :  { %v5106_v47 = vrot.slane %v1895_v27, %v10982_v50  ;;  %v2033_v20 = vpop.xlane.xlu0 %2032  ;;  %6536 = vmatprep.subr.bf16.mxu1 %v6535_v16  ;;  %v6549_v0 = vpack.c.bf16 %v2316_v12, %v2315_v55 }
 0x422   :  { %v5333_v52 = vrot.slane %v2033_v20, %v6912_v32 }
 0x423   :  { %v5107_v63 = vsel %vm2870_vm3, %v5106_v47, %v5102_v24  ;;  %6514 = vmatpush3.bf16.msra.mxu0 %v6513_v31  ;;  %v6545_v24 = vpack.c.bf16 %v2314_v11, %v2313_v39 }
 0x424   :  { %v5334_v2 = vsel %vm2856_vm1, %v5333_v52, %v5329_v9  ;;  %v1982_v54 = vpop.xlane.xlu1 %1981  ;;  %6538 = vmatpush3.bf16.msra.mxu1 %v6537_v26  ;;  %6516 = vmatprep.subr.bf16.mxu0 %v6515_v43 }
 0x425   :  { %v1946_v1 = vpop.xlane.xlu0 %1945  ;;  %6540 = vmatprep.subr.bf16.mxu1 %v6539_v62  ;;  %v5250_v45 = vrot.slane %v1982_v54, %v6906_v30 }
 0x426   :  { %v5190_v22 = vrot.slane %v1946_v1, %v10983_v58 }
 0x427   :  { %6518 = vmatpush3.bf16.msra.mxu0 %v6517_v10 }
 0x428   :  { %v5191_v21 = vsel %vm2877_vm4, %v5190_v22, %v5186_v19  ;;  %v2036_v38 = vpop.xlane.xlu1 %2035  ;;  %6542 = vmatpush3.bf16.msra.mxu1 %v6541_v8 }
 0x429   :  { %v5338_v14 = vrot.slane %v2036_v38, %v10981_v48  ;;  %v1985_v5 = vpop.xlane.xlu0 %1984  ;;  %6544 = vmatprep.subr.bf16.mxu1 %v6543_v36 }
 0x42a   :  { %v5254_v49 = vrot.slane %v1985_v5, %v6912_v32 }
 0x42b   :  { %v5339_v35 = vsel %vm2863_vm2, %v5338_v14, %v5334_v2 }
 0x42c   :  { %v5255_v18 = vsel %vm2856_vm1, %v5254_v49, %v5250_v45  ;;  %v1949_v16 = vpop.xlane.xlu1 %1948  ;;  %6546 = vmatpush3.bf16.msra.mxu1 %v6545_v24  ;;  %vm10999_vm1 = vcmask 589312  }
 0x42d   :  { %v5195_v25 = vrot.slane %v1949_v16, %v6924_v40  ;;  %v1898_v60 = vpop.xlane.xlu0 %1897  ;;  %6548 = vmatprep.subr.bf16.mxu1 %v6547_v3  ;;  %vm11004_vm10 = vmmov %vm10999_vm1 }
 0x42e   :  { %v5111_v34 = vrot.slane %v1898_v60, %v10983_v58 }
 0x42f   :  { %v10746_v44 = vsel %vm2884_vm5, %v5195_v25, %v5191_v21 }
 0x430   :  { %v5112_v30 = vsel %vm2877_vm4, %v5111_v34, %v5107_v63  ;;  %v2039_v28 = vpop.xlane.xlu1 %2038  ;;  %6550 = vmatpush3.bf16.msra.mxu1 %v6549_v0 }
 0x431   :  { %v5343_v32 = vrot.slane %v2039_v28, %v10982_v50  ;;  %v1988_v31 = vpop.xlane.xlu0 %1987 }
 0x432   :  { %v5259_v19 = vrot.slane %v1988_v31, %v10981_v48 }
 0x433   :  { %v5344_v27 = vsel %vm2870_vm3, %v5343_v32, %v5339_v35 }
 0x434   :  { %v5260_v26 = vsel %vm2863_vm2, %v5259_v19, %v5255_v18  ;;  %v1952_v43 = vpop.xlane.xlu1 %1951  ;;  %vm11000_vm2 = vmmov %vm10994_vm0 }
 0x435   :  { %v1901_v15 = vpop.xlane.xlu0 %1900 }
 0x436   :  { %v5116_v37 = vrot.slane %v1901_v15, %v6924_v40 }
 0x438   :  { %v10755_v47 = vsel %vm2884_vm5, %v5116_v37, %v5112_v30  ;;  %v2042_v20 = vpop.xlane.xlu1 %2041 }
 0x439   :  { %v5348_v62 = vrot.slane %v2042_v20, %v10983_v58  ;;  %v1991_v51 = vpop.xlane.xlu0 %1990 }
 0x43a   :  { %v5264_v4 = vrot.slane %v1991_v51, %v10982_v50 }
 0x43b   :  { %v5349_v9 = vsel %vm2877_vm4, %v5348_v62, %v5344_v27  ;;  %v5200_v27 = vrot.slane %v1952_v43, %v6949_v57 }
 0x43c   :  { %v5265_v48 = vsel %vm2870_vm3, %v5264_v4, %v5260_v26  ;;  %v1955_v52 = vpop.xlane.xlu1 %1954  ;;  %vm11001_vm3 = vmmov %vm10996_vm8 }
 0x43d   :  { %v10761_v33 = vpop.xlane.xlu0 %1903  ;;  %v5205_v26 = vrot.slane %v1955_v52, %v6946_v56  ;;  %v5201_v51 = vsel %vm2891_vm6, %v5200_v27, %v10746_v44  ;;  %vm11005_vm8 = vmmov %vm11001_vm3 }
 0x43e   :  { %v5121_v44 = vrot.slane %v10761_v33, %v6949_v57 }
 0x440   :  { %v2045_v41 = vpop.xlane.xlu1 %2044 }
 0x441   :  { %v5353_v63 = vrot.slane %v2045_v41, %v6924_v40  ;;  %v1994_v10 = vpop.xlane.xlu0 %1993 }
 0x442   :  { %v5269_v2 = vrot.slane %v1994_v10, %v10983_v58 }
 0x443   :  { %v10766_v54 = vsel %vm2884_vm5, %v5353_v63, %v5349_v9  ;;  %v5206_v9 = vsel %vm2898_vm7, %v5205_v26, %v5201_v51 }
 0x444   :  { %v10769_v8 = vsel %vm2877_vm4, %v5269_v2, %v5265_v48  ;;  %v1958_v50 = vpop.xlane.xlu1 %1957  ;;  %vm11003_vm4 = vmmov %vm10999_vm1 }
 0x445   :  { %v10771_v1 = vpop.xlane.xlu0 %1906  ;;  %v5210_v15 = vrot.slane %v1958_v50, %v6979_v13 }
 0x447   :  { %v5211_v41 = vsel %vm10999_vm1, %v5210_v15, %v5206_v9 }
 0x448   :  { %v10773_v36 = vpop.xlane.xlu1 %2047 }
 0x449   :  { %v10775_v39 = vpop.xlane.xlu0 %1996 }
 0x44a   :  { %v5274_v26 = vrot.slane %v10775_v39, %v6924_v40 }
 0x44c   :  { %v1961_v11 = vpop.xlane.xlu1 %1960 }
 0x44d   :  { %v10777_v22 = vpop.xlane.xlu0 %1909  ;;  %v5215_v20 = vrot.slane %v1961_v11, %v6967_v7 }
 0x44f   :  { %v5216_v63 = vsel %vm2912_vm9, %v5215_v20, %v5211_v41 }
 0x450   :  { %v10779_v6 = vpop.xlane.xlu1 %2050 }
 0x451   :  { %v10781_v17 = vpop.xlane.xlu0 %1999 }
 0x454   :  { %v1964_v58 = vpop.xlane.xlu1 %1963 }
 0x455   :  { %v10783_v21 = vpop.xlane.xlu0 %1912  ;;  %v5220_v4 = vrot.slane %v1964_v58, %v6999_v29  ;;  %v5126_v58 = vrot.slane %v10771_v1, %v6946_v56 }
 0x457   :  { %v5221_v50 = vsel %vm11000_vm2, %v5220_v4, %v5216_v63 }
 0x458   :  { %v10785_v38 = vpop.xlane.xlu1 %2053 }
 0x459   :  { %v10787_v24 = vpop.xlane.xlu0 %2002  ;;  %v5368_v51 = vrot.slane %v10785_v38, %v6979_v13  ;;  %v5275_v38 = vsel %vm2884_vm5, %v5274_v26, %v10769_v8  ;;  %vm11006_vm5 = vmmov %vm10999_vm1 }
 0x45a   :  { %v5284_v9 = vrot.slane %v10787_v24, %v6946_v56  ;;  %vm11010_vm1 = vmmov %vm11001_vm3 }
 0x45b   :  { %vm11011_vm2 = vmmov %vm11010_vm1 }
 0x45c   :  { %v1967_v14 = vpop.xlane.xlu1 %1966  ;;  %v6117_v5 = vpop.f32.mrb[2].mxu0 }
 0x45d   :  { %v10789_v3 = vpop.xlane.xlu0 %1915  ;;  %v6118_v55 = vpop.f32.mrb[3].mxu0  ;;  %v5225_v48 = vrot.slane %v1967_v14, %v6987_v23 }
 0x45e   :  { %v6119_v12 = vadd.f32 %v6118_v55, %v6117_v5 }
 0x45f   :  { %v5226_v14 = vsel %vm2926_vm11, %v5225_v48, %v5221_v50 }
 0x460   :  { %v5645_v45 = vadd.f32 %v6119_v12, %v10359_v53  ;;  %v10792_v49 = vpop.xlane.xlu1 %2056  ;;  %v5131_v12 = vrot.slane %v10777_v22, %v6979_v13  ;;  %v5141_v22 = vrot.slane %v10789_v3, %v6999_v29  ;;  %v5279_v3 = vrot.slane %v10781_v17, %v6949_v57 }
 0x461   :  { %v10794_v35 = vpop.xlane.xlu0 %2005  ;;  %v5373_v8 = vrot.slane %v10792_v49, %v6967_v7 }
 0x462   :  { %v5289_v48 = vrot.slane %v10794_v35, %v6979_v13 }
 0x464   :  { %v1970_v18 = vpop.xlane.xlu1 %1969 }
 0x465   :  { %v10796_v16 = vpop.xlane.xlu0 %1918  ;;  %v6152_v0 = vpop.f32.mrb[2].mxu1  ;;  %v5230_v43 = vrot.slane %v1970_v18, %v7007_v42 }
 0x466   :  { %v6153_v25 = vpop.f32.mrb[3].mxu1 }
 0x467   :  { %v6154_v60 = vadd.f32 %v6153_v25, %v6152_v0  ;;  %v5231_v5 = vsel %vm11001_vm3, %v5230_v43, %v5226_v14  ;;  %v5122_v0 = vsel %vm2891_vm6, %v5121_v44, %v10755_v47  ;;  %v5136_v25 = vrot.slane %v10783_v21, %v6967_v7 }
 0x468   :  { %v10798_v34 = vpop.xlane.xlu1 %2059  ;;  %v5363_v47 = vrot.slane %v10779_v6, %v6946_v56  ;;  %v5146_v21 = vrot.slane %v10796_v16, %v6987_v23 }
 0x469   :  { %v10800_v30 = vadd.f32 %v6154_v60, %v5645_v45  ;;  %v10802_v28 = vpop.xlane.xlu0 %2008  ;;  %v5127_v60 = vsel %vm2898_vm7, %v5126_v58, %v5122_v0  ;;  %v5378_v50 = vrot.slane %v10798_v34, %v6999_v29 }
 0x46a   :  { %v5294_v56 = vrot.slane %v10802_v28, %v6967_v7 }
 0x46c   :  { %v1973_v32 = vpop.xlane.xlu1 %1972 }
 0x46d   :  { %v10804_v31 = vpop.xlane.xlu0 %1921  ;;  %v5235_v10 = vrot.slane %v1973_v32, %v7013_v46  ;;  %v5358_v32 = vrot.slane %v10773_v36, %v6949_v57  ;;  %v5132_v36 = vsel %vm11003_vm4, %v5131_v12, %v5127_v60 }
 0x46e   :  { %v5151_v40 = vrot.slane %v10804_v31, %v7007_v42  ;;  %v5137_v6 = vsel %vm2912_vm9, %v5136_v25, %v5132_v36  ;;  %v11013_v36 = vld [vmem:[#allocation15_spill] sm:$0xff] }
 0x46f   :  { %v5236_v45 = vsel %vm2940_vm13, %v5235_v10, %v5231_v5  ;;  %v5359_v4 = vsel %vm2891_vm6, %v5358_v32, %v10766_v54  ;;  %v5142_v57 = vsel %vm10994_vm0, %v5141_v22, %v5137_v6  ;;  %v5280_v54 = vsel %vm2891_vm6, %v5279_v3, %v5275_v38  ;;  %vm11008_vm6 = vmmov %vm10994_vm0 }
 0x470   :  { %v10806_v53 = vpop.xlane.xlu1 %2062  ;;  %v5364_v31 = vsel %vm2898_vm7, %v5363_v47, %v5359_v4  ;;  %v5285_v44 = vsel %vm2898_vm7, %v5284_v9, %v5280_v54  ;;  %vm11009_vm7 = vmmov %vm10994_vm0 }
 0x471   :  { %v10808_v19 = vpop.xlane.xlu0 %2011  ;;  %v5369_v43 = vsel %vm11004_vm10, %v5368_v51, %v5364_v31  ;;  %v5290_v58 = vsel %vm11006_vm5, %v5289_v48, %v5285_v44  ;;  %v5383_v7 = vrot.slane %v10806_v53, %v6987_v23 }
 0x472   :  { %v5299_v10 = vrot.slane %v10808_v19, %v6999_v29  ;;  %v5295_v5 = vsel %vm2912_vm9, %v5294_v56, %v5290_v58 }
 0x474   :  { %v1976_v37 = vpop.xlane.xlu1 %1975 }
 0x475   :  { %v1925_v62 = vpop.xlane.xlu0 %1924  ;;  %v5240_v11 = vrot.slane %v1976_v37, %v7027_v59  ;;  %v11002_v37 = vld [vmem:[#allocation13_spill] sm:$0xff] }
 0x476   :  { %v5156_v16 = vrot.slane %v1925_v62, %v7013_v46  ;;  %v5147_v62 = vsel %vm2926_vm11, %v5146_v21, %v5142_v57 }
 0x477   :  { %v5241_v1 = vsel %vm2947_vm14, %v5240_v11, %v5236_v45  ;;  %v5152_v24 = vsel %vm11005_vm8, %v5151_v40, %v5147_v62  ;;  %v5374_v45 = vsel %vm2912_vm9, %v5373_v8, %v5369_v43 }
 0x478   :  { %v10821_v52 = vpop.xlane.xlu1 %2065  ;;  %v5157_v13 = vsel %vm2940_vm13, %v5156_v16, %v5152_v24 }
 0x479   :  { %v10825_v2 = vpop.xlane.xlu0 %2014  ;;  %v5388_v29 = vrot.slane %v10821_v52, %v7007_v42 }
 0x47a   :  { %v5304_v28 = vrot.slane %v10825_v2, %v6987_v23  ;;  %v5300_v23 = vsel %vm11008_vm6, %v5299_v10, %v5295_v5 }
 0x47c   :  { %v1979_v55 = vpop.xlane.xlu1 %1978  ;;  %v5305_v0 = vsel %vm2926_vm11, %v5304_v28, %v5300_v23 }
 0x47d   :  { %v5245_v18 = vrot.slane %v1979_v55, %v7032_v61  ;;  %v1928_v33 = vpop.xlane.xlu0 %1927  ;;  %v11007_v55 = vld [vmem:[#allocation12_spill] sm:$0xff] }
 0x47e   :  { %v5161_v17 = vrot.slane %v1928_v33, %v7027_v59  ;;  %v5379_v33 = vsel %vm11009_vm7, %v5378_v50, %v5374_v45 }
 0x47f   :  { %v5246_v27 = vsel %vm2954_vm15, %v5245_v18, %v5241_v1  ;;  %v5384_v52 = vsel %vm2926_vm11, %v5383_v7, %v5379_v33 }
 0x480   :  { %v2069_v15 = vpop.xlane.xlu1 %2068  ;;  %v5419_v20 = vsel %vm5405_vm12, %v5246_v27, %v11002_v37  ;;  %v5162_v11 = vsel %vm2947_vm14, %v5161_v17, %v5157_v13  ;;  %v5389_v60 = vsel %vm11011_vm2, %v5388_v29, %v5384_v52  ;;  %v11012_v37 = vld [vmem:[#allocation14_spill] sm:$0xff] }
 0x481   :  { %v2018_v39 = vpop.xlane.xlu0 %2017  ;;  %5922 = vmatprep.mubr.f32.mxu0 %v5419_v20  ;;  %v5393_v53 = vrot.slane %v2069_v15, %v7013_v46 }
 0x482   :  { %v5309_v49 = vrot.slane %v2018_v39, %v7007_v42 }
 0x483   :  { %v5394_v27 = vsel %vm2940_vm13, %v5393_v53, %v5389_v60 }
 0x484   :  { %v2021_v41 = vpop.xlane.xlu1 %2020  ;;  %v5310_v25 = vsel %vm11010_vm1, %v5309_v49, %v5305_v0 }
 0x485   :  { %v1931_v63 = vpop.xlane.xlu0 %1930  ;;  %v5314_v34 = vrot.slane %v2021_v41, %v7013_v46 }
 0x486   :  { %v5166_v35 = vrot.slane %v1931_v63, %v7032_v61 }
 0x487   :  { %v5315_v32 = vsel %vm2940_vm13, %v5314_v34, %v5310_v25 }
 0x488   :  { %v5167_v19 = vsel %vm2954_vm15, %v5166_v35, %v5162_v11  ;;  %v2024_v14 = vpop.xlane.xlu1 %2023 }
 0x489   :  { %v2072_v2 = vpop.xlane.xlu0 %2071  ;;  %v5418_v12 = vsel %vm5405_vm12, %v5167_v19, %v11007_v55  ;;  %v5319_v18 = vrot.slane %v2024_v14, %v7027_v59 }
 0x48a   :  { %5923 = vmatmul.mubr.f32.vlgmr.msra.gmra.mrb[6].mxu0 %v5418_v12  ;;  %v5398_v42 = vrot.slane %v2072_v2, %v7027_v59 }
 0x48b   :  { %v5320_v26 = vsel %vm2947_vm14, %v5319_v18, %v5315_v32 }
 0x48c   :  { %v2027_v1 = vpop.xlane.xlu1 %2026  ;;  %v5399_v59 = vsel %vm2947_vm14, %v5398_v42, %v5394_v27 }
 0x48d   :  { %v5324_v46 = vrot.slane %v2027_v1, %v7032_v61  ;;  %v2075_v22 = vpop.xlane.xlu0 %2074 }
 0x48e   :  { %v5403_v47 = vrot.slane %v2075_v22, %v7032_v61  ;;  %v6014_v61 = vld [vmem:[%s10947_s2] ss:$0 sm:$0xff]  ;;  %s6552_s2 = scalar_lea.vmem %s6007_s6, 32 }
 0x48f   :  { %v5325_v21 = vsel %vm2954_vm15, %v5324_v46, %v5320_v26  ;;  %26 = vst [vmem:[#allocation2] sm:$0x3] %v6014_v61  ;;  %p6553_p0 = scmp.ne.s32.totalorder %s6007_s6, %s6552_s2  ;;  %p6558_p2 = scmp.lt.s32.totalorder %s6552_s2, %s6552_s2 }
 0x490   :  { %v5404_v15 = vsel %vm2954_vm15, %v5403_v47, %v5399_v59  ;;  %v5420_v20 = vsel %vm5405_vm12, %v5325_v21, %v11012_v37 }
 0x491   :  { %v5421_v3 = vsel %vm5405_vm12, %v5404_v15, %v11013_v36  ;;  %p6559_p3 = por %p6558_p2, %p6557_p1 }
 0x492   :  { %5992 = vmatprep.mubr.f32.mxu1 %v5421_v3 }
 0x493   :  { %5993 = vmatmul.mubr.f32.vlgmr.msra.gmra.mrb[6].mxu1 %v5420_v20  ;;  %p6560_p4 = pnand %p6559_p3, %p6553_p0 }
 0x496   :  { %v2076_v43 = vld [vmem:[#allocation2] sm:$0x3] }
 0x4dd   :  { %v6187_v51 = vpop.f32.mrb[4].mxu0 }
 0x4de   :  { %v6188_v40 = vpop.f32.mrb[5].mxu0 }
 0x4df   :  { %v6189_v39 = vadd.f32 %v6188_v40, %v6187_v51 }
 0x4e1   :  { %v5785_v6 = vadd.f32 %v6189_v39, %v10800_v30 }
 0x4e6   :  { %v6222_v16 = vpop.f32.mrb[4].mxu1 }
 0x4e7   :  { %v6223_v4 = vpop.f32.mrb[5].mxu1 }
 0x4e8   :  { %v6224_v9 = vadd.f32 %v6223_v4, %v6222_v16 }
 0x4ea   :  { %v5855_v57 = vadd.f32 %v6224_v9, %v5785_v6 }
 0x55d   :  { %v6257_v17 = vpop.f32.mrb[6].mxu0 }
 0x55e   :  { %v6258_v38 = vpop.f32.mrb[7].mxu0 }
 0x55f   :  { %v6259_v31 = vadd.f32 %v6258_v38, %v6257_v17 }
 0x561   :  { %v5925_v48 = vadd.f32 %v6259_v31, %v5855_v57 }
 0x566   :  { %v6292_v62 = vpop.f32.mrb[6].mxu1 }
 0x567   :  { %v6293_v41 = vpop.f32.mrb[7].mxu1 }
 0x568   :  { %v6294_v54 = vadd.f32 %v6293_v41, %v6292_v62 }
 0x56a   :  { %v5995_v30 = vadd.f32 %v6294_v54, %v5925_v48 }
 0x56c   :  { %v5998_v56 = vadd.f32 %v5995_v30, %v2076_v43 }
 0x56e   :  { %5999 = vst [vmem:[#allocation2] sm:$0x3] %v5998_v56 }
 0x56f   :  { %6563 = shalt.err (!%p6560_p4)
}
 0x570   :  { %s6564_s9 = scalar_lea.hbm %s10948_s3, 32 }
 0x571   :  { %p6565_p5 = scmp.ne.s32.totalorder %s10948_s3, %s6564_s9  ;;  %p6568_p6 = scmp.lt.u32.totalorder %s6564_s9, %s10948_s3 }
 0x573   :  { %p6570_p7 = pnand %p6568_p6, %p6565_p5 }
 0x575   :  { %6573 = shalt.err (!%p6570_p7)
}
 0x576   :  { %6009 = dma.vmem_to_hbm [thread:$0]  %s6007_s6, 32, %s10948_s3, [#allocation3]  }
 0x577   :  { %6574 = dma.done.wait [#allocation3], 32  }
 0x578   :  { %6575 = vsyncadd [#allocation3], 4294967264 }
 0x579   :  { %6013 = vsyncpa [#allocation3], 1 }

</bundles_post_ra>
